<compile_context>
chip_gen: v6e
topology: v6e:2x2x1
jax: 0.10.0
libtpu: 0.0.40
codegen_flags: <defaults>
</compile_context>

<pallas_src>
import functools

import jax
import jax.numpy as jnp
from jax import lax
from jax.experimental import pallas as pl
from jax.experimental.pallas import tpu as pltpu


def _round_up(x, m):
    return ((x + m - 1) // m) * m


def _block_diag(a, b):
    out = jnp.zeros((a.shape[0] + b.shape[0], a.shape[1] + b.shape[1]), a.dtype)
    out = out.at[: a.shape[0], : a.shape[1]].set(a)
    out = out.at[a.shape[0]:, a.shape[1]:].set(b)
    return out


# ----------------------------------------------------------------------------
# Parameter construction (deterministic, synthetic)
# ----------------------------------------------------------------------------
def _init_mlp(key, in_dim, hidden_units, emb_dim):
    dims = [in_dim] + list(hidden_units) + [emb_dim]
    params = []
    for i in range(len(dims) - 1):
        key, kw, kb = jax.random.split(key, 3)
        w = jax.random.normal(kw, (dims[i], dims[i + 1]), jnp.float32) / jnp.sqrt(
            jnp.float32(dims[i]))
        b = 0.1 * jax.random.normal(kb, (1, dims[i + 1]), jnp.float32)
        params.append((w, b))
    return params, key


def build_dssm_params(key, config, user_feature_columns, item_feature_columns):
    conf = config["Model"]
    user_sparse, user_dense = user_feature_columns
    item_sparse, item_dense = item_feature_columns

    params = {"user_emb": [], "item_emb": []}
    for feat in user_sparse:
        key, k = jax.random.split(key)
        params["user_emb"].append(
            jax.random.normal(k, (feat["feat_onehot_dim"], feat["embed_dim"]),
                              jnp.float32) * 0.05)
    for feat in item_sparse:
        key, k = jax.random.split(key)
        params["item_emb"].append(
            jax.random.normal(k, (feat["feat_onehot_dim"], feat["embed_dim"]),
                              jnp.float32) * 0.05)

    user_num_feature = sum(f["embed_dim"] for f in user_sparse) + len(user_dense)
    item_num_feature = sum(f["embed_dim"] for f in item_sparse) + len(item_dense)

    params["user_dnn"], key = _init_mlp(key, user_num_feature,
                                        conf["user_dnn_hidden_units"],
                                        conf["user_dnn_embedding"])
    params["item_dnn"], key = _init_mlp(key, item_num_feature,
                                        conf["item_dnn_hidden_units"],
                                        conf["item_dnn_embedding"])
    return params


# ----------------------------------------------------------------------------
# Weight packing: fuse towers block-diagonally; fold embeddings, dense weights
# and the layer-0 bias (always-1 column) into ONE layer-0 RHS buffer.
# ----------------------------------------------------------------------------
def _pack_fused_weights(params, user_feature_columns, item_feature_columns,
                        compute_dtype):
    user_sparse, user_dense = user_feature_columns
    item_sparse, item_dense = item_feature_columns
    user_dnn, item_dnn = params["user_dnn"], params["item_dnn"]
    hp = jax.lax.Precision.HIGHEST

    L = len(user_dnn)
    assert len(item_dnn) == L, "fused-tower kernel assumes equal tower depth"
    # TODO(synk): support unequal user/item tower depths (pad the shallower tower).

    e_u = [f["embed_dim"] for f in user_sparse]
    e_i = [f["embed_dim"] for f in item_sparse]
    n_us, n_is = len(user_sparse), len(item_sparse)
    n_ud, n_id = len(user_dense), len(item_dense)
    du = [sum(e_u) + n_ud] + [w.shape[1] for w, _ in user_dnn]
    di = [sum(e_i) + n_id] + [w.shape[1] for w, _ in item_dnn]
    assert du[L] == di[L], "cosine score requires equal user/item embedding dims"
    fused = [du[l] + di[l] for l in range(L + 1)]

    h_pad = _round_up(max(fused[1:]), 128)            # uniform fused layer width
    vocabs = ([f["feat_onehot_dim"] for f in user_sparse]
              + [f["feat_onehot_dim"] for f in item_sparse])
    n_sp = n_us + n_is
    assert n_sp >= 1, "kernel expects at least one sparse feature"
    v_pad = _round_up(max(vocabs), 128)
    assert n_ud + n_id + 1 <= 128, "dense features must fit one 128-lane block"
    k0 = n_sp * v_pad + 128                           # fused layer-0 K
    # TODO(synk): huge-vocab embedding tables will not fit this folded one-hot
    # path (gpack ~ n_sp*v_pad*h_pad, MXU MACs ~ v_pad); switch to a manual DMA
    # gather (memory_space=pl.ANY + make_async_copy) for real vocabularies.

    # ---- layer 0: single [k0, h_pad] RHS --------------------------------
    w_u0, b_u0 = user_dnn[0]
    w_i0, b_i0 = item_dnn[0]
    w0 = _block_diag(w_u0, w_i0)                      # [du0+di0, fused[1]]
    w0pack = jnp.zeros((k0, h_pad), jnp.float32)

    row = 0          # row cursor in the original block-diagonal w0
    g = 0            # sparse-feature slot in the packed buffer
    for j, tbl in enumerate(params["user_emb"]):
        folded = jnp.dot(tbl, w0[row:row + e_u[j], :], precision=hp)
        w0pack = w0pack.at[g * v_pad:g * v_pad + tbl.shape[0], :fused[1]].set(folded)
        row += e_u[j]
        g += 1
    d0 = n_sp * v_pad
    if n_ud > 0:
        w0pack = w0pack.at[d0:d0 + n_ud, :fused[1]].set(w0[row:row + n_ud, :])
    row += n_ud
    for j, tbl in enumerate(params["item_emb"]):
        folded = jnp.dot(tbl, w0[row:row + e_i[j], :], precision=hp)
        w0pack = w0pack.at[g * v_pad:g * v_pad + tbl.shape[0], :fused[1]].set(folded)
        row += e_i[j]
        g += 1
    if n_id > 0:
        w0pack = w0pack.at[d0 + n_ud:d0 + n_ud + n_id, :fused[1]].set(
            w0[row:row + n_id, :])
    row += n_id
    # layer-0 bias folded in via the always-1.0 input column
    b0 = jnp.zeros((h_pad,), jnp.float32)
    b0 = b0.at[:du[1]].set(b_u0.reshape(-1))
    b0 = b0.at[du[1]:fused[1]].set(b_i0.reshape(-1))
    w0pack = w0pack.at[d0 + n_ud + n_id, :].set(b0)

    # ---- layers 1..L-1: block-diagonal fused weights in one buffer ------
    lm1 = max(L - 1, 1)
    wpack = jnp.zeros((lm1, h_pad, h_pad), jnp.float32)
    bpack = jnp.zeros((lm1, 1, h_pad), jnp.float32)
    for l in range(1, L):
        w_f = _block_diag(user_dnn[l][0], item_dnn[l][0])
        wpack = wpack.at[l - 1, :fused[l], :fused[l + 1]].set(w_f)
        bpack = bpack.at[l - 1, :, :du[l + 1]].set(user_dnn[l][1].reshape(1, -1))
        bpack = bpack.at[l - 1, :, du[l + 1]:fused[l + 1]].set(
            item_dnn[l][1].reshape(1, -1))

    buffers = {
        "w0pack": w0pack.astype(compute_dtype),
        "wpack": wpack.astype(compute_dtype),
        "bpack": bpack,                               # hidden biases stay f32
    }
    meta = {
        "L": L, "h_pad": h_pad, "v_pad": v_pad, "k0": k0,
        "n_us": n_us, "n_ud": n_ud, "n_is": n_is, "n_id": n_id,
        "n_sp": n_sp, "emb_u": du[L], "emb_i": di[L],
    }
    return buffers, meta


# ----------------------------------------------------------------------------
# Pallas kernel
# ----------------------------------------------------------------------------
def _make_dssm_kernel(meta, tile_b, compute_dtype):
    L = meta["L"]
    v_pad = meta["v_pad"]
    n_sp = meta["n_sp"]
    emb_u, emb_i = meta["emb_u"], meta["emb_i"]

    def kernel(idx_ref, dense_ref, w0_ref, wpack_ref, bpack_ref, out_ref):
        # ---- layer 0: ONE long-K MXU pass -------------------------------
        # lane layout: [one_hot(feat 0) | ... | one_hot(feat n_sp-1) |
        #               user_dense, item_dense, 1.0 (bias), zero pad]
        idx = idx_ref[...]                                    # [tile_b, n_sp] i32
        iota = lax.broadcasted_iota(jnp.int32, (tile_b, v_pad), 1)
        pieces = [(iota == idx[:, j:j + 1]).astype(compute_dtype)
                  for j in range(n_sp)]
        pieces.append(dense_ref[...].astype(compute_dtype))   # [tile_b, 128]
        x0 = jnp.concatenate(pieces, axis=1)                  # [tile_b, k0]
        h = jnp.dot(x0, w0_ref[...], preferred_element_type=jnp.float32)
        if L > 1:
            h = jnp.maximum(h, 0.0)                           # ReLU (hidden)

        # ---- fused block-diagonal hidden layers (both towers / matmul) --
        for l in range(L - 1):
            h = jnp.dot(h.astype(compute_dtype), wpack_ref[l],
                        preferred_element_type=jnp.float32) + bpack_ref[l]
            if l < L - 2:
                h = jnp.maximum(h, 0.0)

        # ---- cosine score: transpose only the live emb columns ----------
        ht = jnp.transpose(h[:, :emb_u + emb_i])              # [emb_u+emb_i, tile_b]
        u_t = ht[:emb_u, :]
        i_t = ht[emb_u:emb_u + emb_i, :]
        dot_ui = jnp.sum(u_t * i_t, axis=0, keepdims=True)    # [1, tile_b]
        u_sq = jnp.sum(u_t * u_t, axis=0, keepdims=True)
        i_sq = jnp.sum(i_t * i_t, axis=0, keepdims=True)
        score = dot_ui * lax.rsqrt(u_sq * i_sq + 1e-16)       # EUP rsqrt, no div
        out_ref[...] = jnp.clip(score, -1.0, 1.0).reshape(1, 1, tile_b)

    return kernel


# ----------------------------------------------------------------------------
# Forward pass (everything runs inside one pallas_call)
# ----------------------------------------------------------------------------
def dssm_forward_pallas(params, x, config, user_feature_columns,
                        item_feature_columns, *, tile_b=None,
                        compute_dtype=jnp.float32):
    del config  # dropout / use_bn are inference no-ops; dims come from params
    buffers, meta = _pack_fused_weights(params, user_feature_columns,
                                        item_feature_columns, compute_dtype)
    w0pack, wpack, bpack = buffers["w0pack"], buffers["wpack"], buffers["bpack"]
    n_us, n_ud = meta["n_us"], meta["n_ud"]
    n_is, n_id = meta["n_is"], meta["n_id"]
    n_sp = meta["n_sp"]

    B = x.shape[0]
    if tile_b is None:
        # Big tiles amortize the ~0.35us/step pipeline overhead; keep grid>=2
        # when the batch allows it so both v7x TensorCores get work.
        tile_b = max(128, min(1024, _round_up(B, 256) // 2))
    b_pad = _round_up(B, tile_b)
    grid_b = b_pad // tile_b

    xf = x.astype(jnp.float32)
    if b_pad != B:
        xf = jnp.pad(xf, ((0, b_pad - B), (0, 0)))

    # Split in the wrapper: clean int32 id block + lane-padded f32 dense block
    # with an always-1.0 bias column (removes in-kernel casts / narrow slices).
    # NOTE: ids travel as float32 in x (matches torch) -> exact for ids < 2^24.
    sp_idx = jnp.concatenate(
        [xf[:, :n_us], xf[:, n_us + n_ud:n_us + n_ud + n_is]], axis=1
    ).astype(jnp.int32)                                       # [b_pad, n_sp]
    dense_blk = jnp.zeros((b_pad, 128), jnp.float32)
    if n_ud > 0:
        dense_blk = dense_blk.at[:, :n_ud].set(xf[:, n_us:n_us + n_ud])
    if n_id > 0:
        dense_blk = dense_blk.at[:, n_ud:n_ud + n_id].set(
            xf[:, n_us + n_ud + n_is:n_us + n_ud + n_is + n_id])
    dense_blk = dense_blk.at[:, n_ud + n_id].set(1.0)          # bias column

    k0, h_pad = w0pack.shape
    lm1 = wpack.shape[0]
    kernel = _make_dssm_kernel(meta, tile_b, compute_dtype)

    out = pl.pallas_call(
        kernel,
        out_shape=jax.ShapeDtypeStruct((grid_b, 1, tile_b), jnp.float32),
        grid=(grid_b,),
        in_specs=[
            # activations: tiled over batch -> pipelined HBM->VMEM DMA
            pl.BlockSpec((tile_b, n_sp), lambda b: (b, 0)),
            pl.BlockSpec((tile_b, 128), lambda b: (b, 0)),
            # packed weights: constant index_map -> VMEM-resident across steps
            pl.BlockSpec((k0, h_pad), lambda b: (0, 0)),
            pl.BlockSpec((lm1, h_pad, h_pad), lambda b: (0, 0, 0)),
            pl.BlockSpec((lm1, 1, h_pad), lambda b: (0, 0, 0)),
        ],
        out_specs=pl.BlockSpec((1, 1, tile_b), lambda b: (b, 0, 0)),
        compiler_params=pltpu.CompilerParams(
            # batch tiles are independent -> megacore sharding on v7x
            dimension_semantics=("parallel",),
        ),
    )(sp_idx, dense_blk, w0pack, wpack, bpack)

    return out.reshape(b_pad)[:B]


# ----------------------------------------------------------------------------
# Pure-JAX reference (mirrors the torch module, full-precision matmuls)
# ----------------------------------------------------------------------------
def dssm_reference(params, x, user_feature_columns, item_feature_columns):
    user_sparse, user_dense = user_feature_columns
    item_sparse, item_dense = item_feature_columns
    n_us, n_ud = len(user_sparse), len(user_dense)
    n_is = len(item_sparse)
    hp = jax.lax.Precision.HIGHEST

    usi = x[:, :n_us].astype(jnp.int32)
    udi = x[:, n_us:n_us + n_ud].astype(jnp.float32)
    isi = x[:, n_us + n_ud:n_us + n_ud + n_is].astype(jnp.int32)
    idi = x[:, n_us + n_ud + n_is:].astype(jnp.float32)

    use = jnp.concatenate([jnp.take(t, usi[:, i], axis=0)
                           for i, t in enumerate(params["user_emb"])], axis=1)
    u = jnp.concatenate([use, udi], axis=1)
    ise = jnp.concatenate([jnp.take(t, isi[:, i], axis=0)
                           for i, t in enumerate(params["item_emb"])], axis=1)
    it = jnp.concatenate([ise, idi], axis=1)

    def mlp(h, layers):
        for l, (w, b) in enumerate(layers):
            h = jnp.dot(h, w, precision=hp) + b
            if l < len(layers) - 1:
                h = jnp.maximum(h, 0.0)
        return h

    ue = mlp(u, params["user_dnn"])
    ie = mlp(it, params["item_dnn"])
    un = jnp.linalg.norm(ue, axis=-1)
    inn = jnp.linalg.norm(ie, axis=-1)
    score = jnp.sum(ue * ie, axis=-1) / (un * inn + 1e-8)
    return jnp.clip(score, -1.0, 1.0)


# ----------------------------------------------------------------------------
if __name__ == "__main__":
    config = {
        "Model": {
            "user_dnn_hidden_units": [64, 32],
            "user_dnn_embedding": 32,
            "item_dnn_hidden_units": [64, 32],
            "item_dnn_embedding": 32,
            "dropout": 0.0,      # inference: no-op
            "use_bn": False,
        }
    }
    user_sparse = [{"feat_onehot_dim": 50, "embed_dim": 8} for _ in range(3)]
    user_dense = ["u_dense_0", "u_dense_1"]
    item_sparse = [{"feat_onehot_dim": 40, "embed_dim": 8} for _ in range(2)]
    item_dense = ["i_dense_0", "i_dense_1", "i_dense_2"]
    user_cols = (user_sparse, user_dense)
    item_cols = (item_sparse, item_dense)

    key = jax.random.PRNGKey(0)
    key, kparam, ksp_u, kd_u, ksp_i, kd_i = jax.random.split(key, 6)
    params = build_dssm_params(kparam, config, user_cols, item_cols)

    B = 512  # auto tile_b = 256 -> 2 grid steps (both v7x cores get a tile)
    u_sp = jax.random.randint(ksp_u, (B, len(user_sparse)), 0, 50).astype(jnp.float32)
    u_de = jax.random.normal(kd_u, (B, len(user_dense)), jnp.float32)
    i_sp = jax.random.randint(ksp_i, (B, len(item_sparse)), 0, 40).astype(jnp.float32)
    i_de = jax.random.normal(kd_i, (B, len(item_dense)), jnp.float32)
    x = jnp.concatenate([u_sp, u_de, i_sp, i_de], axis=1)     # [512, 10]

    ref = dssm_reference(params, x, user_cols, item_cols)

    # f32 compute path (generation-safe default; the right choice on v5e)
    fwd_f32 = jax.jit(functools.partial(
        dssm_forward_pallas, config=config, user_feature_columns=user_cols,
        item_feature_columns=item_cols, compute_dtype=jnp.float32))
    out32 = jax.block_until_ready(fwd_f32(params, x))
    assert out32.shape == (B,)
    assert jnp.allclose(out32, ref, atol=2e-2, rtol=2e-2), float(
        jnp.max(jnp.abs(out32 - ref)))
    assert bool(jnp.all(out32 <= 1.0)) and bool(jnp.all(out32 >= -1.0))

    # ragged batch -> exercises batch padding / tile auto-selection
    Br = 200
    refr = dssm_reference(params, x[:Br], user_cols, item_cols)
    outr = jax.block_until_ready(fwd_f32(params, x[:Br]))
    assert outr.shape == (Br,)
    assert jnp.allclose(outr, refr, atol=2e-2, rtol=2e-2), float(
        jnp.max(jnp.abs(outr - refr)))

    # bf16 compute path (v6e/v7x MXU rate; f32 accumulation, f32 elementwise)
    # NOTE: dense features are rounded to bf16 before layer 0 -> looser tol.
    fwd_bf16 = jax.jit(functools.partial(
        dssm_forward_pallas, config=config, user_feature_columns=user_cols,
        item_feature_columns=item_cols, compute_dtype=jnp.bfloat16))
    out16 = jax.block_until_ready(fwd_bf16(params, x))
    assert out16.shape == (B,)
    assert jnp.allclose(out16, ref, atol=8e-2, rtol=8e-2), float(
        jnp.max(jnp.abs(out16 - ref)))
    assert bool(jnp.all(out16 <= 1.0)) and bool(jnp.all(out16 >= -1.0))

    print("KERNEL_OK")
</pallas_src>

<mosaic_0001>
module attributes {stable_mosaic.version = 11 : i64} {
  func.func @kernel(%arg0: i32, %arg1: memref<256x5xi32, #tpu.memory_space<vmem>>, %arg2: memref<256x128xf32, #tpu.memory_space<vmem>>, %arg3: memref<768x128xf32, #tpu.memory_space<vmem>>, %arg4: memref<2x128x128xf32, #tpu.memory_space<vmem>>, %arg5: memref<2x1x128xf32, #tpu.memory_space<vmem>>, %arg6: memref<1x1x256xf32, #tpu.memory_space<vmem>>) attributes {dimension_semantics = [#tpu.dimension_semantics<parallel>], iteration_bounds = array<i64: 2>, scalar_prefetch = 0 : i64, scratch_operands = 0 : i64, tpu.core_type = #tpu.core_type<tc>, window_params = [{transform_indices = @transform_0, window_bounds = array<i64: 256, 5>}, {transform_indices = @transform_1, window_bounds = array<i64: 256, 128>}, {pipeline_mode = #tpu.pipeline_mode<synchronous>, transform_indices = @transform_2, window_bounds = array<i64: 768, 128>}, {pipeline_mode = #tpu.pipeline_mode<synchronous>, transform_indices = @transform_3, window_bounds = array<i64: 2, 128, 128>}, {pipeline_mode = #tpu.pipeline_mode<synchronous>, transform_indices = @transform_4, window_bounds = array<i64: 2, 1, 128>}, {transform_indices = @transform_5, window_bounds = array<i64: 1, 1, 256>}]} {
    %c0 = arith.constant 0 : index
    %c0_0 = arith.constant 0 : index
    %0 = vector.load %arg1[%c0, %c0_0] : memref<256x5xi32, #tpu.memory_space<vmem>>, vector<256x5xi32>
    %1 = tpu.iota {dimensions = array<i32: 1>} : vector<256x128xi32>
    %2 = vector.extract_strided_slice %0 {offsets = [0, 0], sizes = [256, 1], strides = [1, 1]} : vector<256x5xi32> to vector<256x1xi32>
    %3 = vector.broadcast %2 : vector<256x1xi32> to vector<256x128xi32>
    %4 = arith.cmpi eq, %1, %3 : vector<256x128xi32>
    %5 = arith.extui %4 : vector<256x128xi1> to vector<256x128xi32>
    %6 = arith.sitofp %5 : vector<256x128xi32> to vector<256x128xf32>
    %7 = vector.extract_strided_slice %0 {offsets = [0, 1], sizes = [256, 1], strides = [1, 1]} : vector<256x5xi32> to vector<256x1xi32>
    %8 = vector.broadcast %7 : vector<256x1xi32> to vector<256x128xi32>
    %9 = arith.cmpi eq, %1, %8 : vector<256x128xi32>
    %10 = arith.extui %9 : vector<256x128xi1> to vector<256x128xi32>
    %11 = arith.sitofp %10 : vector<256x128xi32> to vector<256x128xf32>
    %12 = vector.extract_strided_slice %0 {offsets = [0, 2], sizes = [256, 1], strides = [1, 1]} : vector<256x5xi32> to vector<256x1xi32>
    %13 = vector.broadcast %12 : vector<256x1xi32> to vector<256x128xi32>
    %14 = arith.cmpi eq, %1, %13 : vector<256x128xi32>
    %15 = arith.extui %14 : vector<256x128xi1> to vector<256x128xi32>
    %16 = arith.sitofp %15 : vector<256x128xi32> to vector<256x128xf32>
    %17 = vector.extract_strided_slice %0 {offsets = [0, 3], sizes = [256, 1], strides = [1, 1]} : vector<256x5xi32> to vector<256x1xi32>
    %18 = vector.broadcast %17 : vector<256x1xi32> to vector<256x128xi32>
    %19 = arith.cmpi eq, %1, %18 : vector<256x128xi32>
    %20 = arith.extui %19 : vector<256x128xi1> to vector<256x128xi32>
    %21 = arith.sitofp %20 : vector<256x128xi32> to vector<256x128xf32>
    %22 = vector.extract_strided_slice %0 {offsets = [0, 4], sizes = [256, 1], strides = [1, 1]} : vector<256x5xi32> to vector<256x1xi32>
    %23 = vector.broadcast %22 : vector<256x1xi32> to vector<256x128xi32>
    %24 = arith.cmpi eq, %1, %23 : vector<256x128xi32>
    %25 = arith.extui %24 : vector<256x128xi1> to vector<256x128xi32>
    %26 = arith.sitofp %25 : vector<256x128xi32> to vector<256x128xf32>
    %c0_1 = arith.constant 0 : index
    %c0_2 = arith.constant 0 : index
    %27 = vector.load %arg2[%c0_1, %c0_2] : memref<256x128xf32, #tpu.memory_space<vmem>>, vector<256x128xf32>
    %28 = tpu.concatenate %6, %11, %16, %21, %26, %27 in 1 : vector<256x128xf32>, vector<256x128xf32>, vector<256x128xf32>, vector<256x128xf32>, vector<256x128xf32>, vector<256x128xf32> -> vector<256x768xf32>
    %c0_3 = arith.constant 0 : index
    %c0_4 = arith.constant 0 : index
    %29 = vector.load %arg3[%c0_3, %c0_4] : memref<768x128xf32, #tpu.memory_space<vmem>>, vector<768x128xf32>
    %cst = arith.constant dense<0.000000e+00> : vector<256x128xf32>
    %30 = tpu.matmul %28, %29, %cst {dimension_numbers = #tpu.dot_dimension_numbers<[1], [0], [0], [1], [0, 0, 1, 1], [], []>} : vector<256x768xf32>, vector<768x128xf32>, vector<256x128xf32> -> vector<256x128xf32>
    %cst_5 = arith.constant 0.000000e+00 : f32
    %31 = vector.broadcast %cst_5 : f32 to vector<256x128xf32>
    %32 = arith.maximumf %30, %31 : vector<256x128xf32>
    %c0_6 = arith.constant 0 : index
    %c0_7 = arith.constant 0 : index
    %c0_8 = arith.constant 0 : index
    %33 = vector.load %arg4[%c0_6, %c0_7, %c0_8] : memref<2x128x128xf32, #tpu.memory_space<vmem>>, vector<1x128x128xf32>
    %34 = vector.shape_cast %33 : vector<1x128x128xf32> to vector<128x128xf32>
    %cst_9 = arith.constant dense<0.000000e+00> : vector<256x128xf32>
    %35 = tpu.matmul %32, %34, %cst_9 {dimension_numbers = #tpu.dot_dimension_numbers<[1], [0], [0], [1], [0, 0, 1, 1], [], []>} : vector<256x128xf32>, vector<128x128xf32>, vector<256x128xf32> -> vector<256x128xf32>
    %c0_10 = arith.constant 0 : index
    %c0_11 = arith.constant 0 : index
    %c0_12 = arith.constant 0 : index
    %36 = vector.load %arg5[%c0_10, %c0_11, %c0_12] : memref<2x1x128xf32, #tpu.memory_space<vmem>>, vector<1x1x128xf32>
    %37 = vector.shape_cast %36 : vector<1x1x128xf32> to vector<1x128xf32>
    %38 = vector.broadcast %37 : vector<1x128xf32> to vector<256x128xf32>
    %39 = arith.addf %35, %38 : vector<256x128xf32>
    %cst_13 = arith.constant 0.000000e+00 : f32
    %40 = vector.broadcast %cst_13 : f32 to vector<256x128xf32>
    %41 = arith.maximumf %39, %40 : vector<256x128xf32>
    %c1 = arith.constant 1 : index
    %c0_14 = arith.constant 0 : index
    %c0_15 = arith.constant 0 : index
    %42 = vector.load %arg4[%c1, %c0_14, %c0_15] : memref<2x128x128xf32, #tpu.memory_space<vmem>>, vector<1x128x128xf32>
    %43 = vector.shape_cast %42 : vector<1x128x128xf32> to vector<128x128xf32>
    %cst_16 = arith.constant dense<0.000000e+00> : vector<256x128xf32>
    %44 = tpu.matmul %41, %43, %cst_16 {dimension_numbers = #tpu.dot_dimension_numbers<[1], [0], [0], [1], [0, 0, 1, 1], [], []>} : vector<256x128xf32>, vector<128x128xf32>, vector<256x128xf32> -> vector<256x128xf32>
    %c1_17 = arith.constant 1 : index
    %c0_18 = arith.constant 0 : index
    %c0_19 = arith.constant 0 : index
    %45 = vector.load %arg5[%c1_17, %c0_18, %c0_19] : memref<2x1x128xf32, #tpu.memory_space<vmem>>, vector<1x1x128xf32>
    %46 = vector.shape_cast %45 : vector<1x1x128xf32> to vector<1x128xf32>
    %47 = vector.broadcast %46 : vector<1x128xf32> to vector<256x128xf32>
    %48 = arith.addf %44, %47 : vector<256x128xf32>
    %49 = vector.extract_strided_slice %48 {offsets = [0, 0], sizes = [256, 64], strides = [1, 1]} : vector<256x128xf32> to vector<256x64xf32>
    %50 = tpu.transpose %49, [1, 0] : vector<256x64xf32> -> vector<64x256xf32>
    %51 = vector.extract_strided_slice %50 {offsets = [0, 0], sizes = [32, 256], strides = [1, 1]} : vector<64x256xf32> to vector<32x256xf32>
    %52 = vector.extract_strided_slice %50 {offsets = [32, 0], sizes = [32, 256], strides = [1, 1]} : vector<64x256xf32> to vector<32x256xf32>
    %53 = arith.mulf %51, %52 : vector<32x256xf32>
    %cst_20 = arith.constant dense<0.000000e+00> : vector<256xf32>
    %54 = vector.multi_reduction <add>, %53, %cst_20 [0] : vector<32x256xf32> to vector<256xf32>
    %55 = vector.shape_cast %54 : vector<256xf32> to vector<1x256xf32>
    %56 = arith.mulf %51, %51 : vector<32x256xf32>
    %cst_21 = arith.constant dense<0.000000e+00> : vector<256xf32>
    %57 = vector.multi_reduction <add>, %56, %cst_21 [0] : vector<32x256xf32> to vector<256xf32>
    %58 = vector.shape_cast %57 : vector<256xf32> to vector<1x256xf32>
    %59 = arith.mulf %52, %52 : vector<32x256xf32>
    %cst_22 = arith.constant dense<0.000000e+00> : vector<256xf32>
    %60 = vector.multi_reduction <add>, %59, %cst_22 [0] : vector<32x256xf32> to vector<256xf32>
    %61 = vector.shape_cast %60 : vector<256xf32> to vector<1x256xf32>
    %62 = arith.mulf %58, %61 : vector<1x256xf32>
    %cst_23 = arith.constant 1.000000e-16 : f32
    %63 = vector.broadcast %cst_23 : f32 to vector<1x256xf32>
    %64 = arith.addf %62, %63 : vector<1x256xf32>
    %65 = math.rsqrt %64 : vector<1x256xf32>
    %66 = arith.mulf %55, %65 : vector<1x256xf32>
    %cst_24 = arith.constant -1.000000e+00 : f32
    %cst_25 = arith.constant 1.000000e+00 : f32
    %67 = vector.broadcast %cst_24 : f32 to vector<1x256xf32>
    %68 = arith.maximumf %67, %66 : vector<1x256xf32>
    %69 = vector.broadcast %cst_25 : f32 to vector<1x256xf32>
    %70 = arith.minimumf %69, %68 : vector<1x256xf32>
    %71 = vector.shape_cast %70 : vector<1x256xf32> to vector<1x1x256xf32>
    %c0_26 = arith.constant 0 : index
    %c0_27 = arith.constant 0 : index
    %c0_28 = arith.constant 0 : index
    %72 = vector.load %arg6[%c0_26, %c0_27, %c0_28] : memref<1x1x256xf32, #tpu.memory_space<vmem>>, vector<1x1x256xf32>
    tpu.vector_store %arg6[%c0_26, %c0_27, %c0_28], %71 {strides = array<i32>} : memref<1x1x256xf32, #tpu.memory_space<vmem>>, vector<1x1x256xf32>,
    return
  }
  func.func @transform_0(%arg0: i32) -> (i32, i32) {
    %c0_i32 = arith.constant 0 : i32
    %c0_i32_0 = arith.constant 0 : i32
    return %arg0, %c0_i32 : i32, i32
  }
  func.func @transform_1(%arg0: i32) -> (i32, i32) {
    %c0_i32 = arith.constant 0 : i32
    %c0_i32_0 = arith.constant 0 : i32
    return %arg0, %c0_i32 : i32, i32
  }
  func.func @transform_2(%arg0: i32) -> (i32, i32) {
    %c0_i32 = arith.constant 0 : i32
    %c0_i32_0 = arith.constant 0 : i32
    %c0_i32_1 = arith.constant 0 : i32
    return %c0_i32, %c0_i32_0 : i32, i32
  }
  func.func @transform_3(%arg0: i32) -> (i32, i32, i32) {
    %c0_i32 = arith.constant 0 : i32
    %c0_i32_0 = arith.constant 0 : i32
    %c0_i32_1 = arith.constant 0 : i32
    %c0_i32_2 = arith.constant 0 : i32
    return %c0_i32, %c0_i32_0, %c0_i32_1 : i32, i32, i32
  }
  func.func @transform_4(%arg0: i32) -> (i32, i32, i32) {
    %c0_i32 = arith.constant 0 : i32
    %c0_i32_0 = arith.constant 0 : i32
    %c0_i32_1 = arith.constant 0 : i32
    %c0_i32_2 = arith.constant 0 : i32
    return %c0_i32, %c0_i32_0, %c0_i32_1 : i32, i32, i32
  }
  func.func @transform_5(%arg0: i32) -> (i32, i32, i32) {
    %c0_i32 = arith.constant 0 : i32
    %c0_i32_0 = arith.constant 0 : i32
    %c0_i32_1 = arith.constant 0 : i32
    return %arg0, %c0_i32, %c0_i32_0 : i32, i32, i32
  }
}

</mosaic_0001>

<bundles_post_ra>
// kernel: dssm_forward_pallas.1
= control target key start
LH: loop header
LB: loop body
LE: loop exit
PB: predicated region body
PF: predicated region fallthrough
CT: control target
= control target key end

     0   :  { %10 = vsyncpa [#allocation3], 0  ;;  %s5214_s0 = inlined_call_operand.vmem [shape: s32[512,5], index: 0, kind: input, shape index: {}]   ;;  %s5215_s1 = inlined_call_operand.vmem [shape: f32[512,128], index: 1, kind: input, shape index: {}]   ;;  %s5216_s2 = inlined_call_operand.vmem [shape: f32[768,128], index: 2, kind: input, shape index: {}]   ;;  %s5217_s3 = inlined_call_operand.vmem [shape: f32[2,128,128], index: 3, kind: input, shape index: {}]   ;;  %s5218_s4 = inlined_call_operand.vmem [shape: f32[2,1,128], index: 4, kind: input, shape index: {}]   ;;  %s5219_s5 = inlined_call_operand.hbm [shape: f32[2,1,256], index: 5, kind: output, shape index: {}]  }
   0x1   :  { %12 = vsyncpa [#allocation3 + $0x1], 0  ;;  %s3726_s18 = smov 0   ;;  %s3728_s19 = smov 0  }
   0x2   :  { %s3730_s20 = smov 0   ;;  %s3732_s21 = smov 0  }
   0x3 LB: > { %s2868_s22 = sadd.s32 4294967295, %s3685_s21   ;;  %s2869_s23 = sadd.s32 4294967294, %s3685_s21   ;;  %s3685_s21 = sphi %s3732_s21, %s5225_s21   ;;  %s3681_s20 = sphi %s3730_s20, %s5224_s20   ;;  %s3677_s19 = sphi %s3728_s19, %s5223_s19   ;;  %s3673_s18 = sphi %s3726_s18, %s5222_s18  }
   0x4   : > { %s3749_s24 = sadd.s32 1, %s3685_s21   ;;  %s140_s25 = sadd.s32 1, %s3681_s20 }
   0x5   : > { %s137_s26 = ssub.s32 %s3685_s21, %s3749_s24  ;;  %p150_p0 = scmp.ne.s32.totalorder %s3681_s20, %s3677_s19 }
   0x6   : > { %p138_p1 = scmp.eq.s32.totalorder %s137_s26, 0  ;;  %p151_p2 = scmp.eq.s32.totalorder %s2868_s22, 1 }
   0x7   : > { %p156_p3 = scmp.ne.s32.totalorder %s3677_s19, %s3673_s18  ;;  %p157_p4 = scmp.eq.s32.totalorder %s2869_s23, 1 }
   0x8   : > { %s3759_s27 = scalar_select %p138_p1, %s3681_s20, %s140_s25  }
   0x9   : > { %p3761_p5 = por %p151_p2, %p150_p0  ;;  %p3765_p6 = por %p157_p4, %p156_p3 }
   0xa   : > { %p2872_p7 = scmp.ge.s32.totalorder %s3685_s21, 1  ;;  %p202_p8 = scmp.lt.s32.totalorder %s3685_s21, 3 }
   0xc   : > { %p203_p9 = pnand %p2872_p7, %p202_p8 }
   0xd   : > { %s3771_s30 = sshll.u32 (!%p203_p9), %s2868_s22, 5  ;;  %s232_s14 = sand.u32 (!%p203_p9), 1, %s3677_s19  }
   0xe   : > { %206 = sbr.rel (%p203_p9) target bundleno = 1315 (0x523), region = 40  ;;  %p236_p10 = scmp.lt.s32.totalorder (!%p203_p9), %s3771_s30, 63 }
   0xf   : > { %s2873_s15 = sshll.u32 (!%p203_p9), %s232_s14, 1  ;;  %s2796_s26 = scalar_lea.hbm (!%p203_p9), %s5219_s5, %s3771_s30 }
  0x10   : > { %s234_s17 = scalar_lea.vmem (!%p203_p9), [#allocation2], %s2873_s15  ;;  %s2784_s6 = scalar_lea.sflag (!%p203_p9), [#allocation3], %s232_s14 }
  0x11   : > { %s2798_s22 = sshll.u32 (!%p203_p9), %s234_s17, 4  ;;  %s2799_s22 = int_to_ptr.vmem [resolvable:$true] %s2798_s22 }
  0x13   : > { %v1288_v0 = vld [vmem:[%s5216_s2 + $0x78] sm:$0xff]  ;;  %v3687_v1 = vmov 1   ;;  %v3688_v2 = vmov 0.0   ;;  %v1287_v3 = vld [vmem:[%s5216_s2 + $0x70] sm:$0xff]  ;;  %s3783_s10 = scalar_select %p236_p10, %s3771_s30, 63  ;;  %v1286_v4 = vld [vmem:[%s5216_s2 + $0x68] sm:$0xff] }
  0x14   : > { %3530 = vset.pattern.permute.xlu1 %v3687_v1  ;;  %3528 = vset.pattern.permute.xlu0 %v3687_v1  ;;  %v1285_v7 = vld [vmem:[%s5216_s2 + $0x60] sm:$0xff]  ;;  %v1284_v8 = vld [vmem:[%s5216_s2 + $0x58] sm:$0xff]  ;;  %v3689_v9 = vmov 0   ;;  %v1283_v10 = vld [vmem:[%s5216_s2 + $0x50] sm:$0xff] }
  0x15   : > { %1369 = vmatprep.subr.mxu0 %v3688_v2  ;;  %1594 = vmatprep.subr.mxu1 %v3688_v2  ;;  %s2875_s13 = sshll.u32 %s3783_s10, 3  ;;  %v1282_v12 = vld [vmem:[%s5216_s2 + $0x48] sm:$0xff]  ;;  %v1281_v14 = vld [vmem:[%s5216_s2 + $0x40] sm:$0xff]  ;;  %v1280_v15 = vld [vmem:[%s5216_s2 + $0x38] sm:$0xff]  ;;  %s3695_s10 = smov [#allocation2]  }
  0x16   : > { %1370 = vmatpush1.msra.mxu0 %v1288_v0  ;;  %s3795_s16 = scalar_lea.vmem %s5214_s0, %s2875_s13  ;;  %v1279_v17 = vld [vmem:[%s5216_s2 + $0x30] sm:$0xff]  ;;  %v1278_v18 = vld [vmem:[%s5216_s2 + $0x28] sm:$0xff]  ;;  %v1277_v20 = vld [vmem:[%s5216_s2 + $0x20] sm:$0xff]  ;;  %s4543_s7 = scalar_lea.vmem %s5215_s1, %s2875_s13 }
  0x17   : > { %1371 = vmatprep.subr.mxu0 %v3688_v2  ;;  %v3799_v5 = vld [vmem:[%s3795_s16 + $0x8] sm:$0xff]  ;;  %v3802_v6 = vld [vmem:[%s3795_s16] sm:$0xff]  ;;  %v3820_v11 = vld [vmem:[%s3795_s16 + $0x10] sm:$0xff]  ;;  %s3629_s13 = sshll.u32 %s3695_s10, 4  ;;  %s3630_s13 = int_to_ptr.vmem [resolvable:$false] %s3629_s13 }
  0x18   : > { %1372 = vmatpush1.msra.mxu0 %v1287_v3  ;;  %477 = vperm.xlu1 %3530, %v3799_v5   ;;  %v3829_v13 = vld [vmem:[%s3795_s16 + $0x18] sm:$0xff]  ;;  %v3842_v16 = vld [vmem:[%s3795_s16 + $0x20] sm:$0xff]  ;;  %v3855_v19 = vld [vmem:[%s3795_s16 + $0x28] sm:$0xff]  ;;  %s3631_s8 = scalar_lea.vmem %s3630_s13, 64  ;;  %p3632_p0 = scmp.lt.s32.totalorder %s2799_s22, %s3630_s13 }
  0x19   : > { %1373 = vmatprep.subr.mxu0 %v3688_v2  ;;  %474 = vperm.xlu0 %3528, %v3802_v6   ;;  %v1276_v21 = vld [vmem:[%s5216_s2 + $0x18] sm:$0xff]  ;;  %v3868_v22 = vld [vmem:[%s3795_s16 + $0x30] sm:$0xff]  ;;  %v1274_v24 = vld [vmem:[%s5216_s2 + $0x8] sm:$0xff] }
  0x1a   : > { %1374 = vmatpush1.msra.mxu0 %v1286_v4  ;;  %v1275_v23 = vld [vmem:[%s5216_s2 + $0x10] sm:$0xff]  ;;  %v3881_v25 = vld [vmem:[%s3795_s16 + $0x38] sm:$0xff]  ;;  %v1273_v26 = vld [vmem:[%s5216_s2] sm:$0xff] }
  0x1b   : > { %1375 = vmatprep.subr.mxu0 %v3688_v2  ;;  %v1304_v27 = vld [vmem:[%s5216_s2 + $0xf8] sm:$0xff]  ;;  %v3894_v28 = vld [vmem:[%s3795_s16 + $0x40] sm:$0xff]  ;;  %v1303_v29 = vld [vmem:[%s5216_s2 + $0xf0] sm:$0xff] }
  0x1c   : > { %1376 = vmatpush1.msra.mxu0 %v1285_v7  ;;  %3531 = vset.pattern.permute.xlu1 %v3689_v9  ;;  %v1302_v30 = vld [vmem:[%s5216_s2 + $0xe8] sm:$0xff]  ;;  %v1301_v32 = vld [vmem:[%s5216_s2 + $0xe0] sm:$0xff]  ;;  %v1300_v33 = vld [vmem:[%s5216_s2 + $0xd8] sm:$0xff] }
  0x1d   : > { %1377 = vmatprep.subr.mxu0 %v3688_v2  ;;  %3529 = vset.pattern.permute.xlu0 %v3689_v9  ;;  %v3907_v31 = vld [vmem:[%s3795_s16 + $0x48] sm:$0xff]  ;;  %v3920_v34 = vld [vmem:[%s3795_s16 + $0x50] sm:$0xff]  ;;  %v3933_v37 = vld [vmem:[%s3795_s16 + $0x58] sm:$0xff] }
  0x1e   : > { %285 = vperm.xlu1 %3531, %v3799_v5   ;;  %282 = vperm.xlu0 %3529, %v3802_v6   ;;  %v1299_v35 = vld [vmem:[%s5216_s2 + $0xd0] sm:$0xff]  ;;  %v1298_v36 = vld [vmem:[%s5216_s2 + $0xc8] sm:$0xff]  ;;  %v1297_v38 = vld [vmem:[%s5216_s2 + $0xc0] sm:$0xff] }
  0x1f   : > { %1378 = vmatpush1.msra.mxu0 %v1284_v8  ;;  %v1296_v39 = vld [vmem:[%s5216_s2 + $0xb8] sm:$0xff]  ;;  %v3946_v40 = vld [vmem:[%s3795_s16 + $0x60] sm:$0xff]  ;;  %v1295_v41 = vld [vmem:[%s5216_s2 + $0xb0] sm:$0xff] }
  0x20   : > { %1379 = vmatprep.subr.mxu0 %v3688_v2  ;;  %v1294_v42 = vld [vmem:[%s5216_s2 + $0xa8] sm:$0xff]  ;;  %v1293_v44 = vld [vmem:[%s5216_s2 + $0xa0] sm:$0xff]  ;;  %v1292_v45 = vld [vmem:[%s5216_s2 + $0x98] sm:$0xff] }
  0x21   : > { %1380 = vmatpush1.msra.mxu0 %v1283_v10  ;;  %v3959_v43 = vld [vmem:[%s3795_s16 + $0x68] sm:$0xff]  ;;  %v3972_v46 = vld [vmem:[%s3795_s16 + $0x70] sm:$0xff]  ;;  %v3985_v49 = vld [vmem:[%s3795_s16 + $0x78] sm:$0xff] }
  0x22   : > { %3532 = vset.pattern.permute.xlu1 %v3687_v1  ;;  %288 = vperm.xlu0 %3529, %v3820_v11   ;;  %v1291_v47 = vld [vmem:[%s5216_s2 + $0x90] sm:$0xff]  ;;  %v1290_v48 = vld [vmem:[%s5216_s2 + $0x88] sm:$0xff]  ;;  %v1289_v50 = vld [vmem:[%s5216_s2 + $0x80] sm:$0xff] }
  0x23   : > { %480 = vperm.xlu1 %3532, %v3820_v11   ;;  %1381 = vmatprep.subr.mxu0 %v3688_v2  ;;  %v3995_v51 = vld [vmem:[%s3795_s16 + $0x80] sm:$0xff]  ;;  %v4001_v52 = vld [vmem:[%s3795_s16 + $0x88] sm:$0xff]  ;;  %v4006_v53 = vld [vmem:[%s3795_s16 + $0x90] sm:$0xff] }
  0x24   : > { %1382 = vmatpush1.msra.mxu0 %v1282_v12  ;;  %v4011_v54 = vld [vmem:[%s3795_s16 + $0x98] sm:$0xff]  ;;  %v4016_v55 = vld [vmem:[%s3795_s16 + $0xa0] sm:$0xff]  ;;  %v4024_v57 = vld [vmem:[%s3795_s16 + $0xa8] sm:$0xff] }
  0x25   : > { %1383 = vmatprep.subr.mxu0 %v3688_v2  ;;  %v1320_v56 = vld [vmem:[%s5216_s2 + $0x178] sm:$0xff]  ;;  %v1319_v58 = vld [vmem:[%s5216_s2 + $0x170] sm:$0xff]  ;;  %v1318_v59 = vld [vmem:[%s5216_s2 + $0x168] sm:$0xff] }
  0x26   : > { %291 = vperm.xlu0 %3529, %v3829_v13   ;;  %1384 = vmatpush1.msra.mxu0 %v1281_v14  ;;  %v4037_v60 = vld [vmem:[%s3795_s16 + $0xb0] sm:$0xff]  ;;  %v1317_v61 = vld [vmem:[%s5216_s2 + $0x160] sm:$0xff]  ;;  %v1316_v62 = vld [vmem:[%s5216_s2 + $0x158] sm:$0xff] }
  0x27   : > { %483 = vperm.xlu1 %3532, %v3829_v13   ;;  %1385 = vmatprep.subr.mxu0 %v3688_v2  ;;  %v4050_v63 = vld [vmem:[%s3795_s16 + $0xb8] sm:$0xff]  ;;  %v1315_v0 = vld [vmem:[%s5216_s2 + $0x150] sm:$0xff]  ;;  %v1314_v1 = vld [vmem:[%s5216_s2 + $0x148] sm:$0xff] }
  0x28   : > { %1386 = vmatpush1.msra.mxu0 %v1280_v15  ;;  %1595 = vmatpush1.msra.mxu1 %v1320_v56  ;;  %v4062_v3 = vld [vmem:[%s3795_s16 + $0xc0] sm:$0xff]  ;;  %v1312_v7 = vld [vmem:[%s5216_s2 + $0x138] sm:$0xff]  ;;  %v4075_v8 = vld [vmem:[%s3795_s16 + $0xc8] sm:$0xff] }
  0x29   : > { %1387 = vmatprep.subr.mxu0 %v3688_v2  ;;  %1596 = vmatprep.subr.mxu1 %v3688_v2  ;;  %v1313_v4 = vld [vmem:[%s5216_s2 + $0x140] sm:$0xff]  ;;  %v1311_v9 = vld [vmem:[%s5216_s2 + $0x130] sm:$0xff]  ;;  %v1310_v10 = vld [vmem:[%s5216_s2 + $0x128] sm:$0xff] }
  0x2a   : > { %294 = vperm.xlu0 %3529, %v3842_v16   ;;  %1388 = vmatpush1.msra.mxu0 %v1279_v17  ;;  %v4088_v12 = vld [vmem:[%s3795_s16 + $0xd0] sm:$0xff]  ;;  %v1309_v14 = vld [vmem:[%s5216_s2 + $0x120] sm:$0xff]  ;;  %v1308_v15 = vld [vmem:[%s5216_s2 + $0x118] sm:$0xff] }
  0x2b   : > { %486 = vperm.xlu1 %3532, %v3842_v16   ;;  %1389 = vmatprep.subr.mxu0 %v3688_v2  ;;  %v4101_v17 = vld [vmem:[%s3795_s16 + $0xd8] sm:$0xff] }
  0x2c   : > { %1390 = vmatpush1.msra.mxu0 %v1278_v18  ;;  %1597 = vmatpush1.msra.mxu1 %v1319_v58  ;;  %v1307_v18 = vld [vmem:[%s5216_s2 + $0x110] sm:$0xff]  ;;  %v1352_v56 = vld [vmem:[%s5216_s2 + $0x278] sm:$0xff]  ;;  %v3692_v58 = vmov 3  }
  0x2d   : > { %1391 = vmatprep.subr.mxu0 %v3688_v2  ;;  %1598 = vmatprep.subr.mxu1 %v3688_v2 }
  0x2e   : > { %297 = vperm.xlu0 %3529, %v3855_v19   ;;  %1392 = vmatpush1.msra.mxu0 %v1277_v20  ;;  %v1306_v20 = vld [vmem:[%s5216_s2 + $0x108] sm:$0xff] }
  0x2f   : > { %489 = vperm.xlu1 %3532, %v3855_v19   ;;  %1393 = vmatprep.subr.mxu0 %v3688_v2 }
  0x30   : > { %1394 = vmatpush1.msra.mxu0 %v1276_v21  ;;  %1599 = vmatpush1.msra.mxu1 %v1318_v59  ;;  %v4114_v21 = vld [vmem:[%s3795_s16 + $0xe0] sm:$0xff] }
  0x31   : > { %1395 = vmatprep.subr.mxu0 %v3688_v2  ;;  %1600 = vmatprep.subr.mxu1 %v3688_v2  ;;  %v1329_v59 = vld [vmem:[%s5216_s2 + $0x1c0] sm:$0xff] }
  0x32   : > { %300 = vperm.xlu0 %3529, %v3868_v22   ;;  %1396 = vmatpush1.msra.mxu0 %v1275_v23  ;;  %v1305_v23 = vld [vmem:[%s5216_s2 + $0x100] sm:$0xff] }
  0x33   : > { %492 = vperm.xlu1 %3532, %v3868_v22   ;;  %1397 = vmatprep.subr.mxu0 %v3688_v2 }
  0x34   : > { %1398 = vmatpush1.msra.mxu0 %v1274_v24  ;;  %1601 = vmatpush1.msra.mxu1 %v1317_v61  ;;  %v1336_v24 = vld [vmem:[%s5216_s2 + $0x1f8] sm:$0xff]  ;;  %v1351_v61 = vld [vmem:[%s5216_s2 + $0x270] sm:$0xff] }
  0x35   : > { %1399 = vmatprep.subr.mxu0 %v3688_v2  ;;  %1602 = vmatprep.subr.mxu1 %v3688_v2 }
  0x36   : > { %303 = vperm.xlu0 %3529, %v3881_v25   ;;  %1400 = vmatpush1.msra.mxu0 %v1273_v26  ;;  %v4127_v26 = vld [vmem:[%s3795_s16 + $0xe8] sm:$0xff] }
  0x37   : > { %495 = vperm.xlu1 %3532, %v3881_v25   ;;  %1401 = vmatprep.subr.mxu0 %v3688_v2 }
  0x38   : > { %1402 = vmatpush2.msra.mxu0 %v1304_v27  ;;  %1603 = vmatpush1.msra.mxu1 %v1316_v62  ;;  %v1335_v27 = vld [vmem:[%s5216_s2 + $0x1f0] sm:$0xff] }
  0x39   : > { %1403 = vmatprep.subr.mxu0 %v3688_v2  ;;  %1604 = vmatprep.subr.mxu1 %v3688_v2 }
  0x3a   : > { %306 = vperm.xlu0 %3529, %v3894_v28   ;;  %1404 = vmatpush2.msra.mxu0 %v1303_v29  ;;  %v1334_v29 = vld [vmem:[%s5216_s2 + $0x1e8] sm:$0xff] }
  0x3b   : > { %498 = vperm.xlu1 %3532, %v3894_v28   ;;  %1405 = vmatprep.subr.mxu0 %v3688_v2 }
  0x3c   : > { %1406 = vmatpush2.msra.mxu0 %v1302_v30  ;;  %1605 = vmatpush1.msra.mxu1 %v1315_v0  ;;  %v4140_v30 = vld [vmem:[%s3795_s16 + $0xf0] sm:$0xff] }
  0x3d   : > { %1407 = vmatprep.subr.mxu0 %v3688_v2  ;;  %1606 = vmatprep.subr.mxu1 %v3688_v2 }
  0x3e   : > { %309 = vperm.xlu0 %3529, %v3907_v31   ;;  %1408 = vmatpush2.msra.mxu0 %v1301_v32  ;;  %v279_v32 = vlaneseq }
  0x3f   : > { %501 = vperm.xlu1 %3532, %v3907_v31   ;;  %1409 = vmatprep.subr.mxu0 %v3688_v2 }
  0x40   : > { %1410 = vmatpush2.msra.mxu0 %v1300_v33  ;;  %1607 = vmatpush1.msra.mxu1 %v1314_v1  ;;  %v1333_v33 = vld [vmem:[%s5216_s2 + $0x1e0] sm:$0xff]  ;;  %v1350_v1 = vld [vmem:[%s5216_s2 + $0x268] sm:$0xff] }
  0x41   : > { %1411 = vmatprep.subr.mxu0 %v3688_v2  ;;  %1608 = vmatprep.subr.mxu1 %v3688_v2 }
  0x42   : > { %312 = vperm.xlu0 %3529, %v3920_v34   ;;  %1412 = vmatpush2.msra.mxu0 %v1299_v35  ;;  %v1332_v35 = vld [vmem:[%s5216_s2 + $0x1d8] sm:$0xff] }
  0x43   : > { %504 = vperm.xlu1 %3532, %v3920_v34   ;;  %1413 = vmatprep.subr.mxu0 %v3688_v2 }
  0x44   : > { %1414 = vmatpush2.msra.mxu0 %v1298_v36  ;;  %1609 = vmatpush1.msra.mxu1 %v1313_v4  ;;  %v4153_v36 = vand.u32 127, %v279_v32 }
  0x45   : > { %1415 = vmatprep.subr.mxu0 %v3688_v2  ;;  %1610 = vmatprep.subr.mxu1 %v3688_v2 }
  0x46   : > { %315 = vperm.xlu0 %3529, %v3933_v37   ;;  %1416 = vmatpush2.msra.mxu0 %v1297_v38  ;;  %v4156_v38 = vld [vmem:[%s3795_s16 + $0xf8] sm:$0xff] }
  0x47   : > { %507 = vperm.xlu1 %3532, %v3933_v37   ;;  %1417 = vmatprep.subr.mxu0 %v3688_v2 }
  0x48   : > { %1418 = vmatpush2.msra.mxu0 %v1296_v39  ;;  %1611 = vmatpush1.msra.mxu1 %v1312_v7 }
  0x49   : > { %1419 = vmatprep.subr.mxu0 %v3688_v2  ;;  %1612 = vmatprep.subr.mxu1 %v3688_v2 }
  0x4a   : > { %318 = vperm.xlu0 %3529, %v3946_v40   ;;  %1420 = vmatpush2.msra.mxu0 %v1295_v41 }
  0x4b   : > { %510 = vperm.xlu1 %3532, %v3946_v40   ;;  %1421 = vmatprep.subr.mxu0 %v3688_v2 }
  0x4c   : > { %1422 = vmatpush2.msra.mxu0 %v1294_v42  ;;  %1613 = vmatpush1.msra.mxu1 %v1311_v9  ;;  %v1331_v42 = vld [vmem:[%s5216_s2 + $0x1d0] sm:$0xff]  ;;  %v1349_v9 = vld [vmem:[%s5216_s2 + $0x260] sm:$0xff] }
  0x4d   : > { %1423 = vmatprep.subr.mxu0 %v3688_v2  ;;  %1614 = vmatprep.subr.mxu1 %v3688_v2 }
  0x4e   : > { %321 = vperm.xlu0 %3529, %v3959_v43   ;;  %1424 = vmatpush2.msra.mxu0 %v1293_v44  ;;  %v3690_v44 = vmov 1.0  }
  0x4f   : > { %513 = vperm.xlu1 %3532, %v3959_v43   ;;  %1425 = vmatprep.subr.mxu0 %v3688_v2 }
  0x50   : > { %1426 = vmatpush2.msra.mxu0 %v1292_v45  ;;  %1615 = vmatpush1.msra.mxu1 %v1310_v10  ;;  %v1330_v45 = vld [vmem:[%s5216_s2 + $0x1c8] sm:$0xff] }
  0x51   : > { %1427 = vmatprep.subr.mxu0 %v3688_v2  ;;  %1616 = vmatprep.subr.mxu1 %v3688_v2 }
  0x52   : > { %324 = vperm.xlu0 %3529, %v3972_v46   ;;  %1428 = vmatpush2.msra.mxu0 %v1291_v47 }
  0x53   : > { %516 = vperm.xlu1 %3532, %v3972_v46   ;;  %1429 = vmatprep.subr.mxu0 %v3688_v2 }
  0x54   : > { %1430 = vmatpush2.msra.mxu0 %v1290_v48  ;;  %1617 = vmatpush1.msra.mxu1 %v1309_v14  ;;  %v1328_v14 = vld [vmem:[%s5216_s2 + $0x1b8] sm:$0xff] }
  0x55   : > { %1431 = vmatprep.subr.mxu0 %v3688_v2  ;;  %1618 = vmatprep.subr.mxu1 %v3688_v2 }
  0x56   : > { %327 = vperm.xlu0 %3529, %v3985_v49   ;;  %1432 = vmatpush2.msra.mxu0 %v1289_v50  ;;  %v3691_v50 = vmov 4  }
  0x57   : > { %519 = vperm.xlu1 %3532, %v3985_v49   ;;  %1819 = vmatprep.subr.mxu0 %v3688_v2 }
  0x58   : > { %1619 = vmatpush1.msra.mxu1 %v1308_v15 }
  0x59   : > { %1620 = vmatprep.subr.mxu1 %v3688_v2 }
  0x5a   : > { %330 = vperm.xlu0 %3529, %v3995_v51   ;;  %1621 = vmatpush1.msra.mxu1 %v1307_v18  ;;  %v1348_v18 = vld [vmem:[%s5216_s2 + $0x258] sm:$0xff] }
  0x5b   : > { %522 = vperm.xlu1 %3532, %v3995_v51   ;;  %1622 = vmatprep.subr.mxu1 %v3688_v2 }
  0x5c   : > { %1623 = vmatpush1.msra.mxu1 %v1306_v20 }
  0x5d   : > { %1624 = vmatprep.subr.mxu1 %v3688_v2 }
  0x5e   : > { %333 = vperm.xlu0 %3529, %v4001_v52   ;;  %1625 = vmatpush1.msra.mxu1 %v1305_v23 }
  0x5f   : > { %525 = vperm.xlu1 %3532, %v4001_v52   ;;  %1626 = vmatprep.subr.mxu1 %v3688_v2 }
  0x60   : > { %1627 = vmatpush2.msra.mxu1 %v1336_v24  ;;  %v1347_v24 = vld [vmem:[%s5216_s2 + $0x250] sm:$0xff] }
  0x61   : > { %1628 = vmatprep.subr.mxu1 %v3688_v2 }
  0x62   : > { %336 = vperm.xlu0 %3529, %v4006_v53   ;;  %1629 = vmatpush2.msra.mxu1 %v1335_v27  ;;  %v3693_v27 = vmov 2  }
  0x63   : > { %528 = vperm.xlu1 %3532, %v4006_v53   ;;  %1630 = vmatprep.subr.mxu1 %v3688_v2 }
  0x64   : > { %1631 = vmatpush2.msra.mxu1 %v1334_v29  ;;  %v1346_v29 = vld [vmem:[%s5216_s2 + $0x248] sm:$0xff] }
  0x65   : > { %1632 = vmatprep.subr.mxu1 %v3688_v2 }
  0x66   : > { %339 = vperm.xlu0 %3529, %v4011_v54   ;;  %1633 = vmatpush2.msra.mxu1 %v1333_v33 }
  0x67   : > { %531 = vperm.xlu1 %3532, %v4011_v54   ;;  %1634 = vmatprep.subr.mxu1 %v3688_v2 }
  0x68   : > { %1635 = vmatpush2.msra.mxu1 %v1332_v35 }
  0x69   : > { %1636 = vmatprep.subr.mxu1 %v3688_v2 }
  0x6a   : > { %342 = vperm.xlu0 %3529, %v4016_v55   ;;  %1637 = vmatpush2.msra.mxu1 %v1331_v42 }
  0x6b   : > { %534 = vperm.xlu1 %3532, %v4016_v55   ;;  %1638 = vmatprep.subr.mxu1 %v3688_v2 }
  0x6c   : > { %1639 = vmatpush2.msra.mxu1 %v1330_v45  ;;  %v1326_v45 = vld [vmem:[%s5216_s2 + $0x1a8] sm:$0xff] }
  0x6d   : > { %1640 = vmatprep.subr.mxu1 %v3688_v2 }
  0x6e   : > { %345 = vperm.xlu0 %3529, %v4024_v57   ;;  %1641 = vmatpush2.msra.mxu1 %v1329_v59 }
  0x6f   : > { %537 = vperm.xlu1 %3532, %v4024_v57   ;;  %1642 = vmatprep.subr.mxu1 %v3688_v2 }
  0x70   : > { %1643 = vmatpush2.msra.mxu1 %v1328_v14 }
  0x71   : > { %1644 = vmatprep.subr.mxu1 %v3688_v2 }
  0x72   : > { %348 = vperm.xlu0 %3529, %v4037_v60  }
  0x73   : > { %540 = vperm.xlu1 %3532, %v4037_v60  }
  0x76   : > { %351 = vperm.xlu0 %3529, %v4050_v63  }
  0x77   : > { %543 = vperm.xlu1 %3532, %v4050_v63  }
  0x7a   : > { %354 = vperm.xlu0 %3529, %v4062_v3  }
  0x7b   : > { %546 = vperm.xlu1 %3532, %v4062_v3  }
  0x7e   : > { %357 = vperm.xlu0 %3529, %v4075_v8  }
  0x7f   : > { %549 = vperm.xlu1 %3532, %v4075_v8  }
  0x82   : > { %360 = vperm.xlu0 %3529, %v4088_v12  }
  0x83   : > { %552 = vperm.xlu1 %3532, %v4088_v12  }
  0x86   : > { %363 = vperm.xlu0 %3529, %v4101_v17  }
  0x87   : > { %555 = vperm.xlu1 %3532, %v4101_v17  }
  0x8a   : > { %366 = vperm.xlu0 %3529, %v4114_v21  }
  0x8b   : > { %558 = vperm.xlu1 %3532, %v4114_v21  }
  0x8e   : > { %369 = vperm.xlu0 %3529, %v4127_v26  }
  0x8f   : > { %561 = vperm.xlu1 %3532, %v4127_v26  }
  0x92   : > { %372 = vperm.xlu0 %3529, %v4140_v30  }
  0x93   : > { %564 = vperm.xlu1 %3532, %v4140_v30   ;;  %v478_v39 = vpop.permute.xlu1 %477 }
  0x94   : > { %v475_v41 = vpop.permute.xlu0 %474  ;;  %vm570_vm2 = vcmp.eq.s32.totalorder %v4153_v36, %v478_v39  ;;  %v1345_v39 = vld [vmem:[%s5216_s2 + $0x240] sm:$0xff] }
  0x95   : > { %vm569_vm0 = vcmp.eq.s32.totalorder %v4153_v36, %v475_v41 }
  0x96   : > { %375 = vperm.xlu0 %3529, %v4156_v38   ;;  %3038 = vmatprep.mubr.msk.f32.mxu0 %vm569_vm0, %v3690_v44 }
  0x97   : > { %567 = vperm.xlu1 %3532, %v4156_v38  }
  0x99   : > { %v286_v47 = vpop.permute.xlu1 %285  ;;  %v283_v48 = vpop.permute.xlu0 %282 }
  0x9a   : > { %vm377_vm1 = vcmp.eq.s32.totalorder %v4153_v36, %v283_v48  ;;  %3540 = vset.pattern.permute.xlu0 %v3691_v50  ;;  %vm378_vm3 = vcmp.eq.s32.totalorder %v4153_v36, %v286_v47 }
  0x9b   : > { %3533 = vset.pattern.permute.xlu1 %v3692_v58  ;;  %1059 = vperm.xlu0 %3540, %v3829_v13  }
  0x9c   : > { %3039 = vmatmul.mubr.msk.f32.vlgmr.msra.gmra.mxu0 %vm377_vm1, %v3690_v44  ;;  %858 = vperm.xlu1 %3533, %v3802_v6  }
  0x9d   : > { %3040 = vmatprep.mubr.msk.f32.mxu0 %vm570_vm2, %v3690_v44  ;;  %v289_v62 = vpop.permute.xlu0 %288  ;;  %1820 = vmatpush1.msra.mxu0 %v1352_v56  ;;  %v1343_v56 = vld [vmem:[%s5216_s2 + $0x230] sm:$0xff] }
  0x9e   : > { %v481_v0 = vpop.permute.xlu1 %480  ;;  %1821 = vmatprep.subr.mxu0 %v3688_v2  ;;  %vm379_vm5 = vcmp.eq.s32.totalorder %v4153_v36, %v289_v62  ;;  %v1342_v62 = vld [vmem:[%s5216_s2 + $0x228] sm:$0xff] }
  0x9f   : > { %vm571_vm4 = vcmp.eq.s32.totalorder %v4153_v36, %v481_v0  ;;  %1062 = vperm.xlu0 %3540, %v3842_v16   ;;  %1822 = vmatpush1.msra.mxu0 %v1351_v61  ;;  %v1325_v0 = vld [vmem:[%s5216_s2 + $0x1a0] sm:$0xff] }
  0xa0   : > { %3041 = vmatmul.mubr.msk.f32.gmra.mxu0 %vm378_vm3, %v3690_v44  ;;  %3534 = vset.pattern.permute.xlu1 %v3691_v50 }
  0xa1   : > { %3042 = vmatprep.mubr.msk.f32.mxu0 %vm571_vm4, %v3690_v44  ;;  %1050 = vperm.xlu1 %3534, %v3802_v6   ;;  %v292_v4 = vpop.permute.xlu0 %291 }
  0xa2   : > { %v484_v7 = vpop.permute.xlu1 %483  ;;  %1823 = vmatprep.subr.mxu0 %v3688_v2  ;;  %vm380_vm7 = vcmp.eq.s32.totalorder %v4153_v36, %v292_v4 }
  0xa3   : > { %vm572_vm6 = vcmp.eq.s32.totalorder %v4153_v36, %v484_v7  ;;  %1074 = vperm.xlu0 %3540, %v3894_v28   ;;  %1824 = vmatpush1.msra.mxu0 %v1350_v1  ;;  %v1341_v7 = vld [vmem:[%s5216_s2 + $0x220] sm:$0xff] }
  0xa4   : > { %3043 = vmatmul.mubr.msk.f32.gmra.mxu0 %vm379_vm5, %v3690_v44  ;;  %1825 = vmatprep.subr.mxu0 %v3688_v2 }
  0xa5   : > { %3044 = vmatprep.mubr.msk.f32.mxu0 %vm572_vm6, %v3690_v44  ;;  %3535 = vset.pattern.permute.xlu1 %v3692_v58  ;;  %v295_v10 = vpop.permute.xlu0 %294 }
  0xa6   : > { %v487_v15 = vpop.permute.xlu1 %486  ;;  %861 = vperm.xlu1 %3535, %v3799_v5   ;;  %1826 = vmatpush1.msra.mxu0 %v1349_v9  ;;  %vm381_vm9 = vcmp.eq.s32.totalorder %v4153_v36, %v295_v10  ;;  %v1324_v9 = vld [vmem:[%s5216_s2 + $0x198] sm:$0xff] }
  0xa7   : > { %vm573_vm8 = vcmp.eq.s32.totalorder %v4153_v36, %v487_v15  ;;  %1077 = vperm.xlu0 %3540, %v3907_v31   ;;  %1827 = vmatprep.subr.mxu0 %v3688_v2  ;;  %v1340_v15 = vld [vmem:[%s5216_s2 + $0x218] sm:$0xff] }
  0xa8   : > { %3045 = vmatmul.mubr.msk.f32.gmra.mxu0 %vm380_vm7, %v3690_v44 }
  0xa9   : > { %3046 = vmatprep.mubr.msk.f32.mxu0 %vm573_vm8, %v3690_v44  ;;  %v298_v20 = vpop.permute.xlu0 %297  ;;  %1828 = vmatpush1.msra.mxu0 %v1348_v18  ;;  %v1323_v18 = vld [vmem:[%s5216_s2 + $0x190] sm:$0xff] }
  0xaa   : > { %v490_v23 = vpop.permute.xlu1 %489  ;;  %3536 = vset.pattern.permute.xlu1 %v3691_v50  ;;  %1829 = vmatprep.subr.mxu0 %v3688_v2  ;;  %vm382_vm11 = vcmp.eq.s32.totalorder %v4153_v36, %v298_v20 }
  0xab   : > { %vm574_vm10 = vcmp.eq.s32.totalorder %v4153_v36, %v490_v23  ;;  %1053 = vperm.xlu1 %3536, %v3799_v5   ;;  %3552 = vset.pattern.permute.xlu0 %v3693_v27 }
  0xac   : > { %3047 = vmatmul.mubr.msk.f32.gmra.mxu0 %vm381_vm9, %v3690_v44  ;;  %666 = vperm.xlu0 %3552, %v3802_v6   ;;  %v1327_v6 = vld [vmem:[%s5216_s2 + $0x1b0] sm:$0xff] }
  0xad   : > { %3048 = vmatprep.mubr.msk.f32.mxu0 %vm574_vm10, %v3690_v44  ;;  %v301_v33 = vpop.permute.xlu0 %300  ;;  %1830 = vmatpush1.msra.mxu0 %v1347_v24  ;;  %v1338_v24 = vld [vmem:[%s5216_s2 + $0x208] sm:$0xff] }
  0xae   : > { %v493_v35 = vpop.permute.xlu1 %492  ;;  %1831 = vmatprep.subr.mxu0 %v3688_v2  ;;  %vm383_vm13 = vcmp.eq.s32.totalorder %v4153_v36, %v301_v33  ;;  %1645 = vmatpush2.msra.mxu1 %v1327_v6  ;;  %v1337_v33 = vld [vmem:[%s5216_s2 + $0x200] sm:$0xff] }
  0xaf   : > { %vm575_vm12 = vcmp.eq.s32.totalorder %v4153_v36, %v493_v35  ;;  %3537 = vset.pattern.permute.xlu1 %v3693_v27  ;;  %1832 = vmatpush1.msra.mxu0 %v1346_v29  ;;  %v1368_v35 = vld [vmem:[%s5216_s2 + $0x2f8] sm:$0xff] }
  0xb0   : > { %3049 = vmatmul.mubr.msk.f32.gmra.mxu0 %vm382_vm11, %v3690_v44  ;;  %672 = vperm.xlu1 %3537, %v3820_v11  }
  0xb1   : > { %669 = vperm.xlu0 %3552, %v3799_v5   ;;  %3050 = vmatprep.mubr.msk.f32.mxu0 %vm575_vm12, %v3690_v44  ;;  %v304_v41 = vpop.permute.xlu0 %303  ;;  %v1344_v5 = vld [vmem:[%s5216_s2 + $0x238] sm:$0xff] }
  0xb2   : > { %v496_v42 = vpop.permute.xlu1 %495  ;;  %1833 = vmatprep.subr.mxu0 %v3688_v2  ;;  %1646 = vmatprep.subr.mxu1 %v3688_v2  ;;  %vm384_vm15 = vcmp.eq.s32.totalorder %v4153_v36, %v304_v41 }
  0xb3   : > { %vm576_vm14 = vcmp.eq.s32.totalorder %v4153_v36, %v496_v42  ;;  %1834 = vmatpush1.msra.mxu0 %v1345_v39  ;;  %1647 = vmatpush2.msra.mxu1 %v1326_v45  ;;  %v1366_v42 = vld [vmem:[%s5216_s2 + $0x2e8] sm:$0xff]  ;;  %v1321_v45 = vld [vmem:[%s5216_s2 + $0x180] sm:$0xff] }
  0xb4   : > { %3051 = vmatmul.mubr.msk.f32.gmra.mxu0 %vm383_vm13, %v3690_v44  ;;  %3538 = vset.pattern.permute.xlu1 %v3691_v50 }
  0xb5   : > { %681 = vperm.xlu0 %3552, %v3855_v19   ;;  %3052 = vmatprep.mubr.msk.f32.mxu0 %vm576_vm14, %v3690_v44  ;;  %v307_v47 = vpop.permute.xlu0 %306 }
  0xb6   : > { %1056 = vperm.xlu1 %3538, %v3820_v11   ;;  %v499_v48 = vpop.permute.xlu1 %498  ;;  %1835 = vmatprep.subr.mxu0 %v3688_v2  ;;  %vm385_vm1 = vcmp.eq.s32.totalorder %v4153_v36, %v307_v47 }
  0xb7   : > { %vm577_vm0 = vcmp.eq.s32.totalorder %v4153_v36, %v499_v48  ;;  %1836 = vmatpush1.msra.mxu0 %v1344_v5  ;;  %1648 = vmatprep.subr.mxu1 %v3688_v2 }
  0xb8   : > { %3053 = vmatmul.mubr.msk.f32.gmra.mxu0 %vm384_vm15, %v3690_v44  ;;  %1837 = vmatprep.subr.mxu0 %v3688_v2 }
  0xb9   : > { %684 = vperm.xlu0 %3552, %v3868_v22   ;;  %3054 = vmatprep.mubr.msk.f32.mxu0 %vm577_vm0, %v3690_v44  ;;  %v310_v59 = vpop.permute.xlu0 %309 }
  0xba   : > { %3539 = vset.pattern.permute.xlu1 %v3693_v27  ;;  %v502_v61 = vpop.permute.xlu1 %501  ;;  %1838 = vmatpush1.msra.mxu0 %v1343_v56  ;;  %vm386_vm3 = vcmp.eq.s32.totalorder %v4153_v36, %v310_v59  ;;  %v1364_v59 = vld [vmem:[%s5216_s2 + $0x2d8] sm:$0xff] }
  0xbb   : > { %vm578_vm2 = vcmp.eq.s32.totalorder %v4153_v36, %v502_v61  ;;  %675 = vperm.xlu1 %3539, %v3829_v13   ;;  %1839 = vmatprep.subr.mxu0 %v3688_v2 }
  0xbc   : > { %3055 = vmatmul.mubr.msk.f32.gmra.mxu0 %vm385_vm1, %v3690_v44  ;;  %1649 = vmatpush2.msra.mxu1 %v1325_v0  ;;  %v1362_v0 = vld [vmem:[%s5216_s2 + $0x2c8] sm:$0xff] }
  0xbd   : > { %696 = vperm.xlu0 %3552, %v3920_v34   ;;  %3056 = vmatprep.mubr.msk.f32.mxu0 %vm578_vm2, %v3690_v44  ;;  %v313_v1 = vpop.permute.xlu0 %312 }
  0xbe   : > { %v505_v4 = vpop.permute.xlu1 %504  ;;  %1840 = vmatpush1.msra.mxu0 %v1342_v62  ;;  %vm387_vm5 = vcmp.eq.s32.totalorder %v4153_v36, %v313_v1  ;;  %1650 = vmatprep.subr.mxu1 %v3688_v2  ;;  %v1363_v62 = vld [vmem:[%s5216_s2 + $0x2d0] sm:$0xff] }
  0xbf   : > { %vm579_vm4 = vcmp.eq.s32.totalorder %v4153_v36, %v505_v4  ;;  %3541 = vset.pattern.permute.xlu1 %v3692_v58  ;;  %1841 = vmatprep.subr.mxu0 %v3688_v2 }
  0xc0   : > { %870 = vperm.xlu1 %3541, %v3842_v16   ;;  %3057 = vmatmul.mubr.msk.f32.gmra.mxu0 %vm386_vm3, %v3690_v44 }
  0xc1   : > { %699 = vperm.xlu0 %3552, %v3933_v37   ;;  %3058 = vmatprep.mubr.msk.f32.mxu0 %vm579_vm4, %v3690_v44  ;;  %v316_v10 = vpop.permute.xlu0 %315 }
  0xc2   : > { %v508_v14 = vpop.permute.xlu1 %507  ;;  %1842 = vmatpush1.msra.mxu0 %v1341_v7  ;;  %1651 = vmatpush2.msra.mxu1 %v1324_v9  ;;  %vm388_vm7 = vcmp.eq.s32.totalorder %v4153_v36, %v316_v10 }
  0xc3   : > { %vm580_vm6 = vcmp.eq.s32.totalorder %v4153_v36, %v508_v14  ;;  %1843 = vmatprep.subr.mxu0 %v3688_v2  ;;  %1652 = vmatprep.subr.mxu1 %v3688_v2  ;;  %v1359_v14 = vld [vmem:[%s5216_s2 + $0x2b0] sm:$0xff] }
  0xc4   : > { %3542 = vset.pattern.permute.xlu1 %v3693_v27  ;;  %3059 = vmatmul.mubr.msk.f32.gmra.mxu0 %vm387_vm5, %v3690_v44 }
  0xc5   : > { %678 = vperm.xlu1 %3542, %v3842_v16   ;;  %711 = vperm.xlu0 %3552, %v3985_v49   ;;  %v319_v37 = vpop.permute.xlu0 %318  ;;  %v1339_v16 = vld [vmem:[%s5216_s2 + $0x210] sm:$0xff] }
  0xc6   : > { %3060 = vmatprep.mubr.msk.f32.mxu0 %vm580_vm6, %v3690_v44  ;;  %v511_v20 = vpop.permute.xlu1 %510  ;;  %1844 = vmatpush1.msra.mxu0 %v1340_v15  ;;  %vm389_vm9 = vcmp.eq.s32.totalorder %v4153_v36, %v319_v37  ;;  %v1358_v37 = vld [vmem:[%s5216_s2 + $0x2a8] sm:$0xff] }
  0xc7   : > { %vm581_vm8 = vcmp.eq.s32.totalorder %v4153_v36, %v511_v20  ;;  %1845 = vmatprep.subr.mxu0 %v3688_v2  ;;  %1653 = vmatpush2.msra.mxu1 %v1323_v18  ;;  %v1357_v18 = vld [vmem:[%s5216_s2 + $0x2a0] sm:$0xff] }
  0xc8   : > { %3061 = vmatmul.mubr.msk.f32.gmra.mxu0 %vm388_vm7, %v3690_v44  ;;  %1654 = vmatprep.subr.mxu1 %v3688_v2 }
  0xc9   : > { %3543 = vset.pattern.permute.xlu1 %v3692_v58  ;;  %714 = vperm.xlu0 %3552, %v3995_v51   ;;  %v322_v49 = vpop.permute.xlu0 %321 }
  0xca   : > { %3062 = vmatprep.mubr.msk.f32.mxu0 %vm581_vm8, %v3690_v44  ;;  %873 = vperm.xlu1 %3543, %v3855_v19   ;;  %v514_v23 = vpop.permute.xlu1 %513  ;;  %vm390_vm11 = vcmp.eq.s32.totalorder %v4153_v36, %v322_v49 }
  0xcb   : > { %vm582_vm10 = vcmp.eq.s32.totalorder %v4153_v36, %v514_v23  ;;  %1846 = vmatpush1.msra.mxu0 %v1339_v16  ;;  %v1356_v16 = vld [vmem:[%s5216_s2 + $0x298] sm:$0xff] }
  0xcc   : > { %3063 = vmatmul.mubr.msk.f32.gmra.mxu0 %vm389_vm9, %v3690_v44  ;;  %1847 = vmatprep.subr.mxu0 %v3688_v2 }
  0xcd   : > { %3565 = vset.pattern.permute.xlu0 %v3692_v58  ;;  %3064 = vmatprep.mubr.msk.f32.mxu0 %vm582_vm10, %v3690_v44  ;;  %v325_v51 = vpop.permute.xlu0 %324 }
  0xce   : > { %3544 = vset.pattern.permute.xlu1 %v3691_v50  ;;  %864 = vperm.xlu0 %3565, %v3820_v11   ;;  %v517_v29 = vpop.permute.xlu1 %516  ;;  %vm391_vm13 = vcmp.eq.s32.totalorder %v4153_v36, %v325_v51 }
  0xcf   : > { %vm583_vm12 = vcmp.eq.s32.totalorder %v4153_v36, %v517_v29  ;;  %1065 = vperm.xlu1 %3544, %v3855_v19   ;;  %1848 = vmatpush1.msra.mxu0 %v1338_v24  ;;  %v1367_v19 = vld [vmem:[%s5216_s2 + $0x2f0] sm:$0xff] }
  0xd0   : > { %3065 = vmatmul.mubr.msk.f32.gmra.mxu0 %vm390_vm11, %v3690_v44  ;;  %1849 = vmatprep.subr.mxu0 %v3688_v2  ;;  %v1355_v24 = vld [vmem:[%s5216_s2 + $0x290] sm:$0xff] }
  0xd1   : > { %3066 = vmatprep.mubr.msk.f32.mxu0 %vm583_vm12, %v3690_v44  ;;  %v328_v11 = vpop.permute.xlu0 %327  ;;  %1850 = vmatpush1.msra.mxu0 %v1337_v33  ;;  %v3604_v33 = vld [vmem:[%s3795_s16 + $0x58] sm:$0xff] }
  0xd2   : > { %867 = vperm.xlu0 %3565, %v3829_v13   ;;  %v520_v6 = vpop.permute.xlu1 %519  ;;  %1851 = vmatprep.subr.mxu0 %v3688_v2  ;;  %v1322_v13 = vld [vmem:[%s5216_s2 + $0x188] sm:$0xff]  ;;  %vm392_vm15 = vcmp.eq.s32.totalorder %v4153_v36, %v328_v11 }
  0xd3   : > { %vm584_vm14 = vcmp.eq.s32.totalorder %v4153_v36, %v520_v6  ;;  %3545 = vset.pattern.permute.xlu1 %v3692_v58  ;;  %1852 = vmatpush2.msra.mxu0 %v1368_v35 }
  0xd4   : > { %876 = vperm.xlu1 %3545, %v3868_v22   ;;  %3067 = vmatmul.mubr.msk.f32.gmra.mxu0 %vm391_vm13, %v3690_v44 }
  0xd5   : > { %3068 = vmatprep.mubr.msk.f32.mxu0 %vm584_vm14, %v3690_v44  ;;  %v331_v39 = vpop.permute.xlu0 %330  ;;  %1853 = vmatprep.subr.mxu0 %v3688_v2 }
  0xd6   : > { %v523_v41 = vpop.permute.xlu1 %522  ;;  %879 = vperm.xlu0 %3565, %v3881_v25   ;;  %1854 = vmatpush2.msra.mxu0 %v1367_v19  ;;  %vm393_vm1 = vcmp.eq.s32.totalorder %v4153_v36, %v331_v39  ;;  %v3605_v19 = vld [vmem:[%s3795_s16 + $0x60] sm:$0xff] }
  0xd7   : > { %vm585_vm0 = vcmp.eq.s32.totalorder %v4153_v36, %v523_v41  ;;  %1855 = vmatprep.subr.mxu0 %v3688_v2  ;;  %1655 = vmatpush2.msra.mxu1 %v1322_v13 }
  0xd8   : > { %3546 = vset.pattern.permute.xlu1 %v3691_v50  ;;  %3069 = vmatmul.mubr.msk.f32.gmra.mxu0 %vm392_vm15, %v3690_v44 }
  0xd9   : > { %1068 = vperm.xlu1 %3546, %v3868_v22   ;;  %3070 = vmatprep.mubr.msk.f32.mxu0 %vm585_vm0, %v3690_v44  ;;  %v334_v5 = vpop.permute.xlu0 %333  ;;  %v1365_v22 = vld [vmem:[%s5216_s2 + $0x2e0] sm:$0xff] }
  0xda   : > { %v526_v47 = vpop.permute.xlu1 %525  ;;  %882 = vperm.xlu0 %3565, %v3894_v28   ;;  %1856 = vmatpush2.msra.mxu0 %v1366_v42  ;;  %vm394_vm3 = vcmp.eq.s32.totalorder %v4153_v36, %v334_v5  ;;  %v1241_v42 = vld [vmem:[%s4543_s7] sm:$0xff]  ;;  %v3607_v5 = vld [vmem:[%s3795_s16 + $0x70] sm:$0xff] }
  0xdb   : > { %vm586_vm2 = vcmp.eq.s32.totalorder %v4153_v36, %v526_v47  ;;  %1857 = vmatprep.subr.mxu0 %v3688_v2  ;;  %1656 = vmatprep.subr.mxu1 %v3688_v2 }
  0xdc   : > { %3071 = vmatmul.mubr.msk.f32.gmra.mxu0 %vm393_vm1, %v3690_v44  ;;  %1657 = vmatpush2.msra.mxu1 %v1321_v45 }
  0xdd   : > { %3547 = vset.pattern.permute.xlu1 %v3693_v27  ;;  %3072 = vmatprep.mubr.msk.f32.mxu0 %vm586_vm2, %v3690_v44  ;;  %v337_v48 = vpop.permute.xlu0 %336 }
  0xde   : > { %687 = vperm.xlu1 %3547, %v3881_v25   ;;  %v529_v56 = vpop.permute.xlu1 %528  ;;  %894 = vperm.xlu0 %3565, %v3946_v40   ;;  %vm395_vm5 = vcmp.eq.s32.totalorder %v4153_v36, %v337_v48 }
  0xdf   : > { %vm587_vm4 = vcmp.eq.s32.totalorder %v4153_v36, %v529_v56  ;;  %1858 = vmatpush2.msra.mxu0 %v1365_v22  ;;  %v1242_v22 = vld [vmem:[%s4543_s7 + $0x8] sm:$0xff] }
  0xe0   : > { %3073 = vmatmul.mubr.msk.f32.gmra.mxu0 %vm394_vm3, %v3690_v44  ;;  %1859 = vmatprep.subr.mxu0 %v3688_v2 }
  0xe1   : > { %3074 = vmatprep.mubr.msk.f32.mxu0 %vm587_vm4, %v3690_v44  ;;  %v340_v61 = vpop.permute.xlu0 %339  ;;  %1860 = vmatpush2.msra.mxu0 %v1364_v59 }
  0xe2   : > { %3548 = vset.pattern.permute.xlu1 %v3691_v50  ;;  %v532_v40 = vpop.permute.xlu1 %531  ;;  %897 = vperm.xlu0 %3565, %v3959_v43   ;;  %vm396_vm7 = vcmp.eq.s32.totalorder %v4153_v36, %v340_v61 }
  0xe3   : > { %vm588_vm6 = vcmp.eq.s32.totalorder %v4153_v36, %v532_v40  ;;  %1071 = vperm.xlu1 %3548, %v3881_v25   ;;  %1861 = vmatprep.subr.mxu0 %v3688_v2  ;;  %v1361_v25 = vld [vmem:[%s5216_s2 + $0x2c0] sm:$0xff]  ;;  %v1243_v40 = vld [vmem:[%s4543_s7 + $0x10] sm:$0xff] }
  0xe4   : > { %3075 = vmatmul.mubr.msk.f32.gmra.mxu0 %vm395_vm5, %v3690_v44 }
  0xe5   : > { %3076 = vmatprep.mubr.msk.f32.mxu0 %vm588_vm6, %v3690_v44  ;;  %v343_v1 = vpop.permute.xlu0 %342  ;;  %1862 = vmatpush2.msra.mxu0 %v1363_v62  ;;  %v3609_v62 = vld [vmem:[%s3795_s16 + $0x80] sm:$0xff] }
  0xe6   : > { %v535_v4 = vpop.permute.xlu1 %534  ;;  %909 = vperm.xlu0 %3565, %v4001_v52   ;;  %1863 = vmatprep.subr.mxu0 %v3688_v2  ;;  %vm397_vm9 = vcmp.eq.s32.totalorder %v4153_v36, %v343_v1 }
  0xe7   : > { %vm589_vm8 = vcmp.eq.s32.totalorder %v4153_v36, %v535_v4  ;;  %3549 = vset.pattern.permute.xlu1 %v3693_v27  ;;  %1864 = vmatpush2.msra.mxu0 %v1362_v0  ;;  %v1244_v4 = vld [vmem:[%s4543_s7 + $0x18] sm:$0xff] }
  0xe8   : > { %690 = vperm.xlu1 %3549, %v3894_v28   ;;  %3077 = vmatmul.mubr.msk.f32.gmra.mxu0 %vm396_vm7, %v3690_v44  ;;  %v1360_v28 = vld [vmem:[%s5216_s2 + $0x2b8] sm:$0xff] }
  0xe9   : > { %3078 = vmatprep.mubr.msk.f32.mxu0 %vm589_vm8, %v3690_v44  ;;  %v346_v52 = vpop.permute.xlu0 %345  ;;  %1865 = vmatprep.subr.mxu0 %v3688_v2 }
  0xea   : > { %v538_v7 = vpop.permute.xlu1 %537  ;;  %912 = vperm.xlu0 %3565, %v4006_v53   ;;  %1866 = vmatpush2.msra.mxu0 %v1361_v25  ;;  %vm398_vm11 = vcmp.eq.s32.totalorder %v4153_v36, %v346_v52 }
  0xeb   : > { %vm590_vm10 = vcmp.eq.s32.totalorder %v4153_v36, %v538_v7  ;;  %1867 = vmatprep.subr.mxu0 %v3688_v2  ;;  %v3610_v7 = vld [vmem:[%s3795_s16 + $0x88] sm:$0xff] }
  0xec   : > { %3550 = vset.pattern.permute.xlu1 %v3692_v58  ;;  %3079 = vmatmul.mubr.msk.f32.gmra.mxu0 %vm397_vm9, %v3690_v44 }
  0xed   : > { %885 = vperm.xlu1 %3550, %v3907_v31   ;;  %3080 = vmatprep.mubr.msk.f32.mxu0 %vm590_vm10, %v3690_v44  ;;  %v349_v9 = vpop.permute.xlu0 %348 }
  0xee   : > { %v541_v10 = vpop.permute.xlu1 %540  ;;  %924 = vperm.xlu0 %3565, %v4037_v60   ;;  %1868 = vmatpush2.msra.mxu0 %v1360_v28  ;;  %vm399_vm13 = vcmp.eq.s32.totalorder %v4153_v36, %v349_v9  ;;  %v1246_v9 = vld [vmem:[%s4543_s7 + $0x28] sm:$0xff] }
  0xef   : > { %vm591_vm12 = vcmp.eq.s32.totalorder %v4153_v36, %v541_v10  ;;  %1869 = vmatprep.subr.mxu0 %v3688_v2 }
  0xf0   : > { %3081 = vmatmul.mubr.msk.f32.gmra.mxu0 %vm398_vm11, %v3690_v44 }
  0xf1   : > { %3551 = vset.pattern.permute.xlu1 %v3693_v27  ;;  %3082 = vmatprep.mubr.msk.f32.mxu0 %vm591_vm12, %v3690_v44  ;;  %v352_v15 = vpop.permute.xlu0 %351 }
  0xf2   : > { %693 = vperm.xlu1 %3551, %v3907_v31   ;;  %v544_v60 = vpop.permute.xlu1 %543  ;;  %1870 = vmatpush2.msra.mxu0 %v1359_v14  ;;  %vm400_vm15 = vcmp.eq.s32.totalorder %v4153_v36, %v352_v15 }
  0xf3   : > { %vm592_vm14 = vcmp.eq.s32.totalorder %v4153_v36, %v544_v60  ;;  %927 = vperm.xlu0 %3565, %v4050_v63   ;;  %1871 = vmatprep.subr.mxu0 %v3688_v2  ;;  %v3611_v60 = vld [vmem:[%s3795_s16 + $0x90] sm:$0xff] }
  0xf4   : > { %3083 = vmatmul.mubr.msk.f32.gmra.mxu0 %vm399_vm13, %v3690_v44 }
  0xf5   : > { %3084 = vmatprep.mubr.msk.f32.mxu0 %vm592_vm14, %v3690_v44  ;;  %v355_v31 = vpop.permute.xlu0 %354  ;;  %1872 = vmatpush2.msra.mxu0 %v1358_v37 }
  0xf6   : > { %3553 = vset.pattern.permute.xlu1 %v3692_v58  ;;  %v547_v20 = vpop.permute.xlu1 %546  ;;  %1873 = vmatprep.subr.mxu0 %v3688_v2  ;;  %vm401_vm1 = vcmp.eq.s32.totalorder %v4153_v36, %v355_v31 }
  0xf7   : > { %vm593_vm0 = vcmp.eq.s32.totalorder %v4153_v36, %v547_v20  ;;  %888 = vperm.xlu1 %3553, %v3920_v34   ;;  %1874 = vmatpush2.msra.mxu0 %v1357_v18  ;;  %v3612_v18 = vld [vmem:[%s3795_s16 + $0x98] sm:$0xff] }
  0xf8   : > { %3085 = vmatmul.mubr.msk.f32.gmra.mxu0 %vm400_vm15, %v3690_v44  ;;  %3578 = vset.pattern.permute.xlu0 %v3691_v50 }
  0xf9   : > { %3086 = vmatprep.mubr.msk.f32.mxu0 %vm593_vm0, %v3690_v44  ;;  %v358_v49 = vpop.permute.xlu0 %357  ;;  %1875 = vmatprep.subr.mxu0 %v3688_v2 }
  0xfa   : > { %v550_v23 = vpop.permute.xlu1 %549  ;;  %1089 = vperm.xlu0 %3578, %v3959_v43   ;;  %1876 = vmatpush2.msra.mxu0 %v1356_v16  ;;  %v1354_v43 = vld [vmem:[%s5216_s2 + $0x288] sm:$0xff]  ;;  %vm402_vm3 = vcmp.eq.s32.totalorder %v4153_v36, %v358_v49 }
  0xfb   : > { %vm594_vm2 = vcmp.eq.s32.totalorder %v4153_v36, %v550_v23  ;;  %3554 = vset.pattern.permute.xlu1 %v3691_v50  ;;  %1877 = vmatprep.subr.mxu0 %v3688_v2  ;;  %v3613_v23 = vld [vmem:[%s3795_s16 + $0xa0] sm:$0xff] }
  0xfc   : > { %1080 = vperm.xlu1 %3554, %v3920_v34   ;;  %3087 = vmatmul.mubr.msk.f32.gmra.mxu0 %vm401_vm1, %v3690_v44  ;;  %v1353_v34 = vld [vmem:[%s5216_s2 + $0x280] sm:$0xff] }
  0xfd   : > { %3088 = vmatprep.mubr.msk.f32.mxu0 %vm594_vm2, %v3690_v44  ;;  %v361_v51 = vpop.permute.xlu0 %360  ;;  %1878 = vmatpush2.msra.mxu0 %v1355_v24 }
  0xfe   : > { %v553_v29 = vpop.permute.xlu1 %552  ;;  %1879 = vmatprep.subr.mxu0 %v3688_v2  ;;  %1092 = vperm.xlu0 %3578, %v3972_v46   ;;  %vm403_vm5 = vcmp.eq.s32.totalorder %v4153_v36, %v361_v51 }
  0xff   : > { %vm595_vm4 = vcmp.eq.s32.totalorder %v4153_v36, %v553_v29  ;;  %1880 = vmatpush2.msra.mxu0 %v1354_v43  ;;  %v1248_v43 = vld [vmem:[%s4543_s7 + $0x38] sm:$0xff] }
 0x100   : > { %3555 = vset.pattern.permute.xlu1 %v3692_v58  ;;  %3089 = vmatmul.mubr.msk.f32.gmra.mxu0 %vm402_vm3, %v3690_v44 }
 0x101   : > { %891 = vperm.xlu1 %3555, %v3604_v33   ;;  %3090 = vmatprep.mubr.msk.f32.mxu0 %vm595_vm4, %v3690_v44  ;;  %v364_v35 = vpop.permute.xlu0 %363 }
 0x102   : > { %v556_v11 = vpop.permute.xlu1 %555  ;;  %1881 = vmatprep.subr.mxu0 %v3688_v2  ;;  %1104 = vperm.xlu0 %3578, %v4006_v53   ;;  %vm404_vm7 = vcmp.eq.s32.totalorder %v4153_v36, %v364_v35 }
 0x103   : > { %vm596_vm6 = vcmp.eq.s32.totalorder %v4153_v36, %v556_v11  ;;  %1882 = vmatpush2.msra.mxu0 %v1353_v34  ;;  %v3614_v34 = vld [vmem:[%s3795_s16 + $0xa8] sm:$0xff] }
 0x104   : > { %3091 = vmatmul.mubr.msk.f32.gmra.mxu0 %vm403_vm5, %v3690_v44 }
 0x105   : > { %3556 = vset.pattern.permute.xlu1 %v3691_v50  ;;  %3092 = vmatprep.mubr.msk.f32.mxu0 %vm596_vm6, %v3690_v44  ;;  %v367_v46 = vpop.permute.xlu0 %366 }
 0x106   : > { %1083 = vperm.xlu1 %3556, %v3604_v33   ;;  %v559_v6 = vpop.permute.xlu1 %558  ;;  %1107 = vperm.xlu0 %3578, %v4011_v54   ;;  %vm405_vm9 = vcmp.eq.s32.totalorder %v4153_v36, %v367_v46 }
 0x107   : > { %vm597_vm8 = vcmp.eq.s32.totalorder %v4153_v36, %v559_v6  ;;  %v1249_v6 = vld [vmem:[%s4543_s7 + $0x40] sm:$0xff] }
 0x108   : > { %3093 = vmatmul.mubr.msk.f32.gmra.mxu0 %vm404_vm7, %v3690_v44 }
 0x109   : > { %3094 = vmatprep.mubr.msk.f32.mxu0 %vm597_vm8, %v3690_v44  ;;  %v370_v2 = vpop.permute.xlu0 %369 }
 0x10a   : > { %3557 = vset.pattern.permute.xlu1 %v3693_v27  ;;  %v562_v53 = vpop.permute.xlu1 %561  ;;  %1119 = vperm.xlu0 %3578, %v4050_v63   ;;  %vm406_vm11 = vcmp.eq.s32.totalorder %v4153_v36, %v370_v2 }
 0x10b   : > { %vm598_vm10 = vcmp.eq.s32.totalorder %v4153_v36, %v562_v53  ;;  %702 = vperm.xlu1 %3557, %v3605_v19  }
 0x10c   : > { %3095 = vmatmul.mubr.msk.f32.gmra.mxu0 %vm405_vm9, %v3690_v44 }
 0x10d   : > { %3096 = vmatprep.mubr.msk.f32.mxu0 %vm598_vm10, %v3690_v44  ;;  %v373_v54 = vpop.permute.xlu0 %372 }
 0x10e   : > { %v565_v13 = vpop.permute.xlu1 %564  ;;  %1122 = vperm.xlu0 %3578, %v4062_v3   ;;  %vm407_vm13 = vcmp.eq.s32.totalorder %v4153_v36, %v373_v54  ;;  %v3606_v3 = vld [vmem:[%s3795_s16 + $0x68] sm:$0xff] }
 0x10f   : > { %vm599_vm12 = vcmp.eq.s32.totalorder %v4153_v36, %v565_v13  ;;  %3558 = vset.pattern.permute.xlu1 %v3691_v50  ;;  %v1250_v13 = vld [vmem:[%s4543_s7 + $0x48] sm:$0xff] }
 0x110   : > { %1086 = vperm.xlu1 %3558, %v3605_v19   ;;  %3097 = vmatmul.mubr.msk.f32.gmra.mxu0 %vm406_vm11, %v3690_v44 }
 0x111   : > { %3098 = vmatprep.mubr.msk.f32.mxu0 %vm599_vm12, %v3690_v44  ;;  %v376_v63 = vpop.permute.xlu0 %375 }
 0x112   : > { %v568_v39 = vpop.permute.xlu1 %567  ;;  %3582 = vset.pattern.permute.xlu0 %v3693_v27  ;;  %vm408_vm15 = vcmp.eq.s32.totalorder %v4153_v36, %v376_v63  ;;  %v3615_v63 = vld [vmem:[%s3795_s16 + $0xb0] sm:$0xff] }
 0x113   : > { %vm600_vm14 = vcmp.eq.s32.totalorder %v4153_v36, %v568_v39  ;;  %726 = vperm.xlu0 %3582, %v4016_v55  }
 0x114   : > { %3559 = vset.pattern.permute.xlu1 %v3693_v27  ;;  %3099 = vmatmul.mubr.msk.f32.gmra.mxu0 %vm407_vm13, %v3690_v44 }
 0x115   : > { %705 = vperm.xlu1 %3559, %v3606_v3   ;;  %3100 = vmatprep.mubr.msk.f32.mxu0 %vm600_vm14, %v3690_v44 }
 0x116   : > { %v4547_v41 = vpop.permute.xlu0 %1059 }
 0x117   : > { %v859_v55 = vpop.permute.xlu1 %858  ;;  %729 = vperm.xlu0 %3582, %v4024_v57   ;;  %vm1148_vm7 = vcmp.eq.s32.totalorder %v4153_v36, %v4547_v41 }
 0x118   : > { %3101 = vmatmul.mubr.msk.f32.gmra.mxu0 %vm408_vm15, %v3690_v44  ;;  %vm953_vm0 = vcmp.eq.s32.totalorder %v4153_v36, %v859_v55 }
 0x119   : > { %3560 = vset.pattern.permute.xlu1 %v3692_v58  ;;  %3102 = vmatprep.mubr.msk.f32.mxu1 %vm953_vm0, %v3690_v44 }
 0x11a   : > { %900 = vperm.xlu1 %3560, %v3607_v5   ;;  %v4557_v45 = vpop.permute.xlu0 %1062  ;;  %1883 = vmatprep.mubr.f32.mxu0 %v1241_v42  ;;  %v1251_v42 = vld [vmem:[%s4543_s7 + $0x50] sm:$0xff] }
 0x11b   : > { %741 = vperm.xlu0 %3582, %v4075_v8   ;;  %v3608_v8 = vld [vmem:[%s3795_s16 + $0x78] sm:$0xff]  ;;  %vm1149_vm8 = vcmp.eq.s32.totalorder %v4153_v36, %v4557_v45 }
 0x11c   : > { %v1051_v47 = vpop.permute.xlu1 %1050 }
 0x11d   : > { %vm1145_vm1 = vcmp.eq.s32.totalorder %v4153_v36, %v1051_v47 }
 0x11e   : > { %3561 = vset.pattern.permute.xlu1 %v3693_v27  ;;  %3166 = vmatmul.mubr.msk.f32.vlgmr.msra.gmra.mxu0 %vm1145_vm1, %v3690_v44  ;;  %v4564_v57 = vpop.permute.xlu0 %1074 }
 0x11f   : > { %708 = vperm.xlu1 %3561, %v3607_v5   ;;  %1888 = vmatprep.mubr.f32.mxu0 %v1242_v22 }
 0x120   : > { %744 = vperm.xlu0 %3582, %v4088_v12  }
 0x121   : > { %v862_v48 = vpop.permute.xlu1 %861 }
 0x122   : > { %v4567_v56 = vpop.permute.xlu0 %1077  ;;  %vm954_vm4 = vcmp.eq.s32.totalorder %v4153_v36, %v862_v48  ;;  %v3616_v48 = vld [vmem:[%s3795_s16 + $0xb8] sm:$0xff] }
 0x123   : > { %3562 = vset.pattern.permute.xlu1 %v3692_v58 }
 0x124   : > { %903 = vperm.xlu1 %3562, %v3608_v8   ;;  %3587 = vset.pattern.permute.xlu0 %v3692_v58 }
 0x125   : > { %939 = vperm.xlu0 %3587, %v4101_v17  }
 0x126   : > { %v1054_v59 = vpop.permute.xlu1 %1053 }
 0x127   : > { %vm1146_vm2 = vcmp.eq.s32.totalorder %v4153_v36, %v1054_v59  ;;  %v667_v61 = vpop.permute.xlu0 %666 }
 0x128   : > { %3563 = vset.pattern.permute.xlu1 %v3691_v50  ;;  %vm761_vm3 = vcmp.eq.s32.totalorder %v4153_v36, %v667_v61  ;;  %3167 = vmatmul.mubr.msk.f32.gmra.mxu0 %vm1146_vm2, %v3690_v44 }
 0x129   : > { %1095 = vperm.xlu1 %3563, %v3608_v8   ;;  %3103 = vmatmul.mubr.msk.f32.vlgmr.msra.gmra.mxu1 %vm761_vm3, %v3690_v44 }
 0x12a   : > { %3104 = vmatprep.mubr.msk.f32.mxu1 %vm954_vm4, %v3690_v44  ;;  %1893 = vmatprep.mubr.f32.mxu0 %v1243_v40  ;;  %v3617_v40 = vld [vmem:[%s3795_s16 + $0xc0] sm:$0xff] }
 0x12b   : > { %v673_v12 = vpop.permute.xlu1 %672  ;;  %942 = vperm.xlu0 %3587, %v4114_v21  }
 0x12c   : > { %v670_v17 = vpop.permute.xlu0 %669  ;;  %vm763_vm10 = vcmp.eq.s32.totalorder %v4153_v36, %v673_v12 }
 0x12d   : > { %vm762_vm5 = vcmp.eq.s32.totalorder %v4153_v36, %v670_v17  ;;  %3564 = vset.pattern.permute.xlu1 %v3692_v58 }
 0x12e   : > { %906 = vperm.xlu1 %3564, %v3609_v62   ;;  %3105 = vmatmul.mubr.msk.f32.gmra.mxu1 %vm762_vm5, %v3690_v44 }
 0x12f   : > { %3591 = vset.pattern.permute.xlu0 %v3691_v50 }
 0x130   : > { %v4587_v0 = vpop.permute.xlu0 %681  ;;  %1134 = vperm.xlu0 %3591, %v4114_v21   ;;  %v1245_v21 = vld [vmem:[%s4543_s7 + $0x20] sm:$0xff] }
 0x131   : > { %v1057_v1 = vpop.permute.xlu1 %1056  ;;  %vm766_vm1 = vcmp.eq.s32.totalorder %v4153_v36, %v4587_v0  ;;  %v1252_v0 = vld [vmem:[%s4543_s7 + $0x58] sm:$0xff] }
 0x132   : > { %vm1147_vm6 = vcmp.eq.s32.totalorder %v4153_v36, %v1057_v1  ;;  %3566 = vset.pattern.permute.xlu1 %v3691_v50 }
 0x133   : > { %1098 = vperm.xlu1 %3566, %v3609_v62   ;;  %3168 = vmatmul.mubr.msk.f32.gmra.mxu0 %vm1147_vm6, %v3690_v44 }
 0x134   : > { %v4596_v25 = vpop.permute.xlu0 %684  ;;  %1898 = vmatprep.mubr.f32.mxu0 %v1244_v4  ;;  %1137 = vperm.xlu0 %3591, %v4127_v26  }
 0x135   : > { %vm767_vm4 = vcmp.eq.s32.totalorder %v4153_v36, %v4596_v25 }
 0x136   : > { %v676_v52 = vpop.permute.xlu1 %675 }
 0x137   : > { %3567 = vset.pattern.permute.xlu1 %v3693_v27  ;;  %3169 = vmatmul.mubr.msk.f32.gmra.mxu0 %vm1148_vm7, %v3690_v44  ;;  %vm764_vm13 = vcmp.eq.s32.totalorder %v4153_v36, %v676_v52 }
 0x138   : > { %717 = vperm.xlu1 %3567, %v3610_v7   ;;  %v4605_v28 = vpop.permute.xlu0 %696  ;;  %1903 = vmatprep.mubr.f32.mxu0 %v1245_v21 }
 0x139   : > { %3595 = vset.pattern.permute.xlu0 %v3693_v27 }
 0x13a   : > { %756 = vperm.xlu0 %3595, %v4140_v30  }
 0x13b   : > { %v871_v26 = vpop.permute.xlu1 %870  ;;  %3170 = vmatmul.mubr.msk.f32.gmra.mxu0 %vm1149_vm8, %v3690_v44 }
 0x13c   : > { %3568 = vset.pattern.permute.xlu1 %v3691_v50  ;;  %v4612_v10 = vpop.permute.xlu0 %699  ;;  %1908 = vmatprep.mubr.f32.mxu0 %v1246_v9  ;;  %vm957_vm14 = vcmp.eq.s32.totalorder %v4153_v36, %v871_v26 }
 0x13d   : > { %1101 = vperm.xlu1 %3568, %v3610_v7   ;;  %v3618_v7 = vld [vmem:[%s3795_s16 + $0xc8] sm:$0xff] }
 0x13e   : > { %759 = vperm.xlu0 %3595, %v4156_v38   ;;  %v1247_v38 = vld [vmem:[%s4543_s7 + $0x30] sm:$0xff] }
 0x140   : > { %v679_v14 = vpop.permute.xlu1 %678  ;;  %v4615_v15 = vpop.permute.xlu0 %711 }
 0x141   : > { %3569 = vset.pattern.permute.xlu1 %v3693_v27  ;;  %vm765_vm15 = vcmp.eq.s32.totalorder %v4153_v36, %v679_v14  ;;  %v1253_v14 = vld [vmem:[%s4543_s7 + $0x60] sm:$0xff] }
 0x142   : > { %720 = vperm.xlu1 %3569, %v3611_v60  }
 0x144   : > { %v4619_v30 = vpop.permute.xlu0 %714 }
 0x145   : > { %v874_v37 = vpop.permute.xlu1 %873 }
 0x146   : > { %3570 = vset.pattern.permute.xlu1 %v3692_v58  ;;  %vm958_vm0 = vcmp.eq.s32.totalorder %v4153_v36, %v874_v37 }
 0x147   : > { %915 = vperm.xlu1 %3570, %v3612_v18  }
 0x149   : > { %v865_v31 = vpop.permute.xlu0 %864 }
 0x14a   : > { %vm955_vm9 = vcmp.eq.s32.totalorder %v4153_v36, %v865_v31  ;;  %v1066_v20 = vpop.permute.xlu1 %1065 }
 0x14b   : > { %vm1150_vm11 = vcmp.eq.s32.totalorder %v4153_v36, %v1066_v20  ;;  %3571 = vset.pattern.permute.xlu1 %v3693_v27  ;;  %3106 = vmatprep.mubr.msk.f32.mxu1 %vm955_vm9, %v3690_v44  ;;  %vm1153_vm9 = vcmp.eq.s32.totalorder %v4153_v36, %v4564_v57 }
 0x14c   : > { %723 = vperm.xlu1 %3571, %v3612_v18   ;;  %3107 = vmatmul.mubr.msk.f32.gmra.mxu1 %vm763_vm10, %v3690_v44 }
 0x14d   : > { %3171 = vmatmul.mubr.msk.f32.gmra.mxu0 %vm1150_vm11, %v3690_v44  ;;  %v868_v16 = vpop.permute.xlu0 %867  ;;  %vm1154_vm11 = vcmp.eq.s32.totalorder %v4153_v36, %v4567_v56 }
 0x14e   : > { %vm956_vm12 = vcmp.eq.s32.totalorder %v4153_v36, %v868_v16  ;;  %1913 = vmatprep.mubr.f32.mxu0 %v1247_v38  ;;  %v3619_v38 = vld [vmem:[%s3795_s16 + $0xd0] sm:$0xff] }
 0x14f   : > { %v877_v49 = vpop.permute.xlu1 %876  ;;  %3108 = vmatprep.mubr.msk.f32.mxu1 %vm956_vm12, %v3690_v44 }
 0x150   : > { %3572 = vset.pattern.permute.xlu1 %v3692_v58  ;;  %3109 = vmatmul.mubr.msk.f32.gmra.mxu1 %vm764_vm13, %v3690_v44  ;;  %vm959_vm3 = vcmp.eq.s32.totalorder %v4153_v36, %v877_v49 }
 0x151   : > { %918 = vperm.xlu1 %3572, %v3613_v23   ;;  %3110 = vmatprep.mubr.msk.f32.mxu1 %vm957_vm14, %v3690_v44  ;;  %v880_v51 = vpop.permute.xlu0 %879  ;;  %vm771_vm14 = vcmp.eq.s32.totalorder %v4153_v36, %v4605_v28 }
 0x152   : > { %vm960_vm5 = vcmp.eq.s32.totalorder %v4153_v36, %v880_v51 }
 0x154   : > { %v1069_v24 = vpop.permute.xlu1 %1068  ;;  %3111 = vmatmul.mubr.msk.f32.gmra.mxu1 %vm765_vm15, %v3690_v44 }
 0x155   : > { %vm1151_vm2 = vcmp.eq.s32.totalorder %v4153_v36, %v1069_v24  ;;  %3573 = vset.pattern.permute.xlu1 %v3691_v50  ;;  %3112 = vmatprep.mubr.msk.f32.mxu1 %vm958_vm0, %v3690_v44  ;;  %v883_v33 = vpop.permute.xlu0 %882 }
 0x156   : > { %1110 = vperm.xlu1 %3573, %v3613_v23   ;;  %3172 = vmatmul.mubr.msk.f32.gmra.mxu0 %vm1151_vm2, %v3690_v44  ;;  %vm961_vm6 = vcmp.eq.s32.totalorder %v4153_v36, %v883_v33 }
 0x157   : > { %1918 = vmatprep.mubr.f32.mxu0 %v1248_v43  ;;  %v1254_v43 = vld [vmem:[%s4543_s7 + $0x68] sm:$0xff] }
 0x158   : > { %3113 = vmatmul.mubr.msk.f32.gmra.mxu1 %vm766_vm1, %v3690_v44  ;;  %vm772_vm1 = vcmp.eq.s32.totalorder %v4153_v36, %v4612_v10 }
 0x159   : > { %v688_v29 = vpop.permute.xlu1 %687  ;;  %3114 = vmatprep.mubr.msk.f32.mxu1 %vm959_vm3, %v3690_v44  ;;  %v895_v3 = vpop.permute.xlu0 %894 }
 0x15a   : > { %3574 = vset.pattern.permute.xlu1 %v3692_v58  ;;  %vm768_vm7 = vcmp.eq.s32.totalorder %v4153_v36, %v688_v29  ;;  %vm965_vm2 = vcmp.eq.s32.totalorder %v4153_v36, %v895_v3  ;;  %v2091_v3 = vld [vmem:[%s5217_s3 + $0x78] sm:$0xff] }
 0x15b   : > { %921 = vperm.xlu1 %3574, %v3614_v34   ;;  %3321 = vmatprep.subr.mxu1 %v2091_v3 }
 0x15c   : > { %v4657_v35 = vpop.f32.mrf.mxu0  ;;  %3115 = vmatmul.mubr.msk.f32.gmra.mxu1 %vm767_vm4, %v3690_v44 }
 0x15d   : > { %3116 = vmatprep.mubr.msk.f32.mxu1 %vm960_vm5, %v3690_v44  ;;  %v4692_v22 = vpop.permute.xlu0 %897  ;;  %3322 = vmatpush3.msra.mxu1 %v2091_v3 }
 0x15e   : > { %v1072_v11 = vpop.permute.xlu1 %1071  ;;  %v1437_v46 = vpop.f32.mrf.mxu0  ;;  %vm966_vm5 = vcmp.eq.s32.totalorder %v4153_v36, %v4692_v22  ;;  %v2089_v22 = vld [vmem:[%s5217_s3 + $0x68] sm:$0xff] }
 0x15f   : > { %vm1152_vm8 = vcmp.eq.s32.totalorder %v4153_v36, %v1072_v11  ;;  %3575 = vset.pattern.permute.xlu1 %v3691_v50  ;;  %v1255_v46 = vld [vmem:[%s4543_s7 + $0x70] sm:$0xff] }
 0x160   : > { %1113 = vperm.xlu1 %3575, %v3614_v34   ;;  %v4666_v2 = vpop.f32.mrf.mxu0  ;;  %3117 = vmatmul.mubr.msk.f32.gmra.mxu1 %vm768_vm7, %v3690_v44 }
 0x161   : > { %3173 = vmatmul.mubr.msk.f32.gmra.mxu0 %vm1152_vm8, %v3690_v44  ;;  %3118 = vmatprep.mubr.msk.f32.mxu1 %vm961_vm6, %v3690_v44  ;;  %v4704_v61 = vpop.permute.xlu0 %909 }
 0x162   : > { %v1442_v53 = vpop.f32.mrf.mxu0  ;;  %1923 = vmatprep.mubr.f32.mxu0 %v1249_v6  ;;  %v3620_v6 = vld [vmem:[%s3795_s16 + $0xd8] sm:$0xff] }
 0x163   : > { %v691_v19 = vpop.permute.xlu1 %690 }
 0x164   : > { %vm769_vm10 = vcmp.eq.s32.totalorder %v4153_v36, %v691_v19  ;;  %3576 = vset.pattern.permute.xlu1 %v3693_v27  ;;  %v4675_v54 = vpop.f32.mrf.mxu0  ;;  %v1256_v19 = vld [vmem:[%s4543_s7 + $0x78] sm:$0xff] }
 0x165   : > { %732 = vperm.xlu1 %3576, %v3615_v63   ;;  %3119 = vmatmul.mubr.msk.f32.gmra.mxu1 %vm769_vm10, %v3690_v44  ;;  %v4717_v4 = vpop.permute.xlu0 %912 }
 0x166   : > { %v1447_v39 = vpop.f32.mrf.mxu0  ;;  %3174 = vmatmul.mubr.msk.f32.gmra.mxu0 %vm1153_vm9, %v3690_v44 }
 0x167   : > { %1928 = vmatprep.mubr.f32.mxu0 %v1250_v13 }
 0x168   : > { %v886_v41 = vpop.permute.xlu1 %885  ;;  %v4683_v55 = vpop.f32.mrf.mxu0 }
 0x169   : > { %vm962_vm12 = vcmp.eq.s32.totalorder %v4153_v36, %v886_v41  ;;  %3577 = vset.pattern.permute.xlu1 %v3691_v50  ;;  %v4729_v9 = vpop.permute.xlu0 %924 }
 0x16a   : > { %1116 = vperm.xlu1 %3577, %v3615_v63   ;;  %v1452_v5 = vpop.f32.mrf.mxu0  ;;  %3120 = vmatprep.mubr.msk.f32.mxu1 %vm962_vm12, %v3690_v44 }
 0x16b   : > { %3175 = vmatmul.mubr.msk.f32.gmra.mxu0 %vm1154_vm11, %v3690_v44 }
 0x16c   : > { %v4690_v45 = vpop.f32.mrf.mxu0  ;;  %1933 = vmatprep.mubr.f32.mxu0 %v1251_v42  ;;  %v2090_v42 = vld [vmem:[%s5217_s3 + $0x70] sm:$0xff] }
 0x16d   : > { %v694_v47 = vpop.permute.xlu1 %693  ;;  %3323 = vmatprep.subr.mxu1 %v2090_v42 }
 0x16e   : > { %vm770_vm13 = vcmp.eq.s32.totalorder %v4153_v36, %v694_v47  ;;  %3579 = vset.pattern.permute.xlu1 %v3693_v27  ;;  %v1457_v57 = vpop.f32.mrf.mxu0  ;;  %v4740_v18 = vpop.permute.xlu0 %927  ;;  %3324 = vmatpush3.msra.mxu1 %v2090_v42 }
 0x16f   : > { %735 = vperm.xlu1 %3579, %v3616_v48   ;;  %3121 = vmatmul.mubr.msk.f32.gmra.mxu1 %vm770_vm13, %v3690_v44  ;;  %v3621_v57 = vld [vmem:[%s3795_s16 + $0xe0] sm:$0xff] }
 0x170   : > { %v4698_v56 = vpop.f32.mrf.mxu0  ;;  %3325 = vmatprep.subr.mxu1 %v2089_v22 }
 0x171   : > { %3326 = vmatpush3.msra.mxu1 %v2089_v22  ;;  %v2077_v22 = vld [vmem:[%s5217_s3 + $0x8] sm:$0xff] }
 0x172   : > { %v889_v8 = vpop.permute.xlu1 %888  ;;  %v1462_v59 = vpop.f32.mrf.mxu0 }
 0x173   : > { %vm963_vm15 = vcmp.eq.s32.totalorder %v4153_v36, %v889_v8  ;;  %3580 = vset.pattern.permute.xlu1 %v3692_v58  ;;  %v2088_v8 = vld [vmem:[%s5217_s3 + $0x60] sm:$0xff] }
 0x174   : > { %930 = vperm.xlu1 %3580, %v3617_v40   ;;  %v4707_v12 = vpop.f32.mrf.mxu0  ;;  %3122 = vmatprep.mubr.msk.f32.mxu1 %vm963_vm15, %v3690_v44 }
 0x175   : > { %3123 = vmatmul.mubr.msk.f32.gmra.mxu1 %vm771_vm14, %v3690_v44  ;;  %v1090_v24 = vpop.permute.xlu0 %1089  ;;  %3327 = vmatprep.subr.mxu1 %v2088_v8  ;;  %vm776_vm14 = vcmp.eq.s32.totalorder %v4153_v36, %v4615_v15  ;;  %v2085_v15 = vld [vmem:[%s5217_s3 + $0x48] sm:$0xff] }
 0x176   : > { %v1467_v17 = vpop.f32.mrf.mxu0  ;;  %vm1158_vm8 = vcmp.eq.s32.totalorder %v4153_v36, %v1090_v24  ;;  %3328 = vmatpush3.msra.mxu1 %v2088_v8  ;;  %v2076_v8 = vld [vmem:[%s5217_s3] sm:$0xff] }
 0x177   : > { %v1081_v62 = vpop.permute.xlu1 %1080  ;;  %v2087_v17 = vld [vmem:[%s5217_s3 + $0x58] sm:$0xff] }
 0x178   : > { %vm1155_vm0 = vcmp.eq.s32.totalorder %v4153_v36, %v1081_v62  ;;  %3581 = vset.pattern.permute.xlu1 %v3693_v27  ;;  %v4714_v1 = vpop.f32.mrf.mxu0  ;;  %3329 = vmatprep.subr.mxu1 %v2087_v17 }
 0x179   : > { %738 = vperm.xlu1 %3581, %v3617_v40   ;;  %3176 = vmatmul.mubr.msk.f32.gmra.mxu0 %vm1155_vm0, %v3690_v44  ;;  %v1093_v34 = vpop.permute.xlu0 %1092  ;;  %vm970_vm0 = vcmp.eq.s32.totalorder %v4153_v36, %v4704_v61 }
 0x17a   : > { %v1472_v25 = vpop.f32.mrf.mxu0  ;;  %1938 = vmatprep.mubr.f32.mxu0 %v1252_v0  ;;  %vm1159_vm10 = vcmp.eq.s32.totalorder %v4153_v36, %v1093_v34  ;;  %v3622_v0 = vld [vmem:[%s3795_s16 + $0xe8] sm:$0xff]  ;;  %3330 = vmatpush3.msra.mxu1 %v2087_v17 }
 0x17b   : > { %v2086_v25 = vld [vmem:[%s5217_s3 + $0x50] sm:$0xff] }
 0x17c   : > { %v892_v21 = vpop.permute.xlu1 %891  ;;  %v4721_v52 = vpop.f32.mrf.mxu0  ;;  %3331 = vmatprep.subr.mxu1 %v2086_v25 }
 0x17d   : > { %vm964_vm3 = vcmp.eq.s32.totalorder %v4153_v36, %v892_v21  ;;  %3583 = vset.pattern.permute.xlu1 %v3692_v58  ;;  %3332 = vmatpush3.msra.mxu1 %v2086_v25 }
 0x17e   : > { %933 = vperm.xlu1 %3583, %v3618_v7   ;;  %v1477_v28 = vpop.f32.mrf.mxu0  ;;  %3124 = vmatprep.mubr.msk.f32.mxu1 %vm964_vm3, %v3690_v44 }
 0x17f   : > { %3125 = vmatmul.mubr.msk.f32.gmra.mxu1 %vm772_vm1, %v3690_v44  ;;  %3333 = vmatprep.subr.mxu1 %v2085_v15 }
 0x180   : > { %v4731_v26 = vpop.f32.mrf.mxu0  ;;  %3126 = vmatprep.mubr.msk.f32.mxu1 %vm965_vm2, %v3690_v44  ;;  %3334 = vmatpush3.msra.mxu1 %v2085_v15  ;;  %vm777_vm2 = vcmp.eq.s32.totalorder %v4153_v36, %v4619_v30  ;;  %v2081_v30 = vld [vmem:[%s5217_s3 + $0x28] sm:$0xff] }
 0x181   : > { %v1084_v10 = vpop.permute.xlu1 %1083 }
 0x182   : > { %vm1156_vm4 = vcmp.eq.s32.totalorder %v4153_v36, %v1084_v10  ;;  %3584 = vset.pattern.permute.xlu1 %v3691_v50  ;;  %v1482_v60 = vpop.f32.mrf.mxu0  ;;  %v1257_v10 = vld [vmem:[%s4543_s7 + $0x80] sm:$0xff] }
 0x183   : > { %1125 = vperm.xlu1 %3584, %v3618_v7   ;;  %3177 = vmatmul.mubr.msk.f32.gmra.mxu0 %vm1156_vm4, %v3690_v44  ;;  %v2084_v60 = vld [vmem:[%s5217_s3 + $0x40] sm:$0xff]  ;;  %vm971_vm4 = vcmp.eq.s32.totalorder %v4153_v36, %v4717_v4  ;;  %v2078_v4 = vld [vmem:[%s5217_s3 + $0x10] sm:$0xff] }
 0x184   : > { %v4738_v37 = vpop.f32.mrf.mxu0  ;;  %1943 = vmatprep.mubr.f32.mxu0 %v1253_v14  ;;  %3335 = vmatprep.subr.mxu1 %v2084_v60 }
 0x185   : > { %3336 = vmatpush3.msra.mxu1 %v2084_v60 }
 0x186   : > { %v703_v31 = vpop.permute.xlu1 %702  ;;  %v1487_v20 = vpop.f32.mrf.mxu0 }
 0x187   : > { %vm773_vm6 = vcmp.eq.s32.totalorder %v4153_v36, %v703_v31  ;;  %3585 = vset.pattern.permute.xlu1 %v3692_v58 }
 0x188   : > { %936 = vperm.xlu1 %3585, %v3619_v38   ;;  %v4747_v16 = vpop.f32.mrf.mxu0  ;;  %3127 = vmatmul.mubr.msk.f32.gmra.mxu1 %vm773_vm6, %v3690_v44 }
 0x189   : > { %3128 = vmatprep.mubr.msk.f32.mxu1 %vm966_vm5, %v3690_v44 }
 0x18a   : > { %v1492_v49 = vpop.f32.mrf.mxu0 }
 0x18b   : > { %v1087_v23 = vpop.permute.xlu1 %1086  ;;  %v3623_v49 = vld [vmem:[%s3795_s16 + $0xf0] sm:$0xff] }
 0x18c   : > { %vm1157_vm7 = vcmp.eq.s32.totalorder %v4153_v36, %v1087_v23  ;;  %3586 = vset.pattern.permute.xlu1 %v3691_v50  ;;  %v4754_v51 = vpop.f32.mrf.mxu0  ;;  %v2082_v23 = vld [vmem:[%s5217_s3 + $0x30] sm:$0xff] }
 0x18d   : > { %1128 = vperm.xlu1 %3586, %v3619_v38   ;;  %3178 = vmatmul.mubr.msk.f32.gmra.mxu0 %vm1157_vm7, %v3690_v44 }
 0x18e   : > { %v1497_v29 = vpop.f32.mrf.mxu0  ;;  %1948 = vmatprep.mubr.f32.mxu0 %v1254_v43 }
 0x18f   : > { %v1258_v29 = vld [vmem:[%s4543_s7 + $0x88] sm:$0xff] }
 0x190   : > { %v706_v33 = vpop.permute.xlu1 %705  ;;  %v4758_v11 = vpop.f32.mrf.mxu0 }
 0x191   : > { %vm774_vm9 = vcmp.eq.s32.totalorder %v4153_v36, %v706_v33  ;;  %3588 = vset.pattern.permute.xlu1 %v3693_v27  ;;  %3179 = vmatmul.mubr.msk.f32.gmra.mxu0 %vm1158_vm8, %v3690_v44  ;;  %v2080_v33 = vld [vmem:[%s5217_s3 + $0x20] sm:$0xff] }
 0x192   : > { %747 = vperm.xlu1 %3588, %v3620_v6   ;;  %v1502_v53 = vpop.f32.mrf.mxu0  ;;  %3129 = vmatmul.mubr.msk.f32.gmra.mxu1 %vm774_vm9, %v3690_v44 }
 0x193   : > { %1953 = vmatprep.mubr.f32.mxu0 %v1255_v46  ;;  %v1105_v46 = vpop.permute.xlu0 %1104 }
 0x194   : > { %v4768_v13 = vpop.f32.mrf.mxu0  ;;  %vm1163_vm7 = vcmp.eq.s32.totalorder %v4153_v36, %v1105_v46  ;;  %v1262_v46 = vld [vmem:[%s4543_s7 + $0xa8] sm:$0xff] }
 0x195   : > { %v901_v63 = vpop.permute.xlu1 %900  ;;  %3180 = vmatmul.mubr.msk.f32.gmra.mxu0 %vm1159_vm10, %v3690_v44 }
 0x196   : > { %vm967_vm11 = vcmp.eq.s32.totalorder %v4153_v36, %v901_v63  ;;  %3589 = vset.pattern.permute.xlu1 %v3691_v50  ;;  %v1507_v39 = vpop.f32.mrf.mxu0  ;;  %1958 = vmatprep.mubr.f32.mxu0 %v1256_v19  ;;  %v2079_v19 = vld [vmem:[%s5217_s3 + $0x18] sm:$0xff] }
 0x197   : > { %1131 = vperm.xlu1 %3589, %v3620_v6   ;;  %3130 = vmatprep.mubr.msk.f32.mxu1 %vm967_vm11, %v3690_v44  ;;  %v3624_v39 = vld [vmem:[%s3795_s16 + $0xf8] sm:$0xff]  ;;  %v1108_v42 = vpop.permute.xlu0 %1107  ;;  %s3625_s16 = scalar_lea.vmem %s2799_s22, 32 }
 0x198   : > { %v4777_v41 = vpop.f32.mrf.mxu0  ;;  %vm1164_vm9 = vcmp.eq.s32.totalorder %v4153_v36, %v1108_v42  ;;  %p3626_p11 = scmp.ne.s32.totalorder %s2799_s22, %s3625_s16  ;;  %p3633_p1 = scmp.lt.s32.totalorder %s3631_s8, %s3625_s16 }
 0x19a   : > { %v709_v5 = vpop.permute.xlu1 %708  ;;  %v1512_v47 = vpop.f32.mrf.mxu0  ;;  %p3627_p12 = pnand %p3626_p11, %p3761_p5  ;;  %p3634_p2 = por %p3633_p1, %p3632_p0 }
 0x19b   : > { %vm775_vm12 = vcmp.eq.s32.totalorder %v4153_v36, %v709_v5  ;;  %3590 = vset.pattern.permute.xlu1 %v3693_v27  ;;  %v1259_v47 = vld [vmem:[%s4543_s7 + $0x90] sm:$0xff] }
 0x19c   : > { %750 = vperm.xlu1 %3590, %v3621_v57   ;;  %v4788_v48 = vpop.f32.mrf.mxu0  ;;  %3131 = vmatmul.mubr.msk.f32.gmra.mxu1 %vm775_vm12, %v3690_v44  ;;  %p3628_p13 = pneg %p3627_p12 }
 0x19e   : > { %v1517_v59 = vpop.f32.mrf.mxu0  ;;  %p3635_p3 = pnand %p3634_p2, %p3628_p13 }
 0x19f   : > { %v904_v40 = vpop.permute.xlu1 %903 }
 0x1a0   : > { %vm968_vm13 = vcmp.eq.s32.totalorder %v4153_v36, %v904_v40  ;;  %3592 = vset.pattern.permute.xlu1 %v3692_v58  ;;  %v4799_v62 = vpop.f32.mrf.mxu0  ;;  %v1260_v40 = vld [vmem:[%s4543_s7 + $0x98] sm:$0xff] }
 0x1a1   : > { %945 = vperm.xlu1 %3592, %v3622_v0   ;;  %3132 = vmatprep.mubr.msk.f32.mxu1 %vm968_vm13, %v3690_v44 }
 0x1a2   : > { %v1522_v21 = vpop.f32.mrf.mxu0  ;;  %3133 = vmatmul.mubr.msk.f32.gmra.mxu1 %vm776_vm14, %v3690_v44 }
 0x1a4   : > { %v1096_v7 = vpop.permute.xlu1 %1095  ;;  %v4809_v28 = vpop.f32.mrf.mxu0 }
 0x1a5   : > { %vm1160_vm15 = vcmp.eq.s32.totalorder %v4153_v36, %v1096_v7  ;;  %3593 = vset.pattern.permute.xlu1 %v3693_v27  ;;  %v2083_v27 = vld [vmem:[%s5217_s3 + $0x38] sm:$0xff]  ;;  %v1261_v7 = vld [vmem:[%s4543_s7 + $0xa0] sm:$0xff] }
 0x1a6   : > { %753 = vperm.xlu1 %3593, %v3622_v0   ;;  %v1527_v14 = vpop.f32.mrf.mxu0  ;;  %3181 = vmatmul.mubr.msk.f32.gmra.mxu0 %vm1160_vm15, %v3690_v44  ;;  %v4884_v0 = vpop.permute.xlu0 %1119 }
 0x1a7   : > { %1963 = vmatprep.mubr.f32.mxu0 %v1257_v10  ;;  %3337 = vmatprep.subr.mxu1 %v2083_v27 }
 0x1a8   : > { %v4821_v31 = vpop.f32.mrf.mxu0  ;;  %3338 = vmatpush3.msra.mxu1 %v2083_v27 }
 0x1a9   : > { %v907_v20 = vpop.permute.xlu1 %906  ;;  %3339 = vmatprep.subr.mxu1 %v2082_v23 }
 0x1aa   : > { %vm969_vm1 = vcmp.eq.s32.totalorder %v4153_v36, %v907_v20  ;;  %3594 = vset.pattern.permute.xlu1 %v3692_v58  ;;  %v1532_v38 = vpop.f32.mrf.mxu0  ;;  %3340 = vmatpush3.msra.mxu1 %v2082_v23  ;;  %v4895_v14 = vpop.permute.xlu0 %1122 }
 0x1ab   : > { %948 = vperm.xlu1 %3594, %v3623_v49   ;;  %3134 = vmatprep.mubr.msk.f32.mxu1 %vm969_vm1, %v3690_v44  ;;  %vm975_vm1 = vcmp.eq.s32.totalorder %v4153_v36, %v4729_v9 }
 0x1ac   : > { %v4837_v24 = vpop.f32.mrf.mxu0  ;;  %3135 = vmatmul.mubr.msk.f32.gmra.mxu1 %vm777_vm2, %v3690_v44  ;;  %3341 = vmatprep.subr.mxu1 %v2081_v30 }
 0x1ad   : > { %3136 = vmatprep.mubr.msk.f32.mxu1 %vm970_vm0, %v3690_v44  ;;  %3342 = vmatpush3.msra.mxu1 %v2081_v30 }
 0x1ae   : > { %v1099_v61 = vpop.permute.xlu1 %1098  ;;  %v1537_v43 = vpop.f32.mrf.mxu0  ;;  %3343 = vmatprep.subr.mxu1 %v2080_v33 }
 0x1af   : > { %vm1161_vm3 = vcmp.eq.s32.totalorder %v4153_v36, %v1099_v61  ;;  %3596 = vset.pattern.permute.xlu1 %v3691_v50  ;;  %3344 = vmatpush3.msra.mxu1 %v2080_v33 }
 0x1b0   : > { %1140 = vperm.xlu1 %3596, %v3623_v49   ;;  %v4847_v34 = vpop.f32.mrf.mxu0  ;;  %3182 = vmatmul.mubr.msk.f32.gmra.mxu0 %vm1161_vm3, %v3690_v44  ;;  %v727_v49 = vpop.permute.xlu0 %726 }
 0x1b1   : > { %1968 = vmatprep.mubr.f32.mxu0 %v1258_v29  ;;  %3345 = vmatprep.subr.mxu1 %v2079_v19  ;;  %vm781_vm12 = vcmp.eq.s32.totalorder %v4153_v36, %v727_v49 }
 0x1b2   : > { %v1542_v6 = vpop.f32.mrf.mxu0  ;;  %3346 = vmatpush3.msra.mxu1 %v2079_v19 }
 0x1b3   : > { %v718_v53 = vpop.permute.xlu1 %717  ;;  %3347 = vmatprep.subr.mxu1 %v2078_v4 }
 0x1b4   : > { %vm778_vm5 = vcmp.eq.s32.totalorder %v4153_v36, %v718_v53  ;;  %3597 = vset.pattern.permute.xlu1 %v3692_v58  ;;  %v4860_v63 = vpop.f32.mrf.mxu0  ;;  %3348 = vmatpush3.msra.mxu1 %v2078_v4  ;;  %v730_v53 = vpop.permute.xlu0 %729 }
 0x1b5   : > { %951 = vperm.xlu1 %3597, %v3624_v39   ;;  %3137 = vmatmul.mubr.msk.f32.gmra.mxu1 %vm778_vm5, %v3690_v44  ;;  %vm782_vm15 = vcmp.eq.s32.totalorder %v4153_v36, %v730_v53 }
 0x1b6   : > { %v1547_v3 = vpop.f32.mrf.mxu0  ;;  %3138 = vmatprep.mubr.msk.f32.mxu1 %vm971_vm4, %v3690_v44  ;;  %3349 = vmatprep.subr.mxu1 %v2077_v22  ;;  %vm976_vm4 = vcmp.eq.s32.totalorder %v4153_v36, %v4740_v18 }
 0x1b7   : > { %3350 = vmatpush3.msra.mxu1 %v2077_v22 }
 0x1b8   : > { %v1102_v5 = vpop.permute.xlu1 %1101  ;;  %v4868_v58 = vpop.f32.mrf.mxu0  ;;  %3351 = vmatprep.subr.mxu1 %v2076_v8 }
 0x1b9   : > { %vm1162_vm6 = vcmp.eq.s32.totalorder %v4153_v36, %v1102_v5  ;;  %3598 = vset.pattern.permute.xlu1 %v3691_v50  ;;  %3352 = vmatpush3.msra.mxu1 %v2076_v8 }
 0x1ba   : > { %1143 = vperm.xlu1 %3598, %v3624_v39   ;;  %v1552_v57 = vpop.f32.mrf.mxu0  ;;  %3183 = vmatmul.mubr.msk.f32.gmra.mxu0 %vm1162_vm6, %v3690_v44  ;;  %vm1168_vm6 = vcmp.eq.s32.totalorder %v4153_v36, %v4884_v0  ;;  %v1266_v0 = vld [vmem:[%s4543_s7 + $0xc8] sm:$0xff] }
 0x1bb   : > { %1973 = vmatprep.mubr.f32.mxu0 %v1259_v47  ;;  %v1263_v47 = vld [vmem:[%s4543_s7 + $0xb0] sm:$0xff] }
 0x1bc   : > { %v4881_v59 = vpop.f32.mrf.mxu0 }
 0x1bd   : > { %v721_v17 = vpop.permute.xlu1 %720 }
 0x1be   : > { %vm779_vm8 = vcmp.eq.s32.totalorder %v4153_v36, %v721_v17  ;;  %v1557_v25 = vpop.f32.mrf.mxu0  ;;  %3184 = vmatmul.mubr.msk.f32.gmra.mxu0 %vm1163_vm7, %v3690_v44 }
 0x1bf   : > { %3139 = vmatmul.mubr.msk.f32.gmra.mxu1 %vm779_vm8, %v3690_v44  ;;  %1978 = vmatprep.mubr.f32.mxu0 %v1260_v40  ;;  %v1264_v40 = vld [vmem:[%s4543_s7 + $0xb8] sm:$0xff]  ;;  %vm1169_vm8 = vcmp.eq.s32.totalorder %v4153_v36, %v4895_v14 }
 0x1c0   : > { %v4890_v21 = vpop.f32.mrf.mxu0 }
 0x1c2   : > { %v916_v10 = vpop.permute.xlu1 %915  ;;  %v1562_v15 = vpop.f32.mrf.mxu0  ;;  %3185 = vmatmul.mubr.msk.f32.gmra.mxu0 %vm1164_vm9, %v3690_v44 }
 0x1c3   : > { %vm972_vm10 = vcmp.eq.s32.totalorder %v4153_v36, %v916_v10  ;;  %1983 = vmatprep.mubr.f32.mxu0 %v1261_v7  ;;  %v1265_v7 = vld [vmem:[%s4543_s7 + $0xc0] sm:$0xff] }
 0x1c4   : > { %v4897_v60 = vpop.f32.mrf.mxu0  ;;  %3140 = vmatprep.mubr.msk.f32.mxu1 %vm972_vm10, %v3690_v44 }
 0x1c6   : > { %v1567_v20 = vpop.f32.mrf.mxu0 }
 0x1c7   : > { %v724_v27 = vpop.permute.xlu1 %723 }
 0x1c8   : > { %vm780_vm11 = vcmp.eq.s32.totalorder %v4153_v36, %v724_v27  ;;  %v4901_v38 = vpop.f32.mrf.mxu0 }
 0x1c9   : > { %3141 = vmatmul.mubr.msk.f32.gmra.mxu1 %vm780_vm11, %v3690_v44 }
 0x1ca   : > { %v1572_v23 = vpop.f32.mrf.mxu0 }
 0x1cc   : > { %v919_v61 = vpop.permute.xlu1 %918  ;;  %v4904_v43 = vpop.f32.mrf.mxu0 }
 0x1cd   : > { %vm973_vm13 = vcmp.eq.s32.totalorder %v4153_v36, %v919_v61 }
 0x1ce   : > { %v1577_v29 = vpop.f32.mrf.mxu0  ;;  %3142 = vmatprep.mubr.msk.f32.mxu1 %vm973_vm13, %v3690_v44 }
 0x1cf   : > { %3143 = vmatmul.mubr.msk.f32.gmra.mxu1 %vm781_vm12, %v3690_v44 }
 0x1d0   : > { %v4910_v30 = vpop.f32.mrf.mxu0 }
 0x1d1   : > { %v1111_v33 = vpop.permute.xlu1 %1110 }
 0x1d2   : > { %vm1165_vm14 = vcmp.eq.s32.totalorder %v4153_v36, %v1111_v33  ;;  %v1582_v6 = vpop.f32.mrf.mxu0 }
 0x1d3   : > { %3186 = vmatmul.mubr.msk.f32.gmra.mxu0 %vm1165_vm14, %v3690_v44 }
 0x1d4   : > { %v4915_v19 = vpop.f32.mrf.mxu0  ;;  %1988 = vmatprep.mubr.f32.mxu0 %v1262_v46 }
 0x1d6   : > { %v922_v39 = vpop.permute.xlu1 %921  ;;  %v1587_v4 = vpop.f32.mrf.mxu0 }
 0x1d7   : > { %vm974_vm0 = vcmp.eq.s32.totalorder %v4153_v36, %v922_v39 }
 0x1d8   : > { %v4919_v3 = vpop.f32.mrf.mxu0  ;;  %3144 = vmatprep.mubr.msk.f32.mxu1 %vm974_vm0, %v3690_v44 }
 0x1d9   : > { %3145 = vmatmul.mubr.msk.f32.gmra.mxu1 %vm782_vm15, %v3690_v44 }
 0x1da   : > { %v1592_v42 = vpop.f32.mrf.mxu0  ;;  %3146 = vmatprep.mubr.msk.f32.mxu1 %vm975_vm1, %v3690_v44 }
 0x1db   : > { %v1114_v5 = vpop.permute.xlu1 %1113 }
 0x1dc   : > { %vm1166_vm2 = vcmp.eq.s32.totalorder %v4153_v36, %v1114_v5 }
 0x1dd   : > { %3187 = vmatmul.mubr.msk.f32.gmra.mxu0 %vm1166_vm2, %v3690_v44 }
 0x1de   : > { %v1885_v22 = vpop.f32.mrf.mxu0  ;;  %1993 = vmatprep.mubr.f32.mxu0 %v1263_v47 }
 0x1e0   : > { %v733_v57 = vpop.permute.xlu1 %732  ;;  %v1887_v8 = vpop.f32.mrf.mxu0 }
 0x1e1   : > { %vm783_vm3 = vcmp.eq.s32.totalorder %v4153_v36, %v733_v57 }
 0x1e2   : > { %3147 = vmatmul.mubr.msk.f32.gmra.mxu1 %vm783_vm3, %v3690_v44 }
 0x1e3   : > { %3148 = vmatprep.mubr.msk.f32.mxu1 %vm976_vm4, %v3690_v44 }
 0x1e5   : > { %v1117_v9 = vpop.permute.xlu1 %1116 }
 0x1e6   : > { %vm1167_vm5 = vcmp.eq.s32.totalorder %v4153_v36, %v1117_v9 }
 0x1e7   : > { %3188 = vmatmul.mubr.msk.f32.gmra.mxu0 %vm1167_vm5, %v3690_v44 }
 0x1e8   : > { %v1890_v17 = vpop.f32.mrf.mxu0  ;;  %1998 = vmatprep.mubr.f32.mxu0 %v1264_v40  ;;  %v1268_v40 = vld [vmem:[%s4543_s7 + $0xd8] sm:$0xff] }
 0x1e9   : > { %v1660_v25 = vpop.f32.mrf.mxu1 }
 0x1ea   : > { %v736_v10 = vpop.permute.xlu1 %735  ;;  %v1661_v18 = vadd.f32 %v1660_v25, %v4657_v35  ;;  %v1892_v15 = vpop.f32.mrf.mxu0 }
 0x1eb   : > { %vm784_vm7 = vcmp.eq.s32.totalorder %v4153_v36, %v736_v10  ;;  %3189 = vmatmul.mubr.msk.f32.gmra.mxu0 %vm1168_vm6, %v3690_v44  ;;  %v1662_v20 = vpop.f32.mrf.mxu1 }
 0x1ec   : > { %v4945_v27 = vadd.f32 %v1885_v22, %v1661_v18  ;;  %3149 = vmatmul.mubr.msk.f32.gmra.mxu1 %vm784_vm7, %v3690_v44  ;;  %2003 = vmatprep.mubr.f32.mxu0 %v1265_v7  ;;  %v1267_v22 = vld [vmem:[%s4543_s7 + $0xd0] sm:$0xff] }
 0x1ee   : > { %v1665_v49 = vpop.f32.mrf.mxu1 }
 0x1ef   : > { %v1666_v23 = vadd.f32 %v1665_v49, %v4666_v2  ;;  %v931_v61 = vpop.permute.xlu1 %930  ;;  %3190 = vmatmul.mubr.msk.f32.gmra.mxu0 %vm1169_vm8, %v3690_v44  ;;  %v742_v2 = vpop.permute.xlu0 %741 }
 0x1f0   : > { %vm977_vm9 = vcmp.eq.s32.totalorder %v4153_v36, %v931_v61  ;;  %2008 = vmatprep.mubr.f32.mxu0 %v1266_v0  ;;  %v1667_v35 = vpop.f32.mrf.mxu1  ;;  %vm786_vm11 = vcmp.eq.s32.totalorder %v4153_v36, %v742_v2  ;;  %v1269_v61 = vld [vmem:[%s4543_s7 + $0xe0] sm:$0xff] }
 0x1f1   : > { %v4952_v29 = vadd.f32 %v1890_v17, %v1666_v23  ;;  %3150 = vmatprep.mubr.msk.f32.mxu1 %vm977_vm9, %v3690_v44 }
 0x1f3   : > { %v4955_v14 = vpop.f32.mrf.mxu0  ;;  %v745_v42 = vpop.permute.xlu0 %744 }
 0x1f4   : > { %v739_v33 = vpop.permute.xlu1 %738  ;;  %vm787_vm14 = vcmp.eq.s32.totalorder %v4153_v36, %v745_v42 }
 0x1f5   : > { %vm785_vm10 = vcmp.eq.s32.totalorder %v4153_v36, %v739_v33  ;;  %v1897_v46 = vpop.f32.mrf.mxu0 }
 0x1f6   : > { %3151 = vmatmul.mubr.msk.f32.gmra.mxu1 %vm785_vm10, %v3690_v44 }
 0x1f7   : > { %v4959_v6 = vpop.f32.mrf.mxu0  ;;  %v940_v57 = vpop.permute.xlu0 %939 }
 0x1f8   : > { %vm980_vm0 = vcmp.eq.s32.totalorder %v4153_v36, %v940_v57 }
 0x1f9   : > { %v934_v53 = vpop.permute.xlu1 %933  ;;  %v1902_v39 = vpop.f32.mrf.mxu0 }
 0x1fa   : > { %vm978_vm12 = vcmp.eq.s32.totalorder %v4153_v36, %v934_v53  ;;  %v1270_v53 = vld [vmem:[%s4543_s7 + $0xe8] sm:$0xff] }
 0x1fb   : > { %3152 = vmatprep.mubr.msk.f32.mxu1 %vm978_vm12, %v3690_v44  ;;  %v4964_v4 = vpop.f32.mrf.mxu0  ;;  %v943_v17 = vpop.permute.xlu0 %942 }
 0x1fc   : > { %3153 = vmatmul.mubr.msk.f32.gmra.mxu1 %vm786_vm11, %v3690_v44  ;;  %vm981_vm2 = vcmp.eq.s32.totalorder %v4153_v36, %v943_v17 }
 0x1fd   : > { %v1907_v5 = vpop.f32.mrf.mxu0 }
 0x1fe   : > { %v1126_v47 = vpop.permute.xlu1 %1125 }
 0x1ff   : > { %vm1170_vm13 = vcmp.eq.s32.totalorder %v4153_v36, %v1126_v47  ;;  %v1135_v0 = vpop.permute.xlu0 %1134 }
 0x200   : > { %3191 = vmatmul.mubr.msk.f32.gmra.mxu0 %vm1170_vm13, %v3690_v44  ;;  %vm1173_vm5 = vcmp.eq.s32.totalorder %v4153_v36, %v1135_v0 }
 0x201   : > { %2013 = vmatprep.mubr.f32.mxu0 %v1267_v22  ;;  %v1271_v22 = vld [vmem:[%s4543_s7 + $0xf0] sm:$0xff] }
 0x203   : > { %v937_v8 = vpop.permute.xlu1 %936  ;;  %v1138_v33 = vpop.permute.xlu0 %1137 }
 0x204   : > { %vm979_vm15 = vcmp.eq.s32.totalorder %v4153_v36, %v937_v8  ;;  %vm1174_vm7 = vcmp.eq.s32.totalorder %v4153_v36, %v1138_v33 }
 0x205   : > { %3154 = vmatprep.mubr.msk.f32.mxu1 %vm979_vm15, %v3690_v44 }
 0x206   : > { %3155 = vmatmul.mubr.msk.f32.gmra.mxu1 %vm787_vm14, %v3690_v44 }
 0x207   : > { %3156 = vmatprep.mubr.msk.f32.mxu1 %vm980_vm0, %v3690_v44  ;;  %v757_v0 = vpop.permute.xlu0 %756  ;;  %vm2780_vm0 = vcmp.lt.s32.totalorder %v279_v32, 256 }
 0x208   : > { %v1129_v9 = vpop.permute.xlu1 %1128  ;;  %vm791_vm10 = vcmp.eq.s32.totalorder %v4153_v36, %v757_v0  ;;  %v2044_v0 = vmax.f32 %v4945_v27, 0.0 }
 0x209   : > { %vm1171_vm1 = vcmp.eq.s32.totalorder %v4153_v36, %v1129_v9 }
 0x20a   : > { %3192 = vmatmul.mubr.msk.f32.gmra.mxu0 %vm1171_vm1, %v3690_v44 }
 0x20b   : > { %2018 = vmatprep.mubr.f32.mxu0 %v1268_v40 }
 0x20c   : > { %v4979_v25 = vpop.f32.mrf.mxu1 }
 0x20d   : > { %v4981_v7 = vpop.f32.mrf.mxu0  ;;  %v748_v10 = vpop.permute.xlu1 %747 }
 0x20e   : > { %vm788_vm3 = vcmp.eq.s32.totalorder %v4153_v36, %v748_v10  ;;  %v1672_v18 = vpop.f32.mrf.mxu1 }
 0x20f   : > { %v1912_v15 = vpop.f32.mrf.mxu0  ;;  %3157 = vmatmul.mubr.msk.f32.gmra.mxu1 %vm788_vm3, %v3690_v44 }
 0x210   : > { %v1675_v20 = vpop.f32.mrf.mxu1  ;;  %3158 = vmatprep.mubr.msk.f32.mxu1 %vm981_vm2, %v3690_v44 }
 0x212   : > { %v1132_v49 = vpop.permute.xlu1 %1131  ;;  %v1677_v23 = vpop.f32.mrf.mxu1 }
 0x213   : > { %vm1172_vm4 = vcmp.eq.s32.totalorder %v4153_v36, %v1132_v49 }
 0x214   : > { %v1680_v35 = vpop.f32.mrf.mxu1  ;;  %3193 = vmatmul.mubr.msk.f32.gmra.mxu0 %vm1172_vm4, %v3690_v44 }
 0x215   : > { %2023 = vmatprep.mubr.f32.mxu0 %v1269_v61 }
 0x216   : > { %v1682_v46 = vpop.f32.mrf.mxu1  ;;  %v4991_v2 = vpop.f32.mrf.mxu0 }
 0x217   : > { %v751_v39 = vpop.permute.xlu1 %750 }
 0x218   : > { %vm789_vm6 = vcmp.eq.s32.totalorder %v4153_v36, %v751_v39  ;;  %v1685_v42 = vpop.f32.mrf.mxu1  ;;  %v1917_v5 = vpop.f32.mrf.mxu0  ;;  %3194 = vmatmul.mubr.msk.f32.gmra.mxu0 %vm1173_vm5, %v3690_v44 }
 0x219   : > { %3159 = vmatmul.mubr.msk.f32.gmra.mxu1 %vm789_vm6, %v3690_v44  ;;  %2028 = vmatprep.mubr.f32.mxu0 %v1270_v53  ;;  %v1272_v5 = vld [vmem:[%s4543_s7 + $0xf8] sm:$0xff] }
 0x21a   : > { %v1687_v47 = vpop.f32.mrf.mxu1 }
 0x21c   : > { %v946_v57 = vpop.permute.xlu1 %945  ;;  %v1690_v8 = vpop.f32.mrf.mxu1  ;;  %3195 = vmatmul.mubr.msk.f32.gmra.mxu0 %vm1174_vm7, %v3690_v44 }
 0x21d   : > { %vm982_vm8 = vcmp.eq.s32.totalorder %v4153_v36, %v946_v57  ;;  %2033 = vmatprep.mubr.f32.mxu0 %v1271_v22  ;;  %v1671_v22 = vadd.f32 %v4979_v25, %v4675_v54  ;;  %v2045_v54 = vmax.f32 %v4952_v29, 0.0  ;;  %v1686_v25 = vadd.f32 %v1685_v42, %v4698_v56 }
 0x21e   : > { %v1692_v9 = vpop.f32.mrf.mxu1  ;;  %3160 = vmatprep.mubr.msk.f32.mxu1 %vm982_vm8, %v3690_v44 }
 0x21f   : > { %v760_v9 = vpop.permute.xlu0 %759  ;;  %v1911_v29 = vadd.f32 %v4981_v7, %v1686_v25 }
 0x220   : > { %v1695_v40 = vpop.f32.mrf.mxu1  ;;  %vm792_vm14 = vcmp.eq.s32.totalorder %v4153_v36, %v760_v9 }
 0x221   : > { %v1920_v17 = vpop.f32.mrf.mxu0  ;;  %v754_v10 = vpop.permute.xlu1 %753 }
 0x222   : > { %vm790_vm9 = vcmp.eq.s32.totalorder %v4153_v36, %v754_v10  ;;  %v1697_v18 = vpop.f32.mrf.mxu1 }
 0x223   : > { %v1922_v15 = vpop.f32.mrf.mxu0  ;;  %3161 = vmatmul.mubr.msk.f32.gmra.mxu1 %vm790_vm9, %v3690_v44  ;;  %v1676_v18 = vadd.f32 %v1675_v20, %v4683_v55 }
 0x225   : > { %v1700_v49 = vpop.f32.mrf.mxu1  ;;  %v1901_v55 = vadd.f32 %v4959_v6, %v1676_v18  ;;  %v1696_v6 = vadd.f32 %v1695_v40, %v4714_v1 }
 0x226   : > { %v949_v23 = vpop.permute.xlu1 %948  ;;  %v1925_v61 = vpop.f32.mrf.mxu0 }
 0x227   : > { %vm983_vm11 = vcmp.eq.s32.totalorder %v4153_v36, %v949_v23  ;;  %v1702_v33 = vpop.f32.mrf.mxu1  ;;  %v1896_v23 = vadd.f32 %v4955_v14, %v1671_v22 }
 0x228   : > { %3162 = vmatprep.mubr.msk.f32.mxu1 %vm983_vm11, %v3690_v44  ;;  %v1927_v46 = vpop.f32.mrf.mxu0  ;;  %v1681_v33 = vadd.f32 %v1680_v35, %v4690_v45  ;;  %v1691_v45 = vadd.f32 %v1690_v8, %v4707_v12  ;;  %v1921_v12 = vadd.f32 %v1920_v17, %v1696_v6 }
 0x229   : > { %3163 = vmatmul.mubr.msk.f32.gmra.mxu1 %vm791_vm10, %v3690_v44  ;;  %v2046_v27 = vmax.f32 %v1896_v23, 0.0 }
 0x22a   : > { %v1906_v14 = vadd.f32 %v4964_v4, %v1681_v33  ;;  %v1701_v4 = vadd.f32 %v1700_v49, %v4721_v52  ;;  %v2051_v1 = vmax.f32 %v1921_v12, 0.0 }
 0x22b   : > { %v1141_v53 = vpop.permute.xlu1 %1140  ;;  %v1930_v39 = vpop.f32.mrf.mxu0 }
 0x22c   : > { %vm1175_vm12 = vcmp.eq.s32.totalorder %v4153_v36, %v1141_v53  ;;  %v2047_v53 = vmax.f32 %v1901_v55, 0.0  ;;  %v2048_v42 = vmax.f32 %v1906_v14, 0.0  ;;  %v1926_v22 = vadd.f32 %v1925_v61, %v1701_v4 }
 0x22d   : > { %3196 = vmatmul.mubr.msk.f32.gmra.mxu0 %vm1175_vm12, %v3690_v44  ;;  %v1932_v47 = vpop.f32.mrf.mxu0 }
 0x22e   : > { %2038 = vmatprep.mubr.f32.mxu0 %v1272_v5  ;;  %v1916_v5 = vadd.f32 %v4991_v2, %v1691_v45  ;;  %v2052_v2 = vmax.f32 %v1926_v22, 0.0 }
 0x22f   : > { %v1705_v57 = vpop.f32.mrf.mxu1 }
 0x230   : > { %v952_v10 = vpop.permute.xlu1 %951  ;;  %v2050_v8 = vmax.f32 %v1916_v5, 0.0 }
 0x231   : > { %vm984_vm13 = vcmp.eq.s32.totalorder %v4153_v36, %v952_v10  ;;  %v1707_v15 = vpop.f32.mrf.mxu1 }
 0x232   : > { %3164 = vmatprep.mubr.msk.f32.mxu1 %vm984_vm13, %v3690_v44 }
 0x233   : > { %3165 = vmatmul.mubr.msk.f32.gmra.mxu1 %vm792_vm14, %v3690_v44 }
 0x234   : > { %3353 = vmatprep.mubr.f32.mxu1 %v2044_v0 }
 0x235   : > { %v1144_v20 = vpop.permute.xlu1 %1143  ;;  %v1710_v46 = vpop.f32.mrf.mxu1 }
 0x236   : > { %vm1176_vm15 = vcmp.eq.s32.totalorder %v4153_v36, %v1144_v20  ;;  %v2049_v36 = vmax.f32 %v1911_v29, 0.0  ;;  %v1711_v7 = vadd.f32 %v1710_v46, %v4738_v37 }
 0x237   : > { %3197 = vmatmul.mubr.msk.f32.gmra.mxu0 %vm1176_vm15, %v3690_v44  ;;  %3354 = vmatmul.mubr.f32.vlgmr.msra.gmra.mxu1 %v2045_v54  ;;  %v1712_v35 = vpop.f32.mrf.mxu1  ;;  %v1706_v44 = vadd.f32 %v1705_v57, %v4731_v26 }
 0x238   : > { %3356 = vmatprep.mubr.f32.mxu1 %v2046_v27 }
 0x239   : > { %v1935_v56 = vpop.f32.mrf.mxu0  ;;  %v1931_v40 = vadd.f32 %v1930_v39, %v1706_v44  ;;  %v3211_v44 = vld [vmem:[%s5217_s3 + $0xe0] sm:$0xff] }
 0x23a   : > { %v1936_v18 = vadd.f32 %v1935_v56, %v1711_v7 }
 0x23b   : > { %v1937_v47 = vpop.f32.mrf.mxu0  ;;  %3357 = vmatmul.mubr.f32.gmra.mxu1 %v2047_v53  ;;  %v2053_v17 = vmax.f32 %v1931_v40, 0.0 }
 0x23c   : > { %3359 = vmatprep.mubr.f32.mxu1 %v2048_v42  ;;  %v2054_v57 = vmax.f32 %v1936_v18, 0.0  ;;  %v3214_v42 = vld [vmem:[%s5217_s3 + $0xf8] sm:$0xff] }
 0x23d   : > { %3401 = vmatprep.subr.mxu1 %v3214_v42 }
 0x23e   : > { %3402 = vmatpush3.msra.mxu1 %v3214_v42 }
 0x23f   : > { %v1715_v9 = vpop.f32.mrf.mxu1  ;;  %3360 = vmatmul.mubr.f32.gmra.mxu1 %v2049_v36 }
 0x240   : > { %3362 = vmatprep.mubr.f32.mxu1 %v2050_v8  ;;  %v1716_v52 = vadd.f32 %v1715_v9, %v4747_v16  ;;  %v3210_v9 = vld [vmem:[%s5217_s3 + $0xd8] sm:$0xff] }
 0x241   : > { %v1717_v10 = vpop.f32.mrf.mxu1 }
 0x243   : > { %v1940_v49 = vpop.f32.mrf.mxu0  ;;  %3363 = vmatmul.mubr.f32.gmra.mxu1 %v2051_v1  ;;  %v3208_v1 = vld [vmem:[%s5217_s3 + $0xc8] sm:$0xff] }
 0x244   : > { %3365 = vmatprep.mubr.f32.mxu1 %v2052_v2  ;;  %v1941_v15 = vadd.f32 %v1940_v49, %v1716_v52  ;;  %v3207_v2 = vld [vmem:[%s5217_s3 + $0xc0] sm:$0xff]  ;;  %v3206_v49 = vld [vmem:[%s5217_s3 + $0xb8] sm:$0xff] }
 0x245   : > { %v1942_v26 = vpop.f32.mrf.mxu0 }
 0x246   : > { %v2055_v0 = vmax.f32 %v1941_v15, 0.0  ;;  %v3205_v26 = vld [vmem:[%s5217_s3 + $0xb0] sm:$0xff] }
 0x247   : > { %3366 = vmatmul.mubr.f32.gmra.mxu1 %v2053_v17 }
 0x248   : > { %v1720_v61 = vpop.f32.mrf.mxu1  ;;  %3368 = vmatprep.mubr.f32.mxu1 %v2054_v57 }
 0x249   : > { %v1721_v39 = vadd.f32 %v1720_v61, %v4754_v51 }
 0x24a   : > { %v1722_v37 = vpop.f32.mrf.mxu1 }
 0x24b   : > { %3369 = vmatmul.mubr.f32.gmra.mxu1 %v2055_v0  ;;  %v3203_v0 = vld [vmem:[%s5217_s3 + $0xa0] sm:$0xff] }
 0x24d   : > { %v1945_v23 = vpop.f32.mrf.mxu0 }
 0x24e   : > { %v1946_v33 = vadd.f32 %v1945_v23, %v1721_v39  ;;  %v3202_v39 = vld [vmem:[%s5217_s3 + $0x98] sm:$0xff] }
 0x24f   : > { %v1947_v54 = vpop.f32.mrf.mxu0 }
 0x250   : > { %v2056_v55 = vmax.f32 %v1946_v33, 0.0  ;;  %v3201_v54 = vld [vmem:[%s5217_s3 + $0x90] sm:$0xff] }
 0x251   : > { %v1950_v16 = vpop.f32.mrf.mxu0 }
 0x252   : > { %v1725_v25 = vpop.f32.mrf.mxu1  ;;  %3371 = vmatprep.mubr.f32.mxu1 %v2056_v55 }
 0x253   : > { %v1726_v20 = vadd.f32 %v1725_v25, %v4758_v11  ;;  %v1952_v46 = vpop.f32.mrf.mxu0  ;;  %v3213_v11 = vld [vmem:[%s5217_s3 + $0xf0] sm:$0xff]  ;;  %v3200_v25 = vld [vmem:[%s5217_s3 + $0x88] sm:$0xff] }
 0x254   : > { %v1727_v27 = vpop.f32.mrf.mxu1  ;;  %3403 = vmatprep.subr.mxu1 %v3213_v11 }
 0x255   : > { %v1951_v14 = vadd.f32 %v1950_v16, %v1726_v20  ;;  %v1955_v45 = vpop.f32.mrf.mxu0  ;;  %3404 = vmatpush3.msra.mxu1 %v3213_v11 }
 0x257   : > { %v2057_v35 = vmax.f32 %v1951_v14, 0.0  ;;  %v1957_v53 = vpop.f32.mrf.mxu0 }
 0x259   : > { %3372 = vmatmul.mubr.f32.gmra.mxu1 %v2057_v35 }
 0x25c   : > { %v1730_v29 = vpop.f32.mrf.mxu1 }
 0x25d   : > { %v1731_v6 = vadd.f32 %v1730_v29, %v4768_v13  ;;  %v3212_v13 = vld [vmem:[%s5217_s3 + $0xe8] sm:$0xff] }
 0x25e   : > { %v1732_v51 = vpop.f32.mrf.mxu1  ;;  %3405 = vmatprep.subr.mxu1 %v3212_v13 }
 0x25f   : > { %v1956_v56 = vadd.f32 %v1955_v45, %v1731_v6  ;;  %3406 = vmatpush3.msra.mxu1 %v3212_v13 }
 0x260   : > { %3407 = vmatprep.subr.mxu1 %v3211_v44 }
 0x261   : > { %v2058_v5 = vmax.f32 %v1956_v56, 0.0  ;;  %3408 = vmatpush3.msra.mxu1 %v3211_v44 }
 0x262   : > { %v1735_v4 = vpop.f32.mrf.mxu1  ;;  %3409 = vmatprep.subr.mxu1 %v3210_v9 }
 0x263   : > { %3374 = vmatprep.mubr.f32.mxu1 %v2058_v5  ;;  %v1736_v36 = vadd.f32 %v1735_v4, %v4777_v41  ;;  %3410 = vmatpush3.msra.mxu1 %v3210_v9  ;;  %v3209_v41 = vld [vmem:[%s5217_s3 + $0xd0] sm:$0xff] }
 0x264   : > { %v1737_v47 = vpop.f32.mrf.mxu1  ;;  %3411 = vmatprep.subr.mxu1 %v3209_v41 }
 0x265   : > { %3412 = vmatpush3.msra.mxu1 %v3209_v41 }
 0x266   : > { %v1960_v12 = vpop.f32.mrf.mxu0  ;;  %3413 = vmatprep.subr.mxu1 %v3208_v1 }
 0x267   : > { %v1961_v8 = vadd.f32 %v1960_v12, %v1736_v36  ;;  %3414 = vmatpush3.msra.mxu1 %v3208_v1 }
 0x268   : > { %v1962_v22 = vpop.f32.mrf.mxu0  ;;  %3415 = vmatprep.subr.mxu1 %v3207_v2 }
 0x269   : > { %v2059_v7 = vmax.f32 %v1961_v8, 0.0  ;;  %3416 = vmatpush3.msra.mxu1 %v3207_v2 }
 0x26a   : > { %3417 = vmatprep.subr.mxu1 %v3206_v49 }
 0x26b   : > { %3375 = vmatmul.mubr.f32.gmra.mxu1 %v2059_v7 }
 0x26c   : > { %v1740_v40 = vpop.f32.mrf.mxu1  ;;  %3418 = vmatpush3.msra.mxu1 %v3206_v49 }
 0x26d   : > { %v1741_v18 = vadd.f32 %v1740_v40, %v4788_v48  ;;  %3419 = vmatprep.subr.mxu1 %v3205_v26  ;;  %v3204_v48 = vld [vmem:[%s5217_s3 + $0xa8] sm:$0xff] }
 0x26e   : > { %v1742_v10 = vpop.f32.mrf.mxu1  ;;  %3420 = vmatpush3.msra.mxu1 %v3205_v26 }
 0x26f   : > { %3421 = vmatprep.subr.mxu1 %v3204_v48 }
 0x270   : > { %v1965_v52 = vpop.f32.mrf.mxu0  ;;  %3422 = vmatpush3.msra.mxu1 %v3204_v48 }
 0x271   : > { %v1966_v17 = vadd.f32 %v1965_v52, %v1741_v18  ;;  %3423 = vmatprep.subr.mxu1 %v3203_v0 }
 0x272   : > { %v1967_v15 = vpop.f32.mrf.mxu0  ;;  %3424 = vmatpush3.msra.mxu1 %v3203_v0 }
 0x273   : > { %v2060_v57 = vmax.f32 %v1966_v17, 0.0  ;;  %3425 = vmatprep.subr.mxu1 %v3202_v39 }
 0x274   : > { %3426 = vmatpush3.msra.mxu1 %v3202_v39 }
 0x275   : > { %v1745_v61 = vpop.f32.mrf.mxu1  ;;  %3377 = vmatprep.mubr.f32.mxu1 %v2060_v57  ;;  %3427 = vmatprep.subr.mxu1 %v3201_v54 }
 0x276   : > { %v1746_v23 = vadd.f32 %v1745_v61, %v4799_v62  ;;  %3428 = vmatpush3.msra.mxu1 %v3201_v54  ;;  %v3199_v62 = vld [vmem:[%s5217_s3 + $0x80] sm:$0xff] }
 0x277   : > { %v1747_v37 = vpop.f32.mrf.mxu1  ;;  %3429 = vmatprep.subr.mxu1 %v3200_v25 }
 0x278   : > { %3430 = vmatpush3.msra.mxu1 %v3200_v25 }
 0x279   : > { %3431 = vmatprep.subr.mxu1 %v3199_v62 }
 0x27a   : > { %v1970_v33 = vpop.f32.mrf.mxu0  ;;  %3432 = vmatpush3.msra.mxu1 %v3199_v62 }
 0x27b   : > { %v1971_v55 = vadd.f32 %v1970_v33, %v1746_v23 }
 0x27c   : > { %v1972_v16 = vpop.f32.mrf.mxu0 }
 0x27d   : > { %v2061_v20 = vmax.f32 %v1971_v55, 0.0 }
 0x27e   : > { %v1975_v46 = vpop.f32.mrf.mxu0 }
 0x27f   : > { %v1750_v27 = vpop.f32.mrf.mxu1  ;;  %3378 = vmatmul.mubr.f32.gmra.mxu1 %v2061_v20 }
 0x280   : > { %v1751_v14 = vadd.f32 %v1750_v27, %v4809_v28  ;;  %v1977_v45 = vpop.f32.mrf.mxu0 }
 0x281   : > { %v1752_v35 = vpop.f32.mrf.mxu1 }
 0x282   : > { %v1976_v53 = vadd.f32 %v1975_v46, %v1751_v14  ;;  %v1980_v29 = vpop.f32.mrf.mxu0 }
 0x284   : > { %v2062_v6 = vmax.f32 %v1976_v53, 0.0  ;;  %v1982_v51 = vpop.f32.mrf.mxu0 }
 0x286   : > { %3380 = vmatprep.mubr.f32.mxu1 %v2062_v6 }
 0x289   : > { %v1755_v56 = vpop.f32.mrf.mxu1 }
 0x28a   : > { %v1756_v42 = vadd.f32 %v1755_v56, %v4821_v31 }
 0x28b   : > { %v1757_v11 = vpop.f32.mrf.mxu1 }
 0x28c   : > { %v1981_v5 = vadd.f32 %v1980_v29, %v1756_v42 }
 0x28e   : > { %v2063_v4 = vmax.f32 %v1981_v5, 0.0 }
 0x28f   : > { %v1760_v47 = vpop.f32.mrf.mxu1 }
 0x290   : > { %3381 = vmatmul.mubr.f32.gmra.mxu1 %v2063_v4  ;;  %v1761_v36 = vadd.f32 %v1760_v47, %v4837_v24 }
 0x291   : > { %v1762_v13 = vpop.f32.mrf.mxu1 }
 0x293   : > { %v1985_v28 = vpop.f32.mrf.mxu0 }
 0x294   : > { %v1986_v12 = vadd.f32 %v1985_v28, %v1761_v36 }
 0x295   : > { %v1987_v44 = vpop.f32.mrf.mxu0 }
 0x296   : > { %v2064_v8 = vmax.f32 %v1986_v12, 0.0 }
 0x298   : > { %3383 = vmatprep.mubr.f32.mxu1 %v2064_v8 }
 0x299   : > { %v1765_v22 = vpop.f32.mrf.mxu1 }
 0x29a   : > { %v1766_v7 = vadd.f32 %v1765_v22, %v4847_v34 }
 0x29b   : > { %v1767_v9 = vpop.f32.mrf.mxu1 }
 0x29d   : > { %v1990_v41 = vpop.f32.mrf.mxu0 }
 0x29e   : > { %v1991_v1 = vadd.f32 %v1990_v41, %v1766_v7 }
 0x29f   : > { %v1992_v31 = vpop.f32.mrf.mxu0 }
 0x2a0   : > { %v2065_v40 = vmax.f32 %v1991_v1, 0.0 }
 0x2a2   : > { %v1770_v10 = vpop.f32.mrf.mxu1  ;;  %3384 = vmatmul.mubr.f32.gmra.mxu1 %v2065_v40 }
 0x2a3   : > { %v1771_v18 = vadd.f32 %v1770_v10, %v4860_v63 }
 0x2a4   : > { %v1772_v2 = vpop.f32.mrf.mxu1 }
 0x2a7   : > { %v1995_v52 = vpop.f32.mrf.mxu0 }
 0x2a8   : > { %v1996_v24 = vadd.f32 %v1995_v52, %v1771_v18 }
 0x2a9   : > { %v1997_v49 = vpop.f32.mrf.mxu0 }
 0x2aa   : > { %v2066_v17 = vmax.f32 %v1996_v24, 0.0 }
 0x2ab   : > { %v2000_v15 = vpop.f32.mrf.mxu0 }
 0x2ac   : > { %v1775_v26 = vpop.f32.mrf.mxu1  ;;  %3386 = vmatprep.mubr.f32.mxu1 %v2066_v17 }
 0x2ad   : > { %v1776_v57 = vadd.f32 %v1775_v26, %v4868_v58  ;;  %v2002_v48 = vpop.f32.mrf.mxu0 }
 0x2ae   : > { %v1777_v34 = vpop.f32.mrf.mxu1 }
 0x2af   : > { %v2001_v61 = vadd.f32 %v2000_v15, %v1776_v57  ;;  %v2005_v0 = vpop.f32.mrf.mxu0 }
 0x2b1   : > { %v2067_v37 = vmax.f32 %v2001_v61, 0.0  ;;  %v2007_v39 = vpop.f32.mrf.mxu0 }
 0x2b3   : > { %3387 = vmatmul.mubr.f32.gmra.mxu1 %v2067_v37 }
 0x2b6   : > { %v1780_v23 = vpop.f32.mrf.mxu1 }
 0x2b7   : > { %v1781_v33 = vadd.f32 %v1780_v23, %v4881_v59 }
 0x2b8   : > { %v1782_v63 = vpop.f32.mrf.mxu1 }
 0x2b9   : > { %v2006_v54 = vadd.f32 %v2005_v0, %v1781_v33 }
 0x2bb   : > { %v2068_v55 = vmax.f32 %v2006_v54, 0.0 }
 0x2bc   : > { %v1785_v16 = vpop.f32.mrf.mxu1 }
 0x2bd   : > { %3389 = vmatprep.mubr.f32.mxu1 %v2068_v55  ;;  %v1786_v20 = vadd.f32 %v1785_v16, %v4890_v21 }
 0x2be   : > { %v1787_v25 = vpop.f32.mrf.mxu1 }
 0x2c0   : > { %v2010_v46 = vpop.f32.mrf.mxu0 }
 0x2c1   : > { %v2011_v58 = vadd.f32 %v2010_v46, %v1786_v20 }
 0x2c2   : > { %v2012_v62 = vpop.f32.mrf.mxu0 }
 0x2c3   : > { %v2069_v27 = vmax.f32 %v2011_v58, 0.0 }
 0x2c5   : > { %3390 = vmatmul.mubr.f32.gmra.mxu1 %v2069_v27 }
 0x2c6   : > { %v1790_v14 = vpop.f32.mrf.mxu1 }
 0x2c7   : > { %v1791_v35 = vadd.f32 %v1790_v14, %v4897_v60 }
 0x2c8   : > { %v1792_v45 = vpop.f32.mrf.mxu1 }
 0x2ca   : > { %v2015_v53 = vpop.f32.mrf.mxu0 }
 0x2cb   : > { %v2016_v29 = vadd.f32 %v2015_v53, %v1791_v35 }
 0x2cc   : > { %v2017_v59 = vpop.f32.mrf.mxu0 }
 0x2cd   : > { %v2070_v6 = vmax.f32 %v2016_v29, 0.0 }
 0x2cf   : > { %v1795_v51 = vpop.f32.mrf.mxu1  ;;  %3392 = vmatprep.mubr.f32.mxu1 %v2070_v6 }
 0x2d0   : > { %v1796_v42 = vadd.f32 %v1795_v51, %v4901_v38 }
 0x2d1   : > { %v1797_v56 = vpop.f32.mrf.mxu1 }
 0x2d4   : > { %v2020_v11 = vpop.f32.mrf.mxu0 }
 0x2d5   : > { %v2021_v21 = vadd.f32 %v2020_v11, %v1796_v42 }
 0x2d6   : > { %v2022_v5 = vpop.f32.mrf.mxu0 }
 0x2d7   : > { %v2071_v4 = vmax.f32 %v2021_v21, 0.0 }
 0x2d8   : > { %v2025_v47 = vpop.f32.mrf.mxu0 }
 0x2d9   : > { %v1800_v13 = vpop.f32.mrf.mxu1  ;;  %3393 = vmatmul.mubr.f32.gmra.mxu1 %v2071_v4 }
 0x2da   : > { %v1801_v36 = vadd.f32 %v1800_v13, %v4904_v43  ;;  %v2027_v28 = vpop.f32.mrf.mxu0 }
 0x2db   : > { %v1802_v60 = vpop.f32.mrf.mxu1 }
 0x2dc   : > { %v2026_v12 = vadd.f32 %v2025_v47, %v1801_v36  ;;  %v2030_v44 = vpop.f32.mrf.mxu0 }
 0x2de   : > { %v2072_v8 = vmax.f32 %v2026_v12, 0.0  ;;  %v2032_v22 = vpop.f32.mrf.mxu0 }
 0x2e0   : > { %3395 = vmatprep.mubr.f32.mxu1 %v2072_v8 }
 0x2e3   : > { %v1805_v9 = vpop.f32.mrf.mxu1 }
 0x2e4   : > { %v1806_v7 = vadd.f32 %v1805_v9, %v4910_v30  ;;  %v5106_v30 = vld [vmem:[%s5218_s4] ss:$0 sm:$0xff] }
 0x2e5   : > { %v1807_v38 = vpop.f32.mrf.mxu1 }
 0x2e6   : > { %v2031_v41 = vadd.f32 %v2030_v44, %v1806_v7 }
 0x2e8   : > { %v2073_v1 = vmax.f32 %v2031_v41, 0.0 }
 0x2e9   : > { %v1810_v31 = vpop.f32.mrf.mxu1 }
 0x2ea   : > { %3396 = vmatmul.mubr.f32.gmra.mxu1 %v2073_v1  ;;  %v1811_v10 = vadd.f32 %v1810_v31, %v4915_v19 }
 0x2eb   : > { %v1812_v40 = vpop.f32.mrf.mxu1 }
 0x2ed   : > { %v2035_v2 = vpop.f32.mrf.mxu0 }
 0x2ee   : > { %v2036_v43 = vadd.f32 %v2035_v2, %v1811_v10 }
 0x2ef   : > { %v2037_v18 = vpop.f32.mrf.mxu0 }
 0x2f0   : > { %v2074_v52 = vmax.f32 %v2036_v43, 0.0 }
 0x2f2   : > { %3398 = vmatprep.mubr.f32.mxu1 %v2074_v52 }
 0x2f3   : > { %v1815_v24 = vpop.f32.mrf.mxu1 }
 0x2f4   : > { %v1816_v17 = vadd.f32 %v1815_v24, %v4919_v3 }
 0x2f5   : > { %v1817_v49 = vpop.f32.mrf.mxu1 }
 0x2f7   : > { %v2040_v15 = vpop.f32.mrf.mxu0  ;;  %v3355_v26 = vpop.f32.mrf.mxu1 }
 0x2f8   : > { %v2041_v57 = vadd.f32 %v2040_v15, %v1816_v17  ;;  %v2171_v61 = vadd.f32 %v3355_v26, %v5106_v30 }
 0x2f9   : > { %v2042_v48 = vpop.f32.mrf.mxu0  ;;  %v2165_v34 = vpop.f32.mrf.mxu1 }
 0x2fa   : > { %v2075_v19 = vmax.f32 %v2041_v57, 0.0  ;;  %v2166_v0 = vadd.f32 %v5106_v30, %v2165_v34  ;;  %v2325_v3 = vmax.f32 %v2171_v61, 0.0 }
 0x2fb   : > { %v3358_v37 = vpop.f32.mrf.mxu1 }
 0x2fc   : > { %v2324_v39 = vmax.f32 %v2166_v0, 0.0  ;;  %3399 = vmatmul.mubr.f32.gmra.mxu1 %v2075_v19  ;;  %v2181_v33 = vadd.f32 %v3358_v37, %v5106_v30 }
 0x2fd   : > { %v2175_v23 = vpop.f32.mrf.mxu1 }
 0x2fe   : > { %v2176_v63 = vadd.f32 %v5106_v30, %v2175_v23  ;;  %3433 = vmatprep.mubr.f32.mxu1 %v2324_v39  ;;  %v2327_v25 = vmax.f32 %v2181_v33, 0.0 }
 0x2ff   : > { %v3361_v54 = vpop.f32.mrf.mxu1 }
 0x300   : > { %v2326_v55 = vmax.f32 %v2176_v63, 0.0  ;;  %3434 = vmatmul.mubr.f32.vlgmr.msra.gmra.mxu1 %v2325_v3  ;;  %v2191_v20 = vadd.f32 %v3361_v54, %v5106_v30 }
 0x301   : > { %v2185_v16 = vpop.f32.mrf.mxu1 }
 0x302   : > { %v2186_v46 = vadd.f32 %v5106_v30, %v2185_v16  ;;  %3436 = vmatprep.mubr.f32.mxu1 %v2326_v55  ;;  %v2329_v14 = vmax.f32 %v2191_v20, 0.0 }
 0x303   : > { %v3364_v58 = vpop.f32.mrf.mxu1 }
 0x304   : > { %v2328_v62 = vmax.f32 %v2186_v46, 0.0  ;;  %3437 = vmatmul.mubr.f32.gmra.mxu1 %v2327_v25  ;;  %v2201_v45 = vadd.f32 %v3364_v58, %v5106_v30 }
 0x305   : > { %v2195_v27 = vpop.f32.mrf.mxu1 }
 0x306   : > { %v2196_v35 = vadd.f32 %v5106_v30, %v2195_v27  ;;  %3439 = vmatprep.mubr.f32.mxu1 %v2328_v62  ;;  %v2331_v6 = vmax.f32 %v2201_v45, 0.0 }
 0x307   : > { %v3367_v53 = vpop.f32.mrf.mxu1 }
 0x308   : > { %v2330_v29 = vmax.f32 %v2196_v35, 0.0  ;;  %3440 = vmatmul.mubr.f32.gmra.mxu1 %v2329_v14  ;;  %v2211_v51 = vadd.f32 %v3367_v53, %v5106_v30 }
 0x309   : > { %v2205_v59 = vpop.f32.mrf.mxu1 }
 0x30a   : > { %v2206_v56 = vadd.f32 %v5106_v30, %v2205_v59  ;;  %3442 = vmatprep.mubr.f32.mxu1 %v2330_v29  ;;  %v2333_v5 = vmax.f32 %v2211_v51, 0.0 }
 0x30b   : > { %v3370_v42 = vpop.f32.mrf.mxu1 }
 0x30c   : > { %v2332_v11 = vmax.f32 %v2206_v56, 0.0  ;;  %3443 = vmatmul.mubr.f32.gmra.mxu1 %v2331_v6  ;;  %v2221_v4 = vadd.f32 %v3370_v42, %v5106_v30 }
 0x30d   : > { %v2215_v21 = vpop.f32.mrf.mxu1 }
 0x30e   : > { %v2216_v47 = vadd.f32 %v5106_v30, %v2215_v21  ;;  %3445 = vmatprep.mubr.f32.mxu1 %v2332_v11  ;;  %v2335_v36 = vmax.f32 %v2221_v4, 0.0 }
 0x310   : > { %v2334_v13 = vmax.f32 %v2216_v47, 0.0  ;;  %3446 = vmatmul.mubr.f32.gmra.mxu1 %v2333_v5 }
 0x312   : > { %3448 = vmatprep.mubr.f32.mxu1 %v2334_v13 }
 0x314   : > { %3449 = vmatmul.mubr.f32.gmra.mxu1 %v2335_v36 }
 0x319   : > { %v3373_v28 = vpop.f32.mrf.mxu1 }
 0x31a   : > { %v2231_v60 = vadd.f32 %v3373_v28, %v5106_v30  ;;  %v5143_v28 = vld [vmem:[%s5218_s4 + $0x1] ss:$0 sm:$0xff] }
 0x31b   : > { %v2225_v12 = vpop.f32.mrf.mxu1 }
 0x31c   : > { %v2226_v44 = vadd.f32 %v5106_v30, %v2225_v12  ;;  %v2337_v22 = vmax.f32 %v2231_v60, 0.0 }
 0x31e   : > { %v2336_v8 = vmax.f32 %v2226_v44, 0.0 }
 0x320   : > { %3451 = vmatprep.mubr.f32.mxu1 %v2336_v8 }
 0x321   : > { %3452 = vmatmul.mubr.f32.gmra.mxu1 %v2337_v22 }
 0x32b   : > { %v3376_v9 = vpop.f32.mrf.mxu1 }
 0x32c   : > { %v2241_v7 = vadd.f32 %v3376_v9, %v5106_v30 }
 0x32d   : > { %v2235_v38 = vpop.f32.mrf.mxu1 }
 0x32e   : > { %v2236_v41 = vadd.f32 %v5106_v30, %v2235_v38  ;;  %v2339_v31 = vmax.f32 %v2241_v7, 0.0 }
 0x330   : > { %v2338_v1 = vmax.f32 %v2236_v41, 0.0 }
 0x332   : > { %3454 = vmatprep.mubr.f32.mxu1 %v2338_v1 }
 0x333   : > { %3455 = vmatmul.mubr.f32.gmra.mxu1 %v2339_v31 }
 0x33f   : > { %v3379_v40 = vpop.f32.mrf.mxu1 }
 0x340   : > { %v2251_v10 = vadd.f32 %v3379_v40, %v5106_v30 }
 0x341   : > { %v2245_v2 = vpop.f32.mrf.mxu1 }
 0x342   : > { %v2246_v43 = vadd.f32 %v5106_v30, %v2245_v2  ;;  %v2341_v52 = vmax.f32 %v2251_v10, 0.0 }
 0x344   : > { %v2340_v18 = vmax.f32 %v2246_v43, 0.0 }
 0x346   : > { %3457 = vmatprep.mubr.f32.mxu1 %v2340_v18 }
 0x347   : > { %3458 = vmatmul.mubr.f32.gmra.mxu1 %v2341_v52 }
 0x350   : > { %v3382_v24 = vpop.f32.mrf.mxu1 }
 0x351   : > { %v2261_v49 = vadd.f32 %v3382_v24, %v5106_v30 }
 0x352   : > { %v2255_v17 = vpop.f32.mrf.mxu1 }
 0x353   : > { %v2256_v15 = vadd.f32 %v5106_v30, %v2255_v17  ;;  %v2343_v57 = vmax.f32 %v2261_v49, 0.0 }
 0x355   : > { %v2342_v26 = vmax.f32 %v2256_v15, 0.0 }
 0x357   : > { %3460 = vmatprep.mubr.f32.mxu1 %v2342_v26 }
 0x358   : > { %3461 = vmatmul.mubr.f32.gmra.mxu1 %v2343_v57 }
 0x362   : > { %v3385_v48 = vpop.f32.mrf.mxu1 }
 0x363   : > { %v2271_v34 = vadd.f32 %v3385_v48, %v5106_v30 }
 0x364   : > { %v2265_v19 = vpop.f32.mrf.mxu1 }
 0x365   : > { %v2266_v61 = vadd.f32 %v5106_v30, %v2265_v19  ;;  %v2345_v37 = vmax.f32 %v2271_v34, 0.0 }
 0x367   : > { %v2344_v0 = vmax.f32 %v2266_v61, 0.0 }
 0x369   : > { %3463 = vmatprep.mubr.f32.mxu1 %v2344_v0 }
 0x36a   : > { %3464 = vmatmul.mubr.f32.gmra.mxu1 %v2345_v37 }
 0x373   : > { %v3388_v39 = vpop.f32.mrf.mxu1 }
 0x374   : > { %v2281_v23 = vadd.f32 %v3388_v39, %v5106_v30 }
 0x375   : > { %v2275_v3 = vpop.f32.mrf.mxu1 }
 0x376   : > { %v2276_v33 = vadd.f32 %v5106_v30, %v2275_v3  ;;  %v2347_v54 = vmax.f32 %v2281_v23, 0.0 }
 0x378   : > { %v2346_v63 = vmax.f32 %v2276_v33, 0.0 }
 0x37a   : > { %3466 = vmatprep.mubr.f32.mxu1 %v2346_v63 }
 0x37b   : > { %3467 = vmatmul.mubr.f32.gmra.mxu1 %v2347_v54 }
 0x385   : > { %v3391_v55 = vpop.f32.mrf.mxu1 }
 0x386   : > { %v2291_v16 = vadd.f32 %v3391_v55, %v5106_v30 }
 0x387   : > { %v2285_v25 = vpop.f32.mrf.mxu1 }
 0x388   : > { %v2286_v20 = vadd.f32 %v5106_v30, %v2285_v25  ;;  %v2349_v58 = vmax.f32 %v2291_v16, 0.0 }
 0x38a   : > { %v2348_v46 = vmax.f32 %v2286_v20, 0.0 }
 0x38c   : > { %3469 = vmatprep.mubr.f32.mxu1 %v2348_v46 }
 0x38d   : > { %3470 = vmatmul.mubr.f32.gmra.mxu1 %v2349_v58 }
 0x399   : > { %v3394_v62 = vpop.f32.mrf.mxu1 }
 0x39a   : > { %v2301_v27 = vadd.f32 %v3394_v62, %v5106_v30 }
 0x39b   : > { %v2295_v14 = vpop.f32.mrf.mxu1 }
 0x39c   : > { %v2296_v45 = vadd.f32 %v5106_v30, %v2295_v14  ;;  %v2351_v53 = vmax.f32 %v2301_v27, 0.0 }
 0x39e   : > { %v2350_v35 = vmax.f32 %v2296_v45, 0.0 }
 0x3a0   : > { %3472 = vmatprep.mubr.f32.mxu1 %v2350_v35 }
 0x3a1   : > { %3473 = vmatmul.mubr.f32.gmra.mxu1 %v2351_v53 }
 0x3aa   : > { %v3397_v29 = vpop.f32.mrf.mxu1 }
 0x3ab   : > { %v2311_v59 = vadd.f32 %v3397_v29, %v5106_v30 }
 0x3ac   : > { %v2305_v6 = vpop.f32.mrf.mxu1 }
 0x3ad   : > { %v2306_v51 = vadd.f32 %v5106_v30, %v2305_v6  ;;  %v2353_v42 = vmax.f32 %v2311_v59, 0.0 }
 0x3af   : > { %v2352_v56 = vmax.f32 %v2306_v51, 0.0 }
 0x3b1   : > { %3475 = vmatprep.mubr.f32.mxu1 %v2352_v56 }
 0x3b2   : > { %3476 = vmatmul.mubr.f32.gmra.mxu1 %v2353_v42 }
 0x3bc   : > { %v3400_v11 = vpop.f32.mrf.mxu1 }
 0x3bd   : > { %v2321_v21 = vadd.f32 %v3400_v11, %v5106_v30 }
 0x3be   : > { %v2315_v5 = vpop.f32.mrf.mxu1 }
 0x3bf   : > { %v2316_v4 = vadd.f32 %v5106_v30, %v2315_v5  ;;  %v2355_v36 = vmax.f32 %v2321_v21, 0.0 }
 0x3c0   : > { %v3435_v47 = vpop.f32.mrf.mxu1 }
 0x3c1   : > { %v2354_v13 = vmax.f32 %v2316_v4, 0.0  ;;  %v2453_v8 = vadd.f32 %v3435_v47, %v5143_v28 }
 0x3c2   : > { %v2447_v60 = vpop.f32.mrf.mxu1 }
 0x3c3   : > { %v2448_v12 = vadd.f32 %v5143_v28, %v2447_v60  ;;  %3478 = vmatprep.mubr.f32.mxu1 %v2354_v13 }
 0x3c4   : > { %v3438_v44 = vpop.f32.mrf.mxu1  ;;  %3479 = vmatmul.mubr.f32.gmra.mxu1 %v2355_v36 }
 0x3c5   : > { %2606 = vxpose.xlu0.b32.start [1/16] (narrow) %v2448_v12, 64  ;;  %v2463_v7 = vadd.f32 %v3438_v44, %v5143_v28 }
 0x3c6   : > { %v2457_v22 = vpop.f32.mrf.mxu1 }
 0x3c7   : > { %v2458_v30 = vadd.f32 %v5143_v28, %v2457_v22 }
 0x3c8   : > { %v3441_v9 = vpop.f32.mrf.mxu1 }
 0x3c9   : > { %2607 = vxpose.xlu0.b32.cont [2/16] (narrow) %v2453_v8, 64  ;;  %v2473_v31 = vadd.f32 %v3441_v9, %v5143_v28 }
 0x3ca   : > { %v2467_v38 = vpop.f32.mrf.mxu1 }
 0x3cb   : > { %v2468_v41 = vadd.f32 %v5143_v28, %v2467_v38 }
 0x3cc   : > { %v3444_v1 = vpop.f32.mrf.mxu1 }
 0x3cd   : > { %2608 = vxpose.xlu0.b32.cont [3/16] (narrow) %v2458_v30, 64  ;;  %v2483_v43 = vadd.f32 %v3444_v1, %v5143_v28 }
 0x3ce   : > { %v2477_v40 = vpop.f32.mrf.mxu1 }
 0x3cf   : > { %v2478_v10 = vadd.f32 %v5143_v28, %v2477_v40 }
 0x3d0   : > { %v3447_v2 = vpop.f32.mrf.mxu1 }
 0x3d1   : > { %2609 = vxpose.xlu0.b32.cont [4/16] (narrow) %v2463_v7, 64  ;;  %v2493_v49 = vadd.f32 %v3447_v2, %v5143_v28 }
 0x3d2   : > { %v2487_v18 = vpop.f32.mrf.mxu1 }
 0x3d3   : > { %v2488_v52 = vadd.f32 %v5143_v28, %v2487_v18 }
 0x3d4   : > { %v3450_v24 = vpop.f32.mrf.mxu1 }
 0x3d5   : > { %2610 = vxpose.xlu0.b32.cont [5/16] (narrow) %v2468_v41, 64  ;;  %v2503_v57 = vadd.f32 %v3450_v24, %v5143_v28 }
 0x3d6   : > { %v2497_v17 = vpop.f32.mrf.mxu1 }
 0x3d7   : > { %v2498_v15 = vadd.f32 %v5143_v28, %v2497_v17 }
 0x3d9   : > { %2611 = vxpose.xlu0.b32.cont [6/16] (narrow) %v2473_v31, 64 }
 0x3dd   : > { %2612 = vxpose.xlu0.b32.cont [7/16] (narrow) %v2478_v10, 64 }
 0x3e1   : > { %2613 = vxpose.xlu0.b32.cont [8/16] (narrow) %v2483_v43, 64  ;;  %v3453_v26 = vpop.f32.mrf.mxu1 }
 0x3e2   : > { %v2513_v61 = vadd.f32 %v3453_v26, %v5143_v28 }
 0x3e3   : > { %v2507_v48 = vpop.f32.mrf.mxu1 }
 0x3e4   : > { %v2508_v34 = vadd.f32 %v5143_v28, %v2507_v48 }
 0x3e5   : > { %2614 = vxpose.xlu0.b32.cont [9/16] (narrow) %v2488_v52, 64 }
 0x3e9   : > { %2615 = vxpose.xlu0.b32.cont [10/16] (narrow) %v2493_v49, 64 }
 0x3ed   : > { %2616 = vxpose.xlu0.b32.cont [11/16] (narrow) %v2498_v15, 64 }
 0x3f1   : > { %2617 = vxpose.xlu0.b32.cont [12/16] (narrow) %v2503_v57, 64 }
 0x3f3   : > { %v3456_v19 = vpop.f32.mrf.mxu1 }
 0x3f4   : > { %v2523_v39 = vadd.f32 %v3456_v19, %v5143_v28 }
 0x3f5   : > { %2618 = vxpose.xlu0.b32.cont [13/16] (narrow) %v2508_v34, 64  ;;  %v2517_v0 = vpop.f32.mrf.mxu1 }
 0x3f6   : > { %v2518_v37 = vadd.f32 %v5143_v28, %v2517_v0 }
 0x3f9   : > { %2619 = vxpose.xlu0.b32.cont [14/16] (narrow) %v2513_v61, 64 }
 0x3fd   : > { %2620 = vxpose.xlu0.b32.cont [15/16] (narrow) %v2518_v37, 64 }
 0x401   : > { %2621 = vxpose.xlu0.b32.end [16/16] (narrow) %v2523_v39, 64 }
 0x407   : > { %v3459_v23 = vpop.f32.mrf.mxu1 }
 0x408   : > { %v2533_v63 = vadd.f32 %v3459_v23, %v5143_v28 }
 0x409   : > { %v2527_v3 = vpop.f32.mrf.mxu1 }
 0x40a   : > { %v2528_v33 = vadd.f32 %v5143_v28, %v2527_v3 }
 0x40c   : > { %2638 = vxpose.xlu1.b32.start [1/16] (narrow) %v2528_v33, 64 }
 0x410   : > { %2639 = vxpose.xlu1.b32.cont [2/16] (narrow) %v2533_v63, 64 }
 0x418   : > { %v3462_v54 = vpop.f32.mrf.mxu1 }
 0x419   : > { %v2543_v25 = vadd.f32 %v3462_v54, %v5143_v28 }
 0x41a   : > { %v2537_v55 = vpop.f32.mrf.mxu1 }
 0x41b   : > { %v2538_v16 = vadd.f32 %v5143_v28, %v2537_v55 }
 0x41d   : > { %2640 = vxpose.xlu1.b32.cont [3/16] (narrow) %v2538_v16, 64 }
 0x421   : > { %2641 = vxpose.xlu1.b32.cont [4/16] (narrow) %v2543_v25, 64 }
 0x42a   : > { %v3465_v20 = vpop.f32.mrf.mxu1  ;;  %3599 = vset.pattern.permute.xlu0 %v3691_v50 }
 0x42b   : > { %v2553_v62 = vadd.f32 %v3465_v20, %v5143_v28 }
 0x42c   : > { %v2547_v46 = vpop.f32.mrf.mxu1 }
 0x42d   : > { %v2548_v58 = vadd.f32 %v5143_v28, %v2547_v46 }
 0x42f   : > { %2642 = vxpose.xlu1.b32.cont [5/16] (narrow) %v2548_v58, 64 }
 0x433   : > { %2643 = vxpose.xlu1.b32.cont [6/16] (narrow) %v2553_v62, 64 }
 0x43b   : > { %v3468_v27 = vpop.f32.mrf.mxu1 }
 0x43c   : > { %v2563_v35 = vadd.f32 %v3468_v27, %v5143_v28 }
 0x43d   : > { %v2557_v14 = vpop.f32.mrf.mxu1 }
 0x43e   : > { %v2558_v45 = vadd.f32 %v5143_v28, %v2557_v14 }
 0x440   : > { %2644 = vxpose.xlu1.b32.cont [7/16] (narrow) %v2558_v45, 64 }
 0x441   : > { %v2622_v12 = vpop.trf.xlu0 }
 0x442   : > { %v2696_v7 = vmul.f32 %v2622_v12, %v2622_v12 }
 0x444   : > { %2645 = vxpose.xlu1.b32.cont [8/16] (narrow) %v2563_v35, 64 }
 0x445   : > { %v2623_v44 = vpop.trf.xlu0 }
 0x446   : > { %v2698_v38 = vmul.f32 %v2623_v44, %v2623_v44 }
 0x448   : > { %v2704_v40 = vadd.f32 %v2698_v38, %v2696_v7 }
 0x449   : > { %v2624_v8 = vpop.trf.xlu0 }
 0x44a   : > { %v2700_v10 = vmul.f32 %v2624_v8, %v2624_v8 }
 0x44c   : > { %v2705_v24 = vadd.f32 %v2704_v40, %v2700_v10 }
 0x44d   : > { %v3471_v53 = vpop.f32.mrf.mxu1  ;;  %v2625_v22 = vpop.trf.xlu0 }
 0x44e   : > { %v2573_v50 = vadd.f32 %v3471_v53, %v5143_v28 }
 0x44f   : > { %v2567_v29 = vpop.f32.mrf.mxu1 }
 0x450   : > { %v2568_v59 = vadd.f32 %v5143_v28, %v2567_v29 }
 0x451   : > { %v2626_v30 = vpop.trf.xlu0 }
 0x452   : > { %2646 = vxpose.xlu1.b32.cont [9/16] (narrow) %v2568_v59, 64  ;;  %v2722_v1 = vmul.f32 %v2626_v30, %v2626_v30  ;;  %v2670_v20 = vmul.f32 %v2626_v30, %v2622_v12 }
 0x455   : > { %v2627_v9 = vpop.trf.xlu0 }
 0x456   : > { %2647 = vxpose.xlu1.b32.cont [10/16] (narrow) %v2573_v50, 64  ;;  %v2724_v31 = vmul.f32 %v2627_v9, %v2627_v9  ;;  %v2672_v46 = vmul.f32 %v2627_v9, %v2623_v44 }
 0x458   : > { %v2730_v43 = vadd.f32 %v2724_v31, %v2722_v1  ;;  %v2678_v35 = vadd.f32 %v2672_v46, %v2670_v20  ;;  %v2767_v46 = vshrl.u32 %v279_v32, 7 }
 0x459   : > { %v2628_v41 = vpop.trf.xlu0 }
 0x45a   : > { %v2726_v18 = vmul.f32 %v2628_v41, %v2628_v41  ;;  %v2674_v53 = vmul.f32 %v2628_v41, %v2624_v8 }
 0x45c   : > { %v2731_v17 = vadd.f32 %v2730_v43, %v2726_v18 }
 0x45d   : > { %v2629_v52 = vpop.trf.xlu0 }
 0x45e   : > { %v2728_v15 = vmul.f32 %v2629_v52, %v2629_v52 }
 0x460   : > { %v2732_v48 = vadd.f32 %v2731_v17, %v2728_v15 }
 0x461   : > { %v3474_v6 = vpop.f32.mrf.mxu1 }
 0x462   : > { %v2583_v42 = vadd.f32 %v3474_v6, %v5143_v28  ;;  %v2733_v0 = vrot.slane %v2732_v48, 4 }
 0x463   : > { %v2577_v51 = vpop.f32.mrf.mxu1 }
 0x464   : > { %v2578_v56 = vadd.f32 %v5143_v28, %v2577_v51  ;;  %v2734_v54 = vadd.f32 %v2733_v0, %v2732_v48 }
 0x466   : > { %2648 = vxpose.xlu1.b32.cont [11/16] (narrow) %v2578_v56, 64  ;;  %v2735_v62 = vrot.slane %v2734_v54, 2 }
 0x468   : > { %v2736_v59 = vadd.f32 %v2735_v62, %v2734_v54 }
 0x46a   : > { %2649 = vxpose.xlu1.b32.cont [12/16] (narrow) %v2583_v42, 64 }
 0x472   : > { %v3477_v11 = vpop.f32.mrf.mxu1 }
 0x473   : > { %v2593_v4 = vadd.f32 %v3477_v11, %v5143_v28  ;;  %v2679_v11 = vadd.f32 %v2678_v35, %v2674_v53 }
 0x474   : > { %v2587_v21 = vpop.f32.mrf.mxu1 }
 0x475   : > { %v2588_v5 = vadd.f32 %v5143_v28, %v2587_v21  ;;  %v2676_v21 = vmul.f32 %v2629_v52, %v2625_v22 }
 0x477   : > { %2650 = vxpose.xlu1.b32.cont [13/16] (narrow) %v2588_v5, 64  ;;  %v2680_v8 = vadd.f32 %v2679_v11, %v2676_v21 }
 0x479   : > { %v2681_v43 = vrot.slane %v2680_v8, 4 }
 0x47b   : > { %2651 = vxpose.xlu1.b32.cont [14/16] (narrow) %v2593_v4, 64  ;;  %v2737_v4 = vrot.slane %v2736_v59, 1 }
 0x47d   : > { %v2738_v7 = vadd.f32 %v2737_v4, %v2736_v59 }
 0x484   : > { %v3480_v47 = vpop.f32.mrf.mxu1 }
 0x485   : > { %v2603_v60 = vadd.f32 %v3480_v47, %v5143_v28 }
 0x486   : > { %v2597_v13 = vpop.f32.mrf.mxu1 }
 0x487   : > { %v2598_v36 = vadd.f32 %v5143_v28, %v2597_v13  ;;  %v2702_v28 = vmul.f32 %v2625_v22, %v2625_v22 }
 0x489   : > { %2652 = vxpose.xlu1.b32.cont [15/16] (narrow) %v2598_v36, 64  ;;  %v2706_v26 = vadd.f32 %v2705_v24, %v2702_v28 }
 0x48b   : > { %v2707_v19 = vrot.slane %v2706_v26, 4 }
 0x48d   : > { %2653 = vxpose.xlu1.b32.end [16/16] (narrow) %v2603_v60, 64  ;;  %v2708_v33 = vadd.f32 %v2707_v19, %v2706_v26 }
 0x48f   : > { %v2709_v25 = vrot.slane %v2708_v33, 2 }
 0x491   : > { %v2710_v45 = vadd.f32 %v2709_v25, %v2708_v33 }
 0x493   : > { %v2711_v42 = vrot.slane %v2710_v45, 1 }
 0x495   : > { %v2712_v9 = vadd.f32 %v2711_v42, %v2710_v45 }
 0x497   : > { %v2748_v22 = vmul.f32 %v2738_v7, %v2712_v9 }
 0x499   : > { %v2750_v17 = vadd.f32 1e-16, %v2748_v22 }
 0x49b   : > { %3600 = vrsqrt.f32 %v2750_v17 }
 0x4cd   : > { %v2654_v2 = vpop.trf.xlu1 }
 0x4ce   : > { %v2697_v37 = vmul.f32 %v2654_v2, %v2654_v2 }
 0x4d1   : > { %v2655_v49 = vpop.trf.xlu1 }
 0x4d2   : > { %v2699_v34 = vmul.f32 %v2655_v49, %v2655_v49 }
 0x4d4   : > { %v2713_v23 = vadd.f32 %v2699_v34, %v2697_v37 }
 0x4d5   : > { %v2656_v57 = vpop.trf.xlu1 }
 0x4d6   : > { %v2701_v39 = vmul.f32 %v2656_v57, %v2656_v57 }
 0x4d8   : > { %v2714_v55 = vadd.f32 %v2713_v23, %v2701_v39 }
 0x4d9   : > { %v2657_v61 = vpop.trf.xlu1 }
 0x4da   : > { %v2703_v3 = vmul.f32 %v2657_v61, %v2657_v61 }
 0x4dc   : > { %v2715_v16 = vadd.f32 %v2714_v55, %v2703_v3  ;;  %v3601_v55 = vpop.eup %3600 }
 0x4dd   : > { %v2658_v63 = vpop.trf.xlu1 }
 0x4de   : > { %v2716_v27 = vrot.slane %v2715_v16, 4  ;;  %v2723_v50 = vmul.f32 %v2658_v63, %v2658_v63  ;;  %v2671_v12 = vmul.f32 %v2658_v63, %v2654_v2  ;;  %v3694_v63 = vmov 1966171168  }
 0x4df   : > { %v2764_v54 = vunpack.c.l.s4 %v3694_v63 }
 0x4e0   : > { %v2717_v51 = vadd.f32 %v2716_v27, %v2715_v16 }
 0x4e1   : > { %v2659_v58 = vpop.trf.xlu1  ;;  %v2765_v20 = vunpack.c.0.s8 %v2764_v54 }
 0x4e2   : > { %v2725_v14 = vmul.f32 %v2659_v58, %v2659_v58  ;;  %v2673_v47 = vmul.f32 %v2659_v58, %v2655_v49  ;;  %v2718_v60 = vrot.slane %v2717_v51, 2  ;;  %v2682_v49 = vadd.f32 %v2681_v43, %v2680_v8 }
 0x4e3   : > { %v2768_v45 = vsub.s32 %v2765_v20, %v2767_v46 }
 0x4e4   : > { %v2739_v56 = vadd.f32 %v2725_v14, %v2723_v50  ;;  %v2687_v38 = vadd.f32 %v2673_v47, %v2671_v12  ;;  %v2719_v31 = vadd.f32 %v2718_v60, %v2717_v51  ;;  %v2683_v48 = vrot.slane %v2682_v49, 2 }
 0x4e5   : > { %v2660_v29 = vpop.trf.xlu1 }
 0x4e6   : > { %v2727_v6 = vmul.f32 %v2660_v29, %v2660_v29  ;;  %v2675_v44 = vmul.f32 %v2660_v29, %v2656_v57  ;;  %v2720_v24 = vrot.slane %v2719_v31, 1  ;;  %v2684_v0 = vadd.f32 %v2683_v48, %v2682_v49 }
 0x4e8   : > { %v2740_v13 = vadd.f32 %v2739_v56, %v2727_v6  ;;  %v2688_v40 = vadd.f32 %v2687_v38, %v2675_v44  ;;  %v2721_v26 = vadd.f32 %v2720_v24, %v2719_v31  ;;  %v2685_v39 = vrot.slane %v2684_v0, 1 }
 0x4e9   : > { %v2661_v5 = vpop.trf.xlu1 }
 0x4ea   : > { %v2729_v36 = vmul.f32 %v2661_v5, %v2661_v5  ;;  %v2677_v41 = vmul.f32 %v2661_v5, %v2657_v61  ;;  %v2686_v3 = vadd.f32 %v2685_v39, %v2684_v0 }
 0x4ec   : > { %v2741_v30 = vadd.f32 %v2740_v13, %v2729_v36  ;;  %v2689_v18 = vadd.f32 %v2688_v40, %v2677_v41  ;;  %v2754_v16 = vmul.f32 %v3601_v55, %v2686_v3 }
 0x4ee   : > { %v2742_v1 = vrot.slane %v2741_v30, 4  ;;  %v2690_v2 = vrot.slane %v2689_v18, 4  ;;  %v3217_v27 = vclamps-f32 %v2754_v16, 1.0 }
 0x4f0   : > { %v2743_v10 = vadd.f32 %v2742_v1, %v2741_v30  ;;  %v2691_v34 = vadd.f32 %v2690_v2, %v2689_v18 }
 0x4f2   : > { %v2744_v52 = vrot.slane %v2743_v10, 2  ;;  %v2692_v37 = vrot.slane %v2691_v34, 2 }
 0x4f4   : > { %v2745_v28 = vadd.f32 %v2744_v52, %v2743_v10  ;;  %v2693_v23 = vadd.f32 %v2692_v37, %v2691_v34 }
 0x4f6   : > { %v2746_v15 = vrot.slane %v2745_v28, 1  ;;  %v2694_v33 = vrot.slane %v2693_v23, 1 }
 0x4f8   : > { %v2747_v57 = vadd.f32 %v2746_v15, %v2745_v28  ;;  %v2695_v25 = vadd.f32 %v2694_v33, %v2693_v23 }
 0x4fa   : > { %v2749_v19 = vmul.f32 %v2747_v57, %v2721_v26 }
 0x4fc   : > { %v2751_v61 = vadd.f32 1e-16, %v2749_v19 }
 0x4fe   : > { %3602 = vrsqrt.f32 %v2751_v61 }
 0x50b   : > { %v3603_v58 = vpop.eup %3602 }
 0x50c   : > { %v2755_v62 = vmul.f32 %v3603_v58, %v2695_v25 }
 0x50e   : > { %v3218_v14 = vclamps-f32 %v2755_v62, 1.0 }
 0x510   : > { %v2762_v35 = vcombine.low %v3217_v27, %v3218_v14 }
 0x512   : > { %v2769_v53 = vrot.slane %v2762_v35, %v2768_v45 }
 0x514   : > { %v2776_v29 = vrot.slane %v2769_v53, %v2768_v45 }
 0x516   : > { %2782 = vst.msk [vmem:[%s234_s17] sm:$0x3] %vm2780_vm0, %v2776_v29 }
 0x517   : > { %3638 = shalt.err (!%p3635_p3)
}
 0x518   : > { %s3639_s7 = scalar_lea.hbm %s2796_s26, 32  ;;  %s3643_s11 = scalar_lea.hbm %s5219_s5, 64 }
 0x519   : > { %p3640_p4 = scmp.ne.s32.totalorder %s2796_s26, %s3639_s7  ;;  %p3644_p9 = scmp.lt.s32.totalorder %s2796_s26, %s5219_s5 }
 0x51a   : > { %p3645_p10 = scmp.lt.s32.totalorder %s3643_s11, %s3639_s7 }
 0x51b   : > { %p3641_p7 = pnand %p3640_p4, %p3761_p5 }
 0x51c   : > { %p3646_p11 = por %p3645_p10, %p3644_p9 }
 0x51d   : > { %p3642_p8 = pneg %p3641_p7 }
 0x51f   : > { %p3647_p12 = pnand %p3646_p11, %p3642_p8 }
 0x521   : > { %3650 = shalt.err (!%p3647_p12)
}
 0x522   : > { %3481 = dma.vmem_to_hbm [thread:$0]  (%p3761_p5), %s2799_s22, 32, %s2796_s26, %s2784_s6  }
 0x523 PF: > { %p3487_p13 = scmp.ge.s32.totalorder %s3685_s21, 2  ;;  %s2810_s15 = sand.u32 1, %s3673_s18  }
 0x524   : > { %s2811_s17 = scalar_lea.sflag [#allocation3], %s2810_s15 }
 0x525   : > { %p3484_p0 = pnand %p3487_p13, %p3765_p6 }
 0x527   : > { %p3485_p1 = pneg %p3484_p0 }
 0x529   : > { %3668 = dma.done.wait (%p3485_p1), %s2811_s17, 32  }
 0x52a   : > { %3670 = vsyncadd (%p3485_p1), %s2811_s17, 4294967264  ;;  %p15_p2 = scmp.ge.s32.totalorder %s3749_s24, 4   ;;  %s5222_s18 = smov %s3677_s19 }
 0x52b   : > { %s5223_s19 = smov %s3681_s20  ;;  %s5224_s20 = smov %s3759_s27 }
 0x52c   : > { %s5225_s21 = smov %s3749_s24  ;;  %17 = sbr.rel (!%p15_p2) target bundleno = 3 (0x3), region = 80 }
 0x531   :  { %2816 = vsyncpa [#allocation3], 1 }
 0x532   :  { %2818 = vsyncpa [#allocation3 + $0x1], 1 }

</bundles_post_ra>
